<compile_context>
chip_gen: v5e
topology: v5e:2x2
jax: 0.10.0
libtpu: 0.0.40
codegen_flags: <defaults>
</compile_context>

<pallas_src>
import math
import jax
import jax.numpy as jnp
from jax.experimental import pallas as pl
from jax.experimental.pallas import tpu as pltpu


def _round_up(x, m):
    return ((x + m - 1) // m) * m


def ffn_kernel(x_ref, w1_ref, b1_ref, w2_ref, b2_ref, o_ref):
    # x_ref:  (tm, D)   bf16
    # w1_ref: (D, H)    bf16, resident across grid steps
    # b1_ref: (1, H)    f32
    # w2_ref: (H, D)    bf16, resident across grid steps
    # b2_ref: (1, D)    f32
    # o_ref:  (tm, D)   f32 (input dtype)
    x = x_ref[...]
    h = jnp.dot(x, w1_ref[...], preferred_element_type=jnp.float32)
    h = jnp.maximum(h + b1_ref[...], 0.0)                 # bias + ReLU in f32
    h = h.astype(w2_ref.dtype)                            # back to bf16 for MXU
    y = jnp.dot(h, w2_ref[...], preferred_element_type=jnp.float32) + b2_ref[...]
    o_ref[...] = y.astype(o_ref.dtype)


def feedforward(x, w1, b1, w2, b2, *, tm=256, compute_dtype=jnp.bfloat16):
    """x: (B, T, D) -> (B, T, D).  Fused Linear->ReLU->Linear (+bias) on TPU."""
    B, T, D = x.shape
    H = w1.shape[1]
    M = B * T

    # MXU-aligned row tile; never larger than the (8-aligned) problem itself.
    tm = max(8, min(tm, _round_up(M, 8)))
    Mp = _round_up(M, tm)
    grid_m = Mp // tm

    cdt_bytes = jnp.dtype(compute_dtype).itemsize
    out_bytes = jnp.dtype(x.dtype).itemsize

    # Cast activations / weights to the bf16 compute dtype; keep biases f32.
    x2 = x.reshape(M, D).astype(compute_dtype)
    if Mp != M:
        x2 = jnp.pad(x2, ((0, Mp - M), (0, 0)))
    w1c = w1.astype(compute_dtype)
    w2c = w2.astype(compute_dtype)
    b1c = b1.astype(jnp.float32)
    b2c = b2.astype(jnp.float32)

    # Explicit VMEM budget: double-buffered x/out tiles, (conservatively)
    # double-buffered resident weights, biases, plus the (tm, H) f32 hidden
    # activation.  Clamp to 64 MiB so the limit is valid on v7x as well.
    vmem_needed = (
        2 * tm * D * cdt_bytes        # x tile, double-buffered
        + 2 * tm * D * out_bytes      # out tile, double-buffered
        + 2 * (D * H + H * D) * cdt_bytes   # W1 + W2 (x2 buffers)
        + 2 * (H + D) * 4             # biases
        + tm * H * 4                  # hidden activation (f32)
        + tm * H * cdt_bytes          # bf16 copy of hidden activation
    )
    vmem_limit = min(max(int(vmem_needed * 1.5) + (4 << 20), 32 << 20), 64 << 20)

    cost = pl.CostEstimate(
        flops=4 * M * D * H,                 # two matmuls: 2*M*D*H each
        transcendentals=0,
        bytes_accessed=(M * D * cdt_bytes            # x
                        + (D * H + H * D) * cdt_bytes  # W1, W2
                        + (H + D) * 4                  # biases
                        + M * D * out_bytes))          # out

    out = pl.pallas_call(
        ffn_kernel,
        out_shape=jax.ShapeDtypeStruct((Mp, D), x.dtype),
        grid_spec=pltpu.PrefetchScalarGridSpec(
            num_scalar_prefetch=0,
            grid=(grid_m,),
            in_specs=[
                pl.BlockSpec((tm, D), lambda i: (i, 0)),   # x tile (streams)
                pl.BlockSpec((D, H), lambda i: (0, 0)),    # W1 (resident)
                pl.BlockSpec((1, H), lambda i: (0, 0)),    # b1
                pl.BlockSpec((H, D), lambda i: (0, 0)),    # W2 (resident)
                pl.BlockSpec((1, D), lambda i: (0, 0)),    # b2
            ],
            out_specs=pl.BlockSpec((tm, D), lambda i: (i, 0)),
        ),
        compiler_params=pltpu.CompilerParams(
            dimension_semantics=("parallel",),
            vmem_limit_bytes=vmem_limit),
        cost_estimate=cost,
    )(x2, w1c, b1c, w2c, b2c)

    if Mp != M:
        out = out[:M]
    return out.reshape(B, T, D)


def init_params(key, n_embd):
    """Deterministic init mirroring nn.Linear default (U(-1/sqrt(fan_in), +))."""
    hidden = 4 * n_embd
    k1, k2, k3, k4 = jax.random.split(key, 4)
    bound1 = 1.0 / math.sqrt(n_embd)
    bound2 = 1.0 / math.sqrt(hidden)
    # stored as (in, out) so the kernel does x @ W
    w1 = jax.random.uniform(k1, (n_embd, hidden), jnp.float32, -bound1, bound1)
    b1 = jax.random.uniform(k2, (1, hidden), jnp.float32, -bound1, bound1)
    w2 = jax.random.uniform(k3, (hidden, n_embd), jnp.float32, -bound2, bound2)
    b2 = jax.random.uniform(k4, (1, n_embd), jnp.float32, -bound2, bound2)
    return w1, b1, w2, b2


if __name__ == "__main__":
    # Small shapes consistent with the module: (batch, seq, n_embd) with n_embd=384.
    B, T, n_embd = 2, 16, 384
    key = jax.random.PRNGKey(0)
    kx, kp = jax.random.split(key)
    x = jax.random.normal(kx, (B, T, n_embd), jnp.float32)
    w1, b1, w2, b2 = init_params(kp, n_embd)

    y = feedforward(x, w1, b1, w2, b2)
    y = jax.block_until_ready(y)
    assert y.shape == (B, T, n_embd)

    # Reference using the same bf16-input / f32-accumulation recipe
    # (eval-mode dropout = identity).
    xb = x.reshape(-1, n_embd).astype(jnp.bfloat16)
    w1b = w1.astype(jnp.bfloat16)
    w2b = w2.astype(jnp.bfloat16)
    h = jnp.maximum(jnp.dot(xb, w1b, preferred_element_type=jnp.float32) + b1, 0.0)
    ref = jnp.dot(h.astype(jnp.bfloat16), w2b,
                  preferred_element_type=jnp.float32) + b2
    ref = ref.reshape(B, T, n_embd)
    assert jnp.allclose(y, ref, atol=2e-2, rtol=2e-2), float(jnp.max(jnp.abs(y - ref)))

    # Loose sanity check against the pure-f32 math as well.
    ref32 = (jnp.maximum(x.reshape(-1, n_embd) @ w1 + b1, 0.0) @ w2 + b2)
    ref32 = ref32.reshape(B, T, n_embd)
    assert jnp.allclose(y, ref32, atol=1e-1, rtol=1e-1)

    print("KERNEL_OK")
</pallas_src>

<mosaic_0001>
module attributes {stable_mosaic.version = 11 : i64} {
  func.func @ffn_kernel(%arg0: i32, %arg1: memref<32x384xbf16, #tpu.memory_space<vmem>>, %arg2: memref<384x1536xbf16, #tpu.memory_space<vmem>>, %arg3: memref<1x1536xf32, #tpu.memory_space<vmem>>, %arg4: memref<1536x384xbf16, #tpu.memory_space<vmem>>, %arg5: memref<1x384xf32, #tpu.memory_space<vmem>>, %arg6: memref<32x384xf32, #tpu.memory_space<vmem>>) attributes {dimension_semantics = [#tpu.dimension_semantics<parallel>], iteration_bounds = array<i64: 1>, scalar_prefetch = 0 : i64, scratch_operands = 0 : i64, tpu.core_type = #tpu.core_type<tc>, window_params = [{transform_indices = @transform_0, window_bounds = array<i64: 32, 384>}, {pipeline_mode = #tpu.pipeline_mode<synchronous>, transform_indices = @transform_1, window_bounds = array<i64: 384, 1536>}, {pipeline_mode = #tpu.pipeline_mode<synchronous>, transform_indices = @transform_2, window_bounds = array<i64: 1, 1536>}, {pipeline_mode = #tpu.pipeline_mode<synchronous>, transform_indices = @transform_3, window_bounds = array<i64: 1536, 384>}, {pipeline_mode = #tpu.pipeline_mode<synchronous>, transform_indices = @transform_4, window_bounds = array<i64: 1, 384>}, {transform_indices = @transform_5, window_bounds = array<i64: 32, 384>}]} {
    %c0 = arith.constant 0 : index
    %c0_0 = arith.constant 0 : index
    %0 = vector.load %arg1[%c0, %c0_0] : memref<32x384xbf16, #tpu.memory_space<vmem>>, vector<32x384xbf16>
    %c0_1 = arith.constant 0 : index
    %c0_2 = arith.constant 0 : index
    %1 = vector.load %arg2[%c0_1, %c0_2] : memref<384x1536xbf16, #tpu.memory_space<vmem>>, vector<384x1536xbf16>
    %cst = arith.constant dense<0.000000e+00> : vector<32x1536xf32>
    %2 = tpu.matmul %0, %1, %cst {dimension_numbers = #tpu.dot_dimension_numbers<[1], [0], [0], [1], [0, 0, 1, 1], [], []>} : vector<32x384xbf16>, vector<384x1536xbf16>, vector<32x1536xf32> -> vector<32x1536xf32>
    %c0_3 = arith.constant 0 : index
    %c0_4 = arith.constant 0 : index
    %3 = vector.load %arg3[%c0_3, %c0_4] : memref<1x1536xf32, #tpu.memory_space<vmem>>, vector<1x1536xf32>
    %4 = vector.broadcast %3 : vector<1x1536xf32> to vector<32x1536xf32>
    %5 = arith.addf %2, %4 : vector<32x1536xf32>
    %cst_5 = arith.constant 0.000000e+00 : f32
    %6 = vector.broadcast %cst_5 : f32 to vector<32x1536xf32>
    %7 = arith.maximumf %5, %6 : vector<32x1536xf32>
    %8 = arith.truncf %7 : vector<32x1536xf32> to vector<32x1536xbf16>
    %c0_6 = arith.constant 0 : index
    %c0_7 = arith.constant 0 : index
    %9 = vector.load %arg4[%c0_6, %c0_7] : memref<1536x384xbf16, #tpu.memory_space<vmem>>, vector<1536x384xbf16>
    %cst_8 = arith.constant dense<0.000000e+00> : vector<32x384xf32>
    %10 = tpu.matmul %8, %9, %cst_8 {dimension_numbers = #tpu.dot_dimension_numbers<[1], [0], [0], [1], [0, 0, 1, 1], [], []>} : vector<32x1536xbf16>, vector<1536x384xbf16>, vector<32x384xf32> -> vector<32x384xf32>
    %c0_9 = arith.constant 0 : index
    %c0_10 = arith.constant 0 : index
    %11 = vector.load %arg5[%c0_9, %c0_10] : memref<1x384xf32, #tpu.memory_space<vmem>>, vector<1x384xf32>
    %12 = vector.broadcast %11 : vector<1x384xf32> to vector<32x384xf32>
    %13 = arith.addf %10, %12 : vector<32x384xf32>
    %c0_11 = arith.constant 0 : index
    %c0_12 = arith.constant 0 : index
    %14 = vector.load %arg6[%c0_11, %c0_12] : memref<32x384xf32, #tpu.memory_space<vmem>>, vector<32x384xf32>
    tpu.vector_store %arg6[%c0_11, %c0_12], %13 {strides = array<i32>} : memref<32x384xf32, #tpu.memory_space<vmem>>, vector<32x384xf32>,
    return
  }
  func.func @transform_0(%arg0: i32) -> (i32, i32) {
    %c0_i32 = arith.constant 0 : i32
    %c0_i32_0 = arith.constant 0 : i32
    return %arg0, %c0_i32 : i32, i32
  }
  func.func @transform_1(%arg0: i32) -> (i32, i32) {
    %c0_i32 = arith.constant 0 : i32
    %c0_i32_0 = arith.constant 0 : i32
    %c0_i32_1 = arith.constant 0 : i32
    return %c0_i32, %c0_i32_0 : i32, i32
  }
  func.func @transform_2(%arg0: i32) -> (i32, i32) {
    %c0_i32 = arith.constant 0 : i32
    %c0_i32_0 = arith.constant 0 : i32
    %c0_i32_1 = arith.constant 0 : i32
    return %c0_i32, %c0_i32_0 : i32, i32
  }
  func.func @transform_3(%arg0: i32) -> (i32, i32) {
    %c0_i32 = arith.constant 0 : i32
    %c0_i32_0 = arith.constant 0 : i32
    %c0_i32_1 = arith.constant 0 : i32
    return %c0_i32, %c0_i32_0 : i32, i32
  }
  func.func @transform_4(%arg0: i32) -> (i32, i32) {
    %c0_i32 = arith.constant 0 : i32
    %c0_i32_0 = arith.constant 0 : i32
    %c0_i32_1 = arith.constant 0 : i32
    return %c0_i32, %c0_i32_0 : i32, i32
  }
  func.func @transform_5(%arg0: i32) -> (i32, i32) {
    %c0_i32 = arith.constant 0 : i32
    %c0_i32_0 = arith.constant 0 : i32
    return %arg0, %c0_i32 : i32, i32
  }
}

</mosaic_0001>

<bundles_post_ra>
// kernel: tpu_custom_call.1
= control target key start
LH: loop header
LB: loop body
LE: loop exit
PB: predicated region body
PF: predicated region fallthrough
CT: control target
= control target key end

     0   :  { %10 = vsyncpa [#allocation3], 0  ;;  %s9056_s0 = inlined_call_operand.hbm [shape: bf16[32,384], index: 0, kind: input, shape index: {}]   ;;  %s9057_s1 = inlined_call_operand.hbm [shape: bf16[384,1536], index: 1, kind: input, shape index: {}]   ;;  %s9058_s2 = inlined_call_operand.hbm [shape: f32[1,1536], index: 2, kind: input, shape index: {}]   ;;  %s9059_s3 = inlined_call_operand.hbm [shape: bf16[1536,384], index: 3, kind: input, shape index: {}]   ;;  %s9060_s4 = inlined_call_operand.hbm [shape: f32[1,384], index: 4, kind: input, shape index: {}]   ;;  %s9061_s5 = inlined_call_operand.hbm [shape: f32[32,384], index: 5, kind: output, shape index: {}]  }
   0x1   :  { %11 = vsyncpa [#allocation6], 0 }
   0x2   :  { %12 = vsyncpa [#allocation9], 0  ;;  %s31_s20 = sshll.u32 %s9057_s1, 4  ;;  %s32_s20 = int_to_ptr.hbm [resolvable:$true] %s31_s20 }
   0x3   :  { %13 = vsyncpa [#allocation4], 0  ;;  %s8367_s21 = smov [#allocation5]   ;;  %s8368_s23 = smov 768  }
   0x4   :  { %s33_s22 = sshll.u32 %s8367_s21, 4  ;;  %s8369_s24 = smov 48   ;;  %s34_s22 = int_to_ptr.vmem [resolvable:$true] %s33_s22 }
   0x5   :  { %39 = dma.hbm_to_vmem [thread:$0]  %s32_s20, 36864, %s34_s22, [#allocation6], %s8368_s23, %s8368_s23, %s8369_s24  }
   0x6   :  { %s55_s27 = sshll.u32 %s9059_s3, 4  ;;  %s8370_s28 = smov [#allocation8]   ;;  %s56_s27 = int_to_ptr.hbm [resolvable:$true] %s55_s27 }
   0x7   :  { %s57_s29 = sshll.u32 %s8370_s28, 4  ;;  %s18_s7 = sshll.u32 %s9056_s0, 4  ;;  %s58_s29 = int_to_ptr.vmem [resolvable:$true] %s57_s29  ;;  %s19_s7 = int_to_ptr.hbm [resolvable:$true] %s18_s7 }
   0x8   :  { %s8371_s1 = smov 192   ;;  %s8372_s8 = smov 12  }
   0x9   :  { %63 = dma.hbm_to_vmem [thread:$0]  %s56_s27, 36864, %s58_s29, [#allocation9], %s8371_s1, %s8371_s1, %s8372_s8  }
   0xa   :  { %s45_s11 = sshll.u32 %s9058_s2, 4  ;;  %s8373_s12 = smov [#allocation2]   ;;  %s46_s11 = int_to_ptr.hbm [resolvable:$true] %s45_s11 }
   0xb   :  { %s20_s13 = sshll.u32 %s8373_s12, 4  ;;  %s8374_s3 = smov [#allocation7]   ;;  %s21_s13 = int_to_ptr.vmem [resolvable:$true] %s20_s13 }
   0xc   :  { %26 = dma.hbm_to_vmem [thread:$0]  %s19_s7, 768, %s21_s13, [#allocation3], %s8371_s1, %s8371_s1, %s8372_s8  }
   0xd   :  { %s47_s14 = sshll.u32 %s8374_s3, 4  ;;  %s69_s0 = sshll.u32 %s9060_s4, 4  ;;  %s48_s14 = int_to_ptr.vmem [resolvable:$true] %s47_s14  ;;  %s70_s0 = int_to_ptr.hbm [resolvable:$true] %s69_s0 }
   0xe   :  { %50 = dma.hbm_to_vmem [thread:$0]  %s46_s11, 192, %s48_s14, [#allocation6]  }
   0xf   :  { %s8375_s17 = smov [#allocation10]  }
  0x10   :  { %s71_s18 = sshll.u32 %s8375_s17, 4  ;;  %s72_s18 = int_to_ptr.vmem [resolvable:$true] %s71_s18 }
  0x11   :  { %74 = dma.hbm_to_vmem [thread:$0]  %s70_s0, 48, %s72_s18, [#allocation9]  }
  0x12   :  { %8359 = dma.done.wait [#allocation3], 768  }
  0x13   :  { %8360 = vsyncadd [#allocation3], 4294966528 }
  0x14   :  { %8361 = dma.done.wait [#allocation6], 37056  }
  0x15   :  { %8362 = vsyncadd [#allocation6], 4294930240 }
  0x16   :  { %8363 = dma.done.wait [#allocation9], 36912  }
  0x17   :  { %8364 = vsyncadd [#allocation9], 4294930384  ;;  %v5654_v0 = vld [vmem:[#allocation5 + $0x2a0] sm:$0xf]  ;;  %v7716_v1 = vld [vmem:[#allocation5 + $0x2cc] sm:$0xf0] }
  0x18   :  { %v6038_v2 = vld [vmem:[#allocation5 + $0x5a0] sm:$0xf]  ;;  %v5655_v3 = vor.u32 %v7716_v1, %v5654_v0  ;;  %v7812_v4 = vld [vmem:[#allocation5 + $0x5cc] sm:$0xf0]  ;;  %v7710_v9 = vld [vmem:[#allocation5 + $0x2a4] sm:$0xf] }
  0x19   :  { %v6422_v5 = vld [vmem:[#allocation5 + $0x8a0] sm:$0xf]  ;;  %v7908_v6 = vld [vmem:[#allocation5 + $0x8cc] sm:$0xf0]  ;;  %v6039_v7 = vor.u32 %v7812_v4, %v6038_v2  ;;  %v5656_v10 = vld [vmem:[#allocation5 + $0x2d0] sm:$0xf0] }
  0x1a   :  { %v6423_v8 = vor.u32 %v7908_v6, %v6422_v5  ;;  %v5606_v11 = vld [vmem:[#allocation5 + $0x240] sm:$0xf]  ;;  %1891 = vmatpush.bf16.msra.mxu0 %v5655_v3  ;;  %v5659_v12 = vor.u32 %v7710_v9, %v5656_v10  ;;  %v7704_v13 = vld [vmem:[#allocation5 + $0x26c] sm:$0xf0]  ;;  %v7698_v20 = vld [vmem:[#allocation5 + $0x244] sm:$0xf] }
  0x1b   :  { %v5990_v14 = vld [vmem:[#allocation5 + $0x540] sm:$0xf]  ;;  %v7800_v15 = vld [vmem:[#allocation5 + $0x56c] sm:$0xf0]  ;;  %1910 = vmatpush.bf16.msra.mxu1 %v6039_v7  ;;  %v5607_v16 = vor.u32 %v7704_v13, %v5606_v11  ;;  %v5608_v22 = vld [vmem:[#allocation5 + $0x270] sm:$0xf0] }
  0x1c   :  { %1929 = vmatpush.bf16.msra.mxu2 %v6423_v8  ;;  %v5991_v17 = vor.u32 %v7800_v15, %v5990_v14  ;;  %v6374_v18 = vld [vmem:[#allocation5 + $0x840] sm:$0xf]  ;;  %v7896_v19 = vld [vmem:[#allocation5 + $0x86c] sm:$0xf0]  ;;  %1948 = vmatpush.bf16.msra.mxu3 %v5659_v12  ;;  %v5611_v25 = vor.u32 %v7698_v20, %v5608_v22  ;;  %v7686_v31 = vld [vmem:[#allocation5 + $0x1e4] sm:$0xf] }
  0x1d   :  { %v6375_v21 = vor.u32 %v7896_v19, %v6374_v18  ;;  %v5558_v23 = vld [vmem:[#allocation5 + $0x1e0] sm:$0xf]  ;;  %v7692_v24 = vld [vmem:[#allocation5 + $0x20c] sm:$0xf0]  ;;  %v5560_v32 = vld [vmem:[#allocation5 + $0x210] sm:$0xf0] }
  0x1e   :  { %v5942_v26 = vld [vmem:[#allocation5 + $0x4e0] sm:$0xf]  ;;  %v7788_v27 = vld [vmem:[#allocation5 + $0x50c] sm:$0xf0]  ;;  %1892 = vmatpush.bf16.msra.mxu0 %v5607_v16  ;;  %v5559_v29 = vor.u32 %v7692_v24, %v5558_v23  ;;  %v5563_v38 = vor.u32 %v7686_v31, %v5560_v32  ;;  %v7674_v42 = vld [vmem:[#allocation5 + $0x184] sm:$0xf] }
  0x1f   :  { %v6326_v28 = vld [vmem:[#allocation5 + $0x7e0] sm:$0xf]  ;;  %v7884_v30 = vld [vmem:[#allocation5 + $0x80c] sm:$0xf0]  ;;  %1911 = vmatpush.bf16.msra.mxu1 %v5991_v17  ;;  %v5943_v33 = vor.u32 %v7788_v27, %v5942_v26  ;;  %v5512_v43 = vld [vmem:[#allocation5 + $0x1b0] sm:$0xf0] }
  0x20   :  { %1930 = vmatpush.bf16.msra.mxu2 %v6375_v21  ;;  %v6327_v34 = vor.u32 %v7884_v30, %v6326_v28  ;;  %v5510_v35 = vld [vmem:[#allocation5 + $0x180] sm:$0xf]  ;;  %v7680_v36 = vld [vmem:[#allocation5 + $0x1ac] sm:$0xf0]  ;;  %1949 = vmatpush.bf16.msra.mxu3 %v5611_v25  ;;  %v5515_v50 = vor.u32 %v7674_v42, %v5512_v43  ;;  %v7662_v54 = vld [vmem:[#allocation5 + $0x124] sm:$0xf] }
  0x21   :  { %v5894_v37 = vld [vmem:[#allocation5 + $0x480] sm:$0xf]  ;;  %v7776_v39 = vld [vmem:[#allocation5 + $0x4ac] sm:$0xf0]  ;;  %v5511_v44 = vor.u32 %v7680_v36, %v5510_v35  ;;  %v5464_v55 = vld [vmem:[#allocation5 + $0x150] sm:$0xf0] }
  0x22   :  { %v6278_v40 = vld [vmem:[#allocation5 + $0x780] sm:$0xf]  ;;  %v7872_v41 = vld [vmem:[#allocation5 + $0x7ac] sm:$0xf0]  ;;  %1893 = vmatpush.bf16.msra.mxu0 %v5559_v29  ;;  %v5895_v45 = vor.u32 %v7776_v39, %v5894_v37  ;;  %v5467_v62 = vor.u32 %v7662_v54, %v5464_v55  ;;  %v7650_v2 = vld [vmem:[#allocation5 + $0xc4] sm:$0xf] }
  0x23   :  { %1912 = vmatpush.bf16.msra.mxu1 %v5943_v33  ;;  %v6279_v46 = vor.u32 %v7872_v41, %v6278_v40  ;;  %v5462_v47 = vld [vmem:[#allocation5 + $0x120] sm:$0xf]  ;;  %v7668_v48 = vld [vmem:[#allocation5 + $0x14c] sm:$0xf0]  ;;  %v5416_v3 = vld [vmem:[#allocation5 + $0xf0] sm:$0xf0] }
  0x24   :  { %1931 = vmatpush.bf16.msra.mxu2 %v6327_v34  ;;  %v5846_v49 = vld [vmem:[#allocation5 + $0x420] sm:$0xf]  ;;  %1950 = vmatpush.bf16.msra.mxu3 %v5563_v38  ;;  %v7764_v51 = vld [vmem:[#allocation5 + $0x44c] sm:$0xf0]  ;;  %v5463_v56 = vor.u32 %v7668_v48, %v5462_v47  ;;  %v5419_v10 = vor.u32 %v7650_v2, %v5416_v3  ;;  %v7638_v14 = vld [vmem:[#allocation5 + $0x64] sm:$0xf] }
  0x25   :  { %v6230_v52 = vld [vmem:[#allocation5 + $0x720] sm:$0xf]  ;;  %v7860_v53 = vld [vmem:[#allocation5 + $0x74c] sm:$0xf0]  ;;  %v5847_v57 = vor.u32 %v7764_v51, %v5846_v49  ;;  %v5368_v15 = vld [vmem:[#allocation5 + $0x90] sm:$0xf0] }
  0x26   :  { %1894 = vmatpush.bf16.msra.mxu0 %v5511_v44  ;;  %v6231_v58 = vor.u32 %v7860_v53, %v6230_v52  ;;  %v5414_v59 = vld [vmem:[#allocation5 + $0xc0] sm:$0xf]  ;;  %v7656_v60 = vld [vmem:[#allocation5 + $0xec] sm:$0xf0]  ;;  %v5371_v25 = vor.u32 %v7638_v14, %v5368_v15  ;;  %v7626_v26 = vld [vmem:[#allocation5 + $0x4] sm:$0xf] }
  0x27   :  { %1913 = vmatpush.bf16.msra.mxu1 %v5895_v45  ;;  %v5798_v61 = vld [vmem:[#allocation5 + $0x3c0] sm:$0xf]  ;;  %v7752_v63 = vld [vmem:[#allocation5 + $0x3ec] sm:$0xf0]  ;;  %v5415_v4 = vor.u32 %v7656_v60, %v5414_v59  ;;  %v5320_v27 = vld [vmem:[#allocation5 + $0x30] sm:$0xf0] }
  0x28   :  { %1932 = vmatpush.bf16.msra.mxu2 %v6279_v46  ;;  %1951 = vmatpush.bf16.msra.mxu3 %v5515_v50  ;;  %v6182_v0 = vld [vmem:[#allocation5 + $0x6c0] sm:$0xf]  ;;  %v7848_v1 = vld [vmem:[#allocation5 + $0x6ec] sm:$0xf0]  ;;  %v5799_v5 = vor.u32 %v7752_v63, %v5798_v61  ;;  %v7621_v29 = vld [vmem:[#allocation2 + $0x8] sm:$0xf0]  ;;  %v5323_v41 = vor.u32 %v7626_v26, %v5320_v27 }
  0x29   :  { %v6183_v6 = vor.u32 %v7848_v1, %v6182_v0  ;;  %v5366_v7 = vld [vmem:[#allocation5 + $0x60] sm:$0xf]  ;;  %v7644_v8 = vld [vmem:[#allocation5 + $0x8c] sm:$0xf0]  ;;  %v5662_v30 = vld [vmem:[#allocation5 + $0x2a8] sm:$0xf] }
  0x2a   :  { %1895 = vmatpush.bf16.msra.mxu0 %v5463_v56  ;;  %v5750_v9 = vld [vmem:[#allocation5 + $0x360] sm:$0xf]  ;;  %v7740_v11 = vld [vmem:[#allocation5 + $0x38c] sm:$0xf0]  ;;  %v5367_v16 = vor.u32 %v7644_v8, %v5366_v7  ;;  %v7717_v31 = vld [vmem:[#allocation5 + $0x2d4] sm:$0xf0] }
  0x2b   :  { %1914 = vmatpush.bf16.msra.mxu1 %v5847_v57  ;;  %v6134_v12 = vld [vmem:[#allocation5 + $0x660] sm:$0xf]  ;;  %v7836_v13 = vld [vmem:[#allocation5 + $0x68c] sm:$0xf0]  ;;  %v5751_v20 = vor.u32 %v7740_v11, %v5750_v9  ;;  %v7620_v33 = vld [vmem:[#allocation2 + $0x4] sm:$0xf]  ;;  %v5663_v42 = vor.u32 %v7717_v31, %v5662_v30 }
  0x2c   :  { %1933 = vmatpush.bf16.msra.mxu2 %v6231_v58  ;;  %1952 = vmatpush.bf16.msra.mxu3 %v5467_v62  ;;  %v5318_v17 = vld [vmem:[#allocation5] sm:$0xf]  ;;  %v7632_v18 = vld [vmem:[#allocation5 + $0x2c] sm:$0xf0]  ;;  %v6135_v21 = vor.u32 %v7836_v13, %v6134_v12  ;;  %v7902_v34 = vld [vmem:[#allocation5 + $0x8a4] sm:$0xf] }
  0x2d   :  { %v5702_v19 = vld [vmem:[#allocation5 + $0x300] sm:$0xf]  ;;  %v7728_v22 = vld [vmem:[#allocation5 + $0x32c] sm:$0xf0]  ;;  %v5319_v32 = vor.u32 %v7632_v18, %v5318_v17  ;;  %v6424_v35 = vld [vmem:[#allocation5 + $0x8d0] sm:$0xf0] }
  0x2e   :  { %1896 = vmatpush.bf16.msra.mxu0 %v5415_v4  ;;  %v6086_v23 = vld [vmem:[#allocation5 + $0x600] sm:$0xf]  ;;  %v7824_v24 = vld [vmem:[#allocation5 + $0x62c] sm:$0xf0]  ;;  %v5703_v36 = vor.u32 %v7728_v22, %v5702_v19  ;;  %v5302_v39 = vld [vmem:[#allocation2 + $0x8] sm:$0xf]  ;;  %v6427_v47 = vor.u32 %v7902_v34, %v6424_v35 }
  0x2f   :  { %1915 = vmatpush.bf16.msra.mxu1 %v5799_v5  ;;  %v5294_v28 = vld [vmem:[#allocation2] sm:$0xf]  ;;  %v6087_v37 = vor.u32 %v7824_v24, %v6086_v23  ;;  %v5296_v38 = vld [vmem:[#allocation2 + $0xc] sm:$0xf0]  ;;  %v7622_v40 = vld [vmem:[#allocation2 + $0x10] sm:$0xf0] }
  0x30   :  { %1934 = vmatpush.bf16.msra.mxu2 %v6183_v6  ;;  %1953 = vmatpush.bf16.msra.mxu3 %v5419_v10  ;;  %v7806_v43 = vld [vmem:[#allocation5 + $0x5a4] sm:$0xf]  ;;  %v6040_v44 = vld [vmem:[#allocation5 + $0x5d0] sm:$0xf0]  ;;  %v6046_v45 = vld [vmem:[#allocation5 + $0x5a8] sm:$0xf]  ;;  %v8424_v46 = vor.u32 %v7621_v29, %v5294_v28  ;;  %v8426_v51 = vor.u32 %v7620_v33, %v5296_v38  ;;  %v8428_v52 = vor.u32 %v7622_v40, %v5302_v39 }
  0x31   :  { %v7813_v48 = vld [vmem:[#allocation5 + $0x5d4] sm:$0xf0]  ;;  %v5614_v49 = vld [vmem:[#allocation5 + $0x248] sm:$0xf]  ;;  %v7890_v53 = vld [vmem:[#allocation5 + $0x844] sm:$0xf]  ;;  %v6043_v55 = vor.u32 %v7806_v43, %v6040_v44 }
  0x32   :  { %1897 = vmatpush.bf16.msra.mxu0 %v5367_v16  ;;  %v7705_v50 = vld [vmem:[#allocation5 + $0x274] sm:$0xf0]  ;;  %v6376_v54 = vld [vmem:[#allocation5 + $0x870] sm:$0xf0]  ;;  %v6047_v56 = vor.u32 %v7813_v48, %v6046_v45  ;;  %v7794_v58 = vld [vmem:[#allocation5 + $0x544] sm:$0xf] }
  0x33   :  { %1916 = vmatpush.bf16.msra.mxu1 %v5751_v20  ;;  %v5615_v57 = vor.u32 %v7705_v50, %v5614_v49  ;;  %v5992_v59 = vld [vmem:[#allocation5 + $0x570] sm:$0xf0]  ;;  %v5998_v60 = vld [vmem:[#allocation5 + $0x548] sm:$0xf]  ;;  %v6379_v61 = vor.u32 %v7890_v53, %v6376_v54  ;;  %v7801_v62 = vld [vmem:[#allocation5 + $0x574] sm:$0xf0] }
  0x34   :  { %1935 = vmatpush.bf16.msra.mxu2 %v6135_v21  ;;  %1954 = vmatpush.bf16.msra.mxu3 %v5371_v25  ;;  %v5566_v63 = vld [vmem:[#allocation5 + $0x1e8] sm:$0xf]  ;;  %v7693_v0 = vld [vmem:[#allocation5 + $0x214] sm:$0xf0]  ;;  %v7878_v1 = vld [vmem:[#allocation5 + $0x7e4] sm:$0xf]  ;;  %v5995_v3 = vor.u32 %v7794_v58, %v5992_v59  ;;  %v5999_v4 = vor.u32 %v7801_v62, %v5998_v60 }
  0x35   :  { %v6328_v2 = vld [vmem:[#allocation5 + $0x810] sm:$0xf0]  ;;  %v5567_v5 = vor.u32 %v7693_v0, %v5566_v63  ;;  %v7782_v6 = vld [vmem:[#allocation5 + $0x4e4] sm:$0xf]  ;;  %v5950_v8 = vld [vmem:[#allocation5 + $0x4e8] sm:$0xf] }
  0x36   :  { %1898 = vmatpush.bf16.msra.mxu0 %v5319_v32  ;;  %v5944_v7 = vld [vmem:[#allocation5 + $0x510] sm:$0xf0]  ;;  %v6331_v9 = vor.u32 %v7878_v1, %v6328_v2  ;;  %v7789_v10 = vld [vmem:[#allocation5 + $0x514] sm:$0xf0]  ;;  %v5518_v11 = vld [vmem:[#allocation5 + $0x188] sm:$0xf] }
  0x37   :  { %1917 = vmatpush.bf16.msra.mxu1 %v5703_v36  ;;  %v7681_v12 = vld [vmem:[#allocation5 + $0x1b4] sm:$0xf0]  ;;  %v7866_v13 = vld [vmem:[#allocation5 + $0x784] sm:$0xf]  ;;  %v6280_v14 = vld [vmem:[#allocation5 + $0x7b0] sm:$0xf0]  ;;  %v5947_v15 = vor.u32 %v7782_v6, %v5944_v7  ;;  %v5951_v18 = vor.u32 %v7789_v10, %v5950_v8 }
  0x38   :  { %1936 = vmatpush.bf16.msra.mxu2 %v6087_v37  ;;  %1955 = vmatpush.bf16.msra.mxu3 %v5323_v41  ;;  %v7770_v16 = vld [vmem:[#allocation5 + $0x484] sm:$0xf]  ;;  %v5896_v17 = vld [vmem:[#allocation5 + $0x4b0] sm:$0xf0]  ;;  %v5519_v19 = vor.u32 %v7681_v12, %v5518_v11  ;;  %v5902_v20 = vld [vmem:[#allocation5 + $0x488] sm:$0xf]  ;;  %v6283_v23 = vor.u32 %v7866_v13, %v6280_v14 }
  0x39   :  { %1899 = vmatmul.bf16.vlgmr.msra.gmra.mxu0 %v8424_v46  ;;  %v7777_v21 = vld [vmem:[#allocation5 + $0x4b4] sm:$0xf0]  ;;  %v5306_v22 = vld [vmem:[#allocation2 + $0x18] sm:$0xf]  ;;  %v7624_v24 = vld [vmem:[#allocation2 + $0x20] sm:$0xf0]  ;;  %v5899_v30 = vor.u32 %v7770_v16, %v5896_v17 }
  0x3a   :  { %1918 = vmatmul.bf16.vlgmr.msra.gmra.mxu1 %v8426_v51  ;;  %1967 = vmatpush.bf16.msrb.mxu0 %v6043_v55  ;;  %v5470_v25 = vld [vmem:[#allocation5 + $0x128] sm:$0xf]  ;;  %v7669_v26 = vld [vmem:[#allocation5 + $0x154] sm:$0xf0]  ;;  %v7623_v27 = vld [vmem:[#allocation2 + $0x1c] sm:$0xf]  ;;  %v5903_v34 = vor.u32 %v7777_v21, %v5902_v20  ;;  %v8434_v39 = vor.u32 %v7624_v24, %v5306_v22 }
  0x3b   :  { %1986 = vmatpush.bf16.msrb.mxu1 %v6427_v47  ;;  %1937 = vmatmul.bf16.vlgmr.msra.gmra.mxu2 %v8428_v52  ;;  %v7854_v28 = vld [vmem:[#allocation5 + $0x724] sm:$0xf]  ;;  %v6232_v29 = vld [vmem:[#allocation5 + $0x750] sm:$0xf0]  ;;  %v5308_v31 = vld [vmem:[#allocation2 + $0x24] sm:$0xf0]  ;;  %v5471_v35 = vor.u32 %v7669_v26, %v5470_v25 }
  0x3c   :  { %2005 = vmatpush.bf16.msrb.mxu2 %v5663_v42  ;;  %1956 = vmatmul.bf16.vlgmr.msra.gmra.mxu3 %v8424_v46  ;;  %v5314_v32 = vld [vmem:[#allocation2 + $0x20] sm:$0xf]  ;;  %v7625_v33 = vld [vmem:[#allocation2 + $0x28] sm:$0xf0]  ;;  %v7758_v36 = vld [vmem:[#allocation5 + $0x424] sm:$0xf]  ;;  %v6235_v40 = vor.u32 %v7854_v28, %v6232_v29  ;;  %v8436_v44 = vor.u32 %v7623_v27, %v5308_v31 }
  0x3d   :  { %2024 = vmatpush.bf16.msrb.mxu3 %v6047_v56  ;;  %v5848_v37 = vld [vmem:[#allocation5 + $0x450] sm:$0xf0]  ;;  %v5854_v38 = vld [vmem:[#allocation5 + $0x428] sm:$0xf]  ;;  %v7765_v41 = vld [vmem:[#allocation5 + $0x454] sm:$0xf0]  ;;  %v8438_v45 = vor.u32 %v7625_v33, %v5314_v32 }
  0x3e   :  { %1968 = vmatpush.bf16.msrb.mxu0 %v5995_v3  ;;  %v5422_v42 = vld [vmem:[#allocation5 + $0xc8] sm:$0xf]  ;;  %v7657_v43 = vld [vmem:[#allocation5 + $0xf4] sm:$0xf0]  ;;  %v7842_v47 = vld [vmem:[#allocation5 + $0x6c4] sm:$0xf]  ;;  %v5851_v49 = vor.u32 %v7758_v36, %v5848_v37  ;;  %v5855_v50 = vor.u32 %v7765_v41, %v5854_v38 }
  0x3f   :  { %1987 = vmatpush.bf16.msrb.mxu1 %v6379_v61  ;;  %v6184_v48 = vld [vmem:[#allocation5 + $0x6f0] sm:$0xf0]  ;;  %v5423_v53 = vor.u32 %v7657_v43, %v5422_v42  ;;  %v7746_v54 = vld [vmem:[#allocation5 + $0x3c4] sm:$0xf]  ;;  %v5806_v56 = vld [vmem:[#allocation5 + $0x3c8] sm:$0xf] }
  0x40   :  { %2006 = vmatpush.bf16.msrb.mxu2 %v5615_v57  ;;  %v5800_v55 = vld [vmem:[#allocation5 + $0x3f0] sm:$0xf0]  ;;  %v6187_v57 = vor.u32 %v7842_v47, %v6184_v48  ;;  %v7753_v58 = vld [vmem:[#allocation5 + $0x3f4] sm:$0xf0]  ;;  %v5374_v59 = vld [vmem:[#allocation5 + $0x68] sm:$0xf] }
  0x41   :  { %2025 = vmatpush.bf16.msrb.mxu3 %v5999_v4  ;;  %v7645_v60 = vld [vmem:[#allocation5 + $0x94] sm:$0xf0]  ;;  %v7830_v61 = vld [vmem:[#allocation5 + $0x664] sm:$0xf]  ;;  %v6136_v62 = vld [vmem:[#allocation5 + $0x690] sm:$0xf0]  ;;  %v5803_v63 = vor.u32 %v7746_v54, %v5800_v55  ;;  %v5807_v1 = vor.u32 %v7753_v58, %v5806_v56 }
  0x42   :  { %1969 = vmatpush.bf16.msrb.mxu0 %v5947_v15  ;;  %v7734_v0 = vld [vmem:[#allocation5 + $0x364] sm:$0xf]  ;;  %v5375_v2 = vor.u32 %v7645_v60, %v5374_v59  ;;  %v5752_v3 = vld [vmem:[#allocation5 + $0x390] sm:$0xf0]  ;;  %v5758_v4 = vld [vmem:[#allocation5 + $0x368] sm:$0xf]  ;;  %v6139_v6 = vor.u32 %v7830_v61, %v6136_v62 }
  0x43   :  { %1988 = vmatpush.bf16.msrb.mxu1 %v6331_v9  ;;  %v5326_v7 = vld [vmem:[#allocation5 + $0x8] sm:$0xf]  ;;  %v7633_v8 = vld [vmem:[#allocation5 + $0x34] sm:$0xf0]  ;;  %v7818_v9 = vld [vmem:[#allocation5 + $0x604] sm:$0xf]  ;;  %v5755_v13 = vor.u32 %v7734_v0, %v5752_v3 }
  0x44   :  { %2007 = vmatpush.bf16.msrb.mxu2 %v5567_v5  ;;  %v7741_v5 = vld [vmem:[#allocation5 + $0x394] sm:$0xf0]  ;;  %v6088_v10 = vld [vmem:[#allocation5 + $0x630] sm:$0xf0]  ;;  %v7807_v11 = vld [vmem:[#allocation5 + $0x5ac] sm:$0xf] }
  0x45   :  { %2026 = vmatpush.bf16.msrb.mxu3 %v5951_v18  ;;  %v6048_v12 = vld [vmem:[#allocation5 + $0x5d8] sm:$0xf0]  ;;  %v7722_v14 = vld [vmem:[#allocation5 + $0x304] sm:$0xf]  ;;  %v7711_v15 = vld [vmem:[#allocation5 + $0x2ac] sm:$0xf]  ;;  %v5759_v17 = vor.u32 %v7741_v5, %v5758_v4  ;;  %v5327_v18 = vor.u32 %v7633_v8, %v5326_v7  ;;  %v6091_v22 = vor.u32 %v7818_v9, %v6088_v10 }
  0x46   :  { %1970 = vmatpush.bf16.msrb.mxu0 %v5899_v30  ;;  %v5664_v16 = vld [vmem:[#allocation5 + $0x2d8] sm:$0xf0]  ;;  %v5710_v20 = vld [vmem:[#allocation5 + $0x308] sm:$0xf]  ;;  %v7729_v21 = vld [vmem:[#allocation5 + $0x334] sm:$0xf0] }
  0x47   :  { %1989 = vmatpush.bf16.msrb.mxu1 %v6283_v23  ;;  %v6051_v23 = vor.u32 %v7807_v11, %v6048_v12  ;;  %v6430_v24 = vld [vmem:[#allocation5 + $0x8a8] sm:$0xf]  ;;  %v7909_v25 = vld [vmem:[#allocation5 + $0x8d4] sm:$0xf0]  ;;  %v7903_v26 = vld [vmem:[#allocation5 + $0x8ac] sm:$0xf]  ;;  %v5667_v27 = vor.u32 %v7711_v15, %v5664_v16  ;;  %v5711_v32 = vor.u32 %v7729_v21, %v5710_v20 }
  0x48   :  { %2008 = vmatpush.bf16.msrb.mxu2 %v5519_v19  ;;  %v5704_v19 = vld [vmem:[#allocation5 + $0x330] sm:$0xf0]  ;;  %v6432_v28 = vld [vmem:[#allocation5 + $0x8d8] sm:$0xf0]  ;;  %v7795_v29 = vld [vmem:[#allocation5 + $0x54c] sm:$0xf]  ;;  %v6431_v33 = vor.u32 %v7909_v25, %v6430_v24 }
  0x49   :  { %2027 = vmatpush.bf16.msrb.mxu3 %v5903_v34  ;;  %1904 = vmatmul.bf16.gmra.mxu0 %v8434_v39  ;;  %v6000_v30 = vld [vmem:[#allocation5 + $0x578] sm:$0xf0]  ;;  %v5707_v31 = vor.u32 %v7722_v14, %v5704_v19  ;;  %v6382_v34 = vld [vmem:[#allocation5 + $0x848] sm:$0xf]  ;;  %v6435_v36 = vor.u32 %v7903_v26, %v6432_v28  ;;  %v7699_v38 = vld [vmem:[#allocation5 + $0x24c] sm:$0xf] }
  0x4a   :  { %1923 = vmatmul.bf16.gmra.mxu1 %v8436_v44  ;;  %1971 = vmatpush.bf16.msrb.mxu0 %v5851_v49  ;;  %v6003_v37 = vor.u32 %v7795_v29, %v6000_v30  ;;  %v7891_v41 = vld [vmem:[#allocation5 + $0x84c] sm:$0xf]  ;;  %v6384_v42 = vld [vmem:[#allocation5 + $0x878] sm:$0xf0]  ;;  %v6286_v0 = vld [vmem:[#allocation5 + $0x788] sm:$0xf] }
  0x4b   :  { %1990 = vmatpush.bf16.msrb.mxu1 %v6235_v40  ;;  %1942 = vmatmul.bf16.gmra.mxu2 %v8438_v45  ;;  %v5616_v40 = vld [vmem:[#allocation5 + $0x278] sm:$0xf0]  ;;  %v7783_v43 = vld [vmem:[#allocation5 + $0x4ec] sm:$0xf]  ;;  %v6387_v54 = vor.u32 %v7891_v41, %v6384_v42  ;;  %v6238_v12 = vld [vmem:[#allocation5 + $0x728] sm:$0xf] }
  0x4c   :  { %2009 = vmatpush.bf16.msrb.mxu2 %v5471_v35  ;;  %1961 = vmatmul.bf16.gmra.mxu3 %v8434_v39  ;;  %v7897_v35 = vld [vmem:[#allocation5 + $0x874] sm:$0xf0]  ;;  %v5952_v47 = vld [vmem:[#allocation5 + $0x518] sm:$0xf0]  ;;  %v5619_v49 = vor.u32 %v7699_v38, %v5616_v40  ;;  %v7687_v56 = vld [vmem:[#allocation5 + $0x1ec] sm:$0xf] }
  0x4d   :  { %2028 = vmatpush.bf16.msrb.mxu3 %v5855_v50  ;;  %v6383_v48 = vor.u32 %v7897_v35, %v6382_v34  ;;  %v6334_v50 = vld [vmem:[#allocation5 + $0x7e8] sm:$0xf]  ;;  %v5955_v55 = vor.u32 %v7783_v43, %v5952_v47  ;;  %v7879_v58 = vld [vmem:[#allocation5 + $0x7ec] sm:$0xf]  ;;  %v6336_v59 = vld [vmem:[#allocation5 + $0x818] sm:$0xf0] }
  0x4e   :  { %1972 = vmatpush.bf16.msrb.mxu0 %v5803_v63  ;;  %v7771_v60 = vld [vmem:[#allocation5 + $0x48c] sm:$0xf]  ;;  %v5904_v61 = vld [vmem:[#allocation5 + $0x4b8] sm:$0xf0]  ;;  %v6190_v24 = vld [vmem:[#allocation5 + $0x6c8] sm:$0xf] }
  0x4f   :  { %1991 = vmatpush.bf16.msrb.mxu1 %v6187_v57  ;;  %v5568_v57 = vld [vmem:[#allocation5 + $0x218] sm:$0xf0]  ;;  %v5907_v3 = vor.u32 %v7771_v60, %v5904_v61  ;;  %v7675_v4 = vld [vmem:[#allocation5 + $0x18c] sm:$0xf]  ;;  %v7849_v25 = vld [vmem:[#allocation5 + $0x6f4] sm:$0xf0] }
  0x50   :  { %2010 = vmatpush.bf16.msrb.mxu2 %v5423_v53  ;;  %v7885_v53 = vld [vmem:[#allocation5 + $0x814] sm:$0xf0]  ;;  %v5571_v63 = vor.u32 %v7687_v56, %v5568_v57  ;;  %v5520_v5 = vld [vmem:[#allocation5 + $0x1b8] sm:$0xf0]  ;;  %v7759_v8 = vld [vmem:[#allocation5 + $0x42c] sm:$0xf]  ;;  %v6191_v34 = vor.u32 %v7849_v25, %v6190_v24 }
  0x51   :  { %2029 = vmatpush.bf16.msrb.mxu3 %v5807_v1  ;;  %v6335_v62 = vor.u32 %v7885_v53, %v6334_v50  ;;  %v7873_v1 = vld [vmem:[#allocation5 + $0x7b4] sm:$0xf0]  ;;  %v6288_v7 = vld [vmem:[#allocation5 + $0x7b8] sm:$0xf0]  ;;  %v5523_v11 = vor.u32 %v7675_v4, %v5520_v5  ;;  %v7663_v16 = vld [vmem:[#allocation5 + $0x12c] sm:$0xf] }
  0x52   :  { %1973 = vmatpush.bf16.msrb.mxu0 %v5755_v13  ;;  %v5856_v9 = vld [vmem:[#allocation5 + $0x458] sm:$0xf0]  ;;  %v6287_v10 = vor.u32 %v7873_v1, %v6286_v0  ;;  %v7861_v13 = vld [vmem:[#allocation5 + $0x754] sm:$0xf0]  ;;  %v7747_v20 = vld [vmem:[#allocation5 + $0x3cc] sm:$0xf] }
  0x53   :  { %1992 = vmatpush.bf16.msrb.mxu1 %v6139_v6  ;;  %v7867_v6 = vld [vmem:[#allocation5 + $0x78c] sm:$0xf]  ;;  %v5859_v15 = vor.u32 %v7759_v8, %v5856_v9  ;;  %v6240_v19 = vld [vmem:[#allocation5 + $0x758] sm:$0xf0]  ;;  %v6438_v50 = vld [vmem:[#allocation5 + $0x8b0] sm:$0xf] }
  0x54   :  { %2011 = vmatpush.bf16.msrb.mxu2 %v5375_v2  ;;  %v6339_v2 = vor.u32 %v7879_v58, %v6336_v59  ;;  %v6291_v14 = vor.u32 %v7867_v6, %v6288_v7  ;;  %v5808_v21 = vld [vmem:[#allocation5 + $0x3f8] sm:$0xf0]  ;;  %v7651_v28 = vld [vmem:[#allocation5 + $0xcc] sm:$0xf]  ;;  %v7910_v53 = vld [vmem:[#allocation5 + $0x8dc] sm:$0xf0] }
  0x55   :  { %2030 = vmatpush.bf16.msrb.mxu3 %v5759_v17  ;;  %v5472_v17 = vld [vmem:[#allocation5 + $0x158] sm:$0xf0]  ;;  %v7843_v30 = vld [vmem:[#allocation5 + $0x6cc] sm:$0xf]  ;;  %v6094_v56 = vld [vmem:[#allocation5 + $0x608] sm:$0xf]  ;;  %v6439_v0 = vor.u32 %v7910_v53, %v6438_v50 }
  0x56   :  { %1974 = vmatpush.bf16.msrb.mxu0 %v5707_v31  ;;  %v5424_v29 = vld [vmem:[#allocation5 + $0xf8] sm:$0xf0]  ;;  %v7639_v41 = vld [vmem:[#allocation5 + $0x6c] sm:$0xf]  ;;  %v7825_v57 = vld [vmem:[#allocation5 + $0x634] sm:$0xf0] }
  0x57   :  { %1993 = vmatpush.bf16.msrb.mxu1 %v6091_v22  ;;  %v6239_v22 = vor.u32 %v7861_v13, %v6238_v12  ;;  %v6192_v31 = vld [vmem:[#allocation5 + $0x6f8] sm:$0xf0]  ;;  %v5427_v35 = vor.u32 %v7651_v28, %v5424_v29  ;;  %v7831_v43 = vld [vmem:[#allocation5 + $0x66c] sm:$0xf]  ;;  %v5670_v1 = vld [vmem:[#allocation5 + $0x2b0] sm:$0xf]  ;;  %v6095_v7 = vor.u32 %v7825_v57, %v6094_v56 }
  0x58   :  { %2012 = vmatpush.bf16.msrb.mxu2 %v5327_v18  ;;  %v7855_v18 = vld [vmem:[#allocation5 + $0x72c] sm:$0xf]  ;;  %v6195_v38 = vor.u32 %v7843_v30, %v6192_v31  ;;  %v5376_v42 = vld [vmem:[#allocation5 + $0x98] sm:$0xf0]  ;;  %v7814_v4 = vld [vmem:[#allocation5 + $0x5dc] sm:$0xf0] }
  0x59   :  { %2031 = vmatpush.bf16.msrb.mxu3 %v5711_v32  ;;  %1975 = vmatmul.bf16.vlgmr.msrb.gmra.mxu0 %v8426_v51  ;;  %v6243_v26 = vor.u32 %v7855_v18, %v6240_v19  ;;  %v7735_v32 = vld [vmem:[#allocation5 + $0x36c] sm:$0xf]  ;;  %v6144_v47 = vld [vmem:[#allocation5 + $0x698] sm:$0xf0]  ;;  %v7712_v5 = vld [vmem:[#allocation5 + $0x2b4] sm:$0xf] }
  0x5a   :  { %2043 = vmatpush.bf16.msra.mxu0 %v6431_v33  ;;  %1994 = vmatmul.bf16.vlgmr.msrb.gmra.mxu1 %v8428_v52  ;;  %v5760_v33 = vld [vmem:[#allocation5 + $0x398] sm:$0xf0]  ;;  %v7627_v58 = vld [vmem:[#allocation5 + $0xc] sm:$0xf]  ;;  %v6147_v59 = vor.u32 %v7831_v43, %v6144_v47  ;;  %v5672_v6 = vld [vmem:[#allocation5 + $0x2e0] sm:$0xf0] }
  0x5b   :  { %2062 = vmatpush.bf16.msra.mxu1 %v5667_v27  ;;  %2013 = vmatmul.bf16.vlgmr.msrb.gmra.mxu2 %v8424_v46  ;;  %v5811_v27 = vor.u32 %v7747_v20, %v5808_v21  ;;  %v5763_v40 = vor.u32 %v7735_v32, %v5760_v33  ;;  %v5328_v61 = vld [vmem:[#allocation5 + $0x38] sm:$0xf0]  ;;  %v6390_v9 = vld [vmem:[#allocation5 + $0x850] sm:$0xf]  ;;  %v7802_v19 = vld [vmem:[#allocation5 + $0x57c] sm:$0xf0] }
  0x5c   :  { %2081 = vmatpush.bf16.msra.mxu2 %v6051_v23  ;;  %2032 = vmatmul.bf16.vlgmr.msrb.gmra.mxu3 %v8426_v51  ;;  %v5475_v23 = vor.u32 %v7663_v16, %v5472_v17  ;;  %v5331_v8 = vor.u32 %v7627_v58, %v5328_v61  ;;  %v7706_v16 = vld [vmem:[#allocation5 + $0x27c] sm:$0xf0]  ;;  %v6006_v18 = vld [vmem:[#allocation5 + $0x550] sm:$0xf]  ;;  %v7700_v21 = vld [vmem:[#allocation5 + $0x254] sm:$0xf] }
  0x5d   :  { %2100 = vmatpush.bf16.msra.mxu3 %v6435_v36  ;;  %v6142_v36 = vld [vmem:[#allocation5 + $0x668] sm:$0xf]  ;;  %v7886_v24 = vld [vmem:[#allocation5 + $0x81c] sm:$0xf0]  ;;  %v5574_v25 = vld [vmem:[#allocation5 + $0x1f0] sm:$0xf] }
  0x5e   :  { %2044 = vmatpush.bf16.msra.mxu0 %v6383_v48  ;;  %v7723_v48 = vld [vmem:[#allocation5 + $0x30c] sm:$0xf]  ;;  %v5958_v29 = vld [vmem:[#allocation5 + $0x4f0] sm:$0xf]  ;;  %v7790_v30 = vld [vmem:[#allocation5 + $0x51c] sm:$0xf0] }
  0x5f   :  { %2063 = vmatpush.bf16.msra.mxu1 %v5619_v49  ;;  %v5712_v49 = vld [vmem:[#allocation5 + $0x338] sm:$0xf0]  ;;  %v7688_v33 = vld [vmem:[#allocation5 + $0x1f4] sm:$0xf]  ;;  %v7778_v43 = vld [vmem:[#allocation5 + $0x4bc] sm:$0xf0] }
  0x60   :  { %2082 = vmatpush.bf16.msra.mxu2 %v6003_v37  ;;  %v7837_v37 = vld [vmem:[#allocation5 + $0x694] sm:$0xf0]  ;;  %v5715_v60 = vor.u32 %v7723_v48, %v5712_v49  ;;  %v7676_v49 = vld [vmem:[#allocation5 + $0x194] sm:$0xf]  ;;  %v5528_v50 = vld [vmem:[#allocation5 + $0x1c0] sm:$0xf0] }
  0x61   :  { %2101 = vmatpush.bf16.msra.mxu3 %v6387_v54  ;;  %v6143_v54 = vor.u32 %v7837_v37, %v6142_v36  ;;  %v7874_v36 = vld [vmem:[#allocation5 + $0x7bc] sm:$0xf0]  ;;  %v5526_v37 = vld [vmem:[#allocation5 + $0x190] sm:$0xf]  ;;  %v5531_v58 = vor.u32 %v7676_v49, %v5528_v50  ;;  %v6062_v49 = vld [vmem:[#allocation5 + $0x5b8] sm:$0xf] }
  0x62   :  { %2045 = vmatpush.bf16.msra.mxu0 %v6335_v62  ;;  %v7819_v62 = vld [vmem:[#allocation5 + $0x60c] sm:$0xf]  ;;  %v6246_v53 = vld [vmem:[#allocation5 + $0x730] sm:$0xf]  ;;  %v7670_v56 = vld [vmem:[#allocation5 + $0x15c] sm:$0xf0] }
  0x63   :  { %2064 = vmatpush.bf16.msra.mxu1 %v5571_v63  ;;  %v6096_v63 = vld [vmem:[#allocation5 + $0x638] sm:$0xf0]  ;;  %v7815_v50 = vld [vmem:[#allocation5 + $0x5e4] sm:$0xf0]  ;;  %s8376_s2 = smov [#allocation11]   ;;  %s5277_s21 = sshll.u32 %s9061_s5, 4  ;;  %s5278_s21 = int_to_ptr.hbm [resolvable:$true] %s5277_s21 }
  0x64   :  { %2083 = vmatpush.bf16.msra.mxu2 %v5955_v55  ;;  %v5379_v55 = vor.u32 %v7639_v41, %v5376_v42  ;;  %v5910_v42 = vld [vmem:[#allocation5 + $0x490] sm:$0xf]  ;;  %s5275_s4 = sshll.u32 %s8376_s2, 4  ;;  %s8377_s22 = smov 384   ;;  %s5276_s4 = int_to_ptr.vmem [resolvable:$true] %s5275_s4 }
  0x65   :  { %2102 = vmatpush.bf16.msra.mxu3 %v6339_v2  ;;  %v7718_v2 = vld [vmem:[#allocation5 + $0x2dc] sm:$0xf0]  ;;  %v5911_v57 = vor.u32 %v7778_v43, %v5910_v42  ;;  %v7904_v42 = vld [vmem:[#allocation5 + $0x8b4] sm:$0xf]  ;;  %v6440_v43 = vld [vmem:[#allocation5 + $0x8e0] sm:$0xf0] }
  0x66   :  { %2046 = vmatpush.bf16.msra.mxu0 %v6287_v10  ;;  %v7898_v10 = vld [vmem:[#allocation5 + $0x87c] sm:$0xf0]  ;;  %v5671_v12 = vor.u32 %v7718_v2, %v5670_v1  ;;  %v6198_v1 = vld [vmem:[#allocation5 + $0x6d0] sm:$0xf]  ;;  %s8378_s23 = smov 24  }
  0x67   :  { %2065 = vmatpush.bf16.msra.mxu1 %v5523_v11  ;;  %v6099_v11 = vor.u32 %v7819_v62, %v6096_v63  ;;  %v6391_v17 = vor.u32 %v7898_v10, %v6390_v9  ;;  %v7664_v63 = vld [vmem:[#allocation5 + $0x134] sm:$0xf]  ;;  %v7850_v2 = vld [vmem:[#allocation5 + $0x6fc] sm:$0xf0] }
  0x68   :  { %2084 = vmatpush.bf16.msra.mxu2 %v5907_v3  ;;  %v6054_v3 = vld [vmem:[#allocation5 + $0x5b0] sm:$0xf]  ;;  %v6199_v9 = vor.u32 %v7850_v2, %v6198_v1  ;;  %v6014_v1 = vld [vmem:[#allocation5 + $0x558] sm:$0xf]  ;;  %v7803_v2 = vld [vmem:[#allocation5 + $0x584] sm:$0xf0] }
  0x69   :  { %2103 = vmatpush.bf16.msra.mxu3 %v6291_v14  ;;  %1980 = vmatmul.bf16.gmra.mxu0 %v8436_v44  ;;  %v6055_v13 = vor.u32 %v7814_v4, %v6054_v3  ;;  %v5675_v14 = vor.u32 %v7712_v5, %v5672_v6  ;;  %v5430_v3 = vld [vmem:[#allocation5 + $0xd0] sm:$0xf]  ;;  %v7658_v4 = vld [vmem:[#allocation5 + $0xfc] sm:$0xf0] }
  0x6a   :  { %2047 = vmatpush.bf16.msra.mxu0 %v6239_v22  ;;  %1999 = vmatmul.bf16.gmra.mxu1 %v8438_v45  ;;  %v5624_v22 = vld [vmem:[#allocation5 + $0x280] sm:$0xf0]  ;;  %v5431_v10 = vor.u32 %v7658_v4, %v5430_v3  ;;  %v5582_v3 = vld [vmem:[#allocation5 + $0x1f8] sm:$0xf]  ;;  %v7695_v4 = vld [vmem:[#allocation5 + $0x224] sm:$0xf0] }
  0x6b   :  { %2066 = vmatpush.bf16.msra.mxu1 %v5475_v23  ;;  %2018 = vmatmul.bf16.gmra.mxu2 %v8434_v39  ;;  %v6342_v23 = vld [vmem:[#allocation5 + $0x7f0] sm:$0xf]  ;;  %v5627_v28 = vor.u32 %v7700_v21, %v5624_v22  ;;  %v7640_v21 = vld [vmem:[#allocation5 + $0x74] sm:$0xf] }
  0x6c   :  { %2085 = vmatpush.bf16.msra.mxu2 %v5859_v15  ;;  %2037 = vmatmul.bf16.gmra.mxu3 %v8436_v44  ;;  %v5622_v15 = vld [vmem:[#allocation5 + $0x250] sm:$0xf]  ;;  %v6343_v31 = vor.u32 %v7886_v24, %v6342_v23  ;;  %v5384_v24 = vld [vmem:[#allocation5 + $0xa0] sm:$0xf0] }
  0x6d   :  { %2104 = vmatpush.bf16.msra.mxu3 %v6243_v26  ;;  %v5623_v20 = vor.u32 %v7706_v16, %v5622_v15  ;;  %v7694_v26 = vld [vmem:[#allocation5 + $0x21c] sm:$0xf0]  ;;  %v5382_v15 = vld [vmem:[#allocation5 + $0x70] sm:$0xf] }
  0x6e   :  { %2048 = vmatpush.bf16.msra.mxu0 %v6191_v34  ;;  %v5575_v32 = vor.u32 %v7694_v26, %v5574_v25  ;;  %v5576_v34 = vld [vmem:[#allocation5 + $0x220] sm:$0xf0]  ;;  %v7646_v16 = vld [vmem:[#allocation5 + $0x9c] sm:$0xf0]  ;;  %v6102_v25 = vld [vmem:[#allocation5 + $0x610] sm:$0xf] }
  0x6f   :  { %2067 = vmatpush.bf16.msra.mxu1 %v5427_v35  ;;  %v6294_v35 = vld [vmem:[#allocation5 + $0x790] sm:$0xf]  ;;  %v5579_v41 = vor.u32 %v7688_v33, %v5576_v34  ;;  %v5383_v23 = vor.u32 %v7646_v16, %v5382_v15  ;;  %v7826_v26 = vld [vmem:[#allocation5 + $0x63c] sm:$0xf0]  ;;  %v5387_v34 = vor.u32 %v7640_v21, %v5384_v24  ;;  %v5534_v15 = vld [vmem:[#allocation5 + $0x198] sm:$0xf] }
  0x70   :  { %2086 = vmatpush.bf16.msra.mxu2 %v5811_v27  ;;  %v6007_v27 = vor.u32 %v7802_v19, %v6006_v18  ;;  %v6295_v47 = vor.u32 %v7874_v36, %v6294_v35  ;;  %v5766_v19 = vld [vmem:[#allocation5 + $0x370] sm:$0xf]  ;;  %v7730_v36 = vld [vmem:[#allocation5 + $0x33c] sm:$0xf0]  ;;  %v7683_v16 = vld [vmem:[#allocation5 + $0x1c4] sm:$0xf0] }
  0x71   :  { %2105 = vmatpush.bf16.msra.mxu3 %v6195_v38  ;;  %v7682_v38 = vld [vmem:[#allocation5 + $0x1bc] sm:$0xf0]  ;;  %v5718_v35 = vld [vmem:[#allocation5 + $0x310] sm:$0xf]  ;;  %v7868_v21 = vld [vmem:[#allocation5 + $0x794] sm:$0xf] }
  0x72   :  { %2049 = vmatpush.bf16.msra.mxu0 %v6143_v54  ;;  %v5527_v48 = vor.u32 %v7682_v38, %v5526_v37  ;;  %v7862_v54 = vld [vmem:[#allocation5 + $0x75c] sm:$0xf0]  ;;  %v7628_v37 = vld [vmem:[#allocation5 + $0x14] sm:$0xf]  ;;  %v6103_v38 = vor.u32 %v7826_v26, %v6102_v25  ;;  %v7779_v24 = vld [vmem:[#allocation5 + $0x4c4] sm:$0xf0]  ;;  %v5535_v25 = vor.u32 %v7683_v16, %v5534_v15 }
  0x73   :  { %2068 = vmatpush.bf16.msra.mxu1 %v5379_v55  ;;  %v5478_v55 = vld [vmem:[#allocation5 + $0x130] sm:$0xf]  ;;  %v6247_v61 = vor.u32 %v7862_v54, %v6246_v53  ;;  %v5630_v53 = vld [vmem:[#allocation5 + $0x258] sm:$0xf]  ;;  %v7707_v54 = vld [vmem:[#allocation5 + $0x284] sm:$0xf0] }
  0x74   :  { %2087 = vmatpush.bf16.msra.mxu2 %v5763_v40  ;;  %v5959_v40 = vor.u32 %v7790_v30, %v5958_v29  ;;  %v5479_v62 = vor.u32 %v7670_v56, %v5478_v55  ;;  %v5678_v29 = vld [vmem:[#allocation5 + $0x2b8] sm:$0xf]  ;;  %v7719_v30 = vld [vmem:[#allocation5 + $0x2e4] sm:$0xf0]  ;;  %v7796_v55 = vld [vmem:[#allocation5 + $0x554] sm:$0xf] }
  0x75   :  { %2106 = vmatpush.bf16.msra.mxu3 %v6147_v59  ;;  %v5862_v59 = vld [vmem:[#allocation5 + $0x430] sm:$0xf]  ;;  %v6008_v56 = vld [vmem:[#allocation5 + $0x580] sm:$0xf0]  ;;  %v7809_v15 = vld [vmem:[#allocation5 + $0x5bc] sm:$0xf] }
  0x76   :  { %2050 = vmatpush.bf16.msra.mxu0 %v6095_v7  ;;  %v5814_v7 = vld [vmem:[#allocation5 + $0x3d0] sm:$0xf]  ;;  %v6064_v16 = vld [vmem:[#allocation5 + $0x5e8] sm:$0xf0] }
  0x77   :  { %2069 = vmatpush.bf16.msra.mxu1 %v5331_v8  ;;  %v7754_v8 = vld [vmem:[#allocation5 + $0x3fc] sm:$0xf0] }
  0x78   :  { %2088 = vmatpush.bf16.msra.mxu2 %v5715_v60  ;;  %v7766_v60 = vld [vmem:[#allocation5 + $0x45c] sm:$0xf0] }
  0x79   :  { %2107 = vmatpush.bf16.msra.mxu3 %v6099_v11  ;;  %2051 = vmatmul.bf16.vlgmr.msra.gmra.mxu0 %v8428_v52  ;;  %v5863_v5 = vor.u32 %v7766_v60, %v5862_v59  ;;  %v7652_v11 = vld [vmem:[#allocation5 + $0xd4] sm:$0xf]  ;;  %v6443_v59 = vor.u32 %v7904_v42, %v6440_v43  ;;  %v6063_v60 = vor.u32 %v7815_v50, %v6062_v49  ;;  %v6200_v50 = vld [vmem:[#allocation5 + $0x700] sm:$0xf0] }
  0x7a   :  { %2119 = vmatpush.bf16.msrb.mxu0 %v5671_v12  ;;  %2070 = vmatmul.bf16.vlgmr.msra.gmra.mxu1 %v8424_v46  ;;  %v5432_v12 = vld [vmem:[#allocation5 + $0x100] sm:$0xf0]  ;;  %v7844_v49 = vld [vmem:[#allocation5 + $0x6d4] sm:$0xf] }
  0x7b   :  { %2138 = vmatpush.bf16.msrb.mxu1 %v6055_v13  ;;  %2089 = vmatmul.bf16.vlgmr.msra.gmra.mxu2 %v8426_v51  ;;  %v6150_v13 = vld [vmem:[#allocation5 + $0x670] sm:$0xf]  ;;  %v5435_v18 = vor.u32 %v7652_v11, %v5432_v12  ;;  %v5966_v11 = vld [vmem:[#allocation5 + $0x4f8] sm:$0xf]  ;;  %v7791_v12 = vld [vmem:[#allocation5 + $0x524] sm:$0xf0] }
  0x7c   :  { %2157 = vmatpush.bf16.msrb.mxu2 %v6439_v0  ;;  %2108 = vmatmul.bf16.vlgmr.msra.gmra.mxu3 %v8428_v52  ;;  %v5480_v0 = vld [vmem:[#allocation5 + $0x160] sm:$0xf0] }
  0x7d   :  { %2176 = vmatpush.bf16.msrb.mxu3 %v5675_v14  ;;  %v5483_v6 = vor.u32 %v7664_v63, %v5480_v0  ;;  %v7838_v14 = vld [vmem:[#allocation5 + $0x69c] sm:$0xf0]  ;;  %v6011_v63 = vor.u32 %v7796_v55, %v6008_v56  ;;  %v6392_v0 = vld [vmem:[#allocation5 + $0x880] sm:$0xf0] }
  0x7e   :  { %2120 = vmatpush.bf16.msrb.mxu0 %v5623_v20  ;;  %v7742_v20 = vld [vmem:[#allocation5 + $0x39c] sm:$0xf0]  ;;  %v6151_v22 = vor.u32 %v7838_v14, %v6150_v13  ;;  %v5583_v13 = vor.u32 %v7695_v4, %v5582_v3  ;;  %v5342_v3 = vld [vmem:[#allocation5 + $0x18] sm:$0xf] }
  0x7f   :  { %2139 = vmatpush.bf16.msrb.mxu1 %v6007_v27  ;;  %v5334_v27 = vld [vmem:[#allocation5 + $0x10] sm:$0xf]  ;;  %v5767_v33 = vor.u32 %v7742_v20, %v5766_v19  ;;  %v7772_v19 = vld [vmem:[#allocation5 + $0x494] sm:$0xf]  ;;  %v5912_v20 = vld [vmem:[#allocation5 + $0x4c0] sm:$0xf0] }
  0x80   :  { %2158 = vmatpush.bf16.msrb.mxu2 %v6391_v17  ;;  %v5815_v17 = vor.u32 %v7754_v8, %v5814_v7  ;;  %v7784_v7 = vld [vmem:[#allocation5 + $0x4f4] sm:$0xf]  ;;  %v5960_v8 = vld [vmem:[#allocation5 + $0x520] sm:$0xf0]  ;;  %v5915_v26 = vor.u32 %v7772_v19, %v5912_v20  ;;  %v7713_v19 = vld [vmem:[#allocation5 + $0x2bc] sm:$0xf] }
  0x81   :  { %2177 = vmatpush.bf16.msrb.mxu3 %v5627_v28  ;;  %v7634_v28 = vld [vmem:[#allocation5 + $0x3c] sm:$0xf0]  ;;  %v5963_v14 = vor.u32 %v7784_v7, %v5960_v8  ;;  %v7724_v7 = vld [vmem:[#allocation5 + $0x314] sm:$0xf]  ;;  %v5720_v8 = vld [vmem:[#allocation5 + $0x340] sm:$0xf0] }
  0x82   :  { %2121 = vmatpush.bf16.msrb.mxu0 %v5575_v32  ;;  %v6056_v32 = vld [vmem:[#allocation5 + $0x5e0] sm:$0xf0] }
  0x83   :  { %2140 = vmatpush.bf16.msrb.mxu1 %v5959_v40  ;;  %v5335_v40 = vor.u32 %v7634_v28, %v5334_v27  ;;  %v5486_v27 = vld [vmem:[#allocation5 + $0x138] sm:$0xf]  ;;  %v7671_v28 = vld [vmem:[#allocation5 + $0x164] sm:$0xf0] }
  0x84   :  { %2159 = vmatpush.bf16.msrb.mxu2 %v6343_v31  ;;  %v7808_v31 = vld [vmem:[#allocation5 + $0x5b4] sm:$0xf] }
  0x85   :  { %2178 = vmatpush.bf16.msrb.mxu3 %v5579_v41  ;;  %v5336_v41 = vld [vmem:[#allocation5 + $0x40] sm:$0xf0] }
  0x86   :  { %2122 = vmatpush.bf16.msrb.mxu0 %v5527_v48  ;;  %v6059_v48 = vor.u32 %v7808_v31, %v6056_v32  ;;  %v7760_v31 = vld [vmem:[#allocation5 + $0x434] sm:$0xf]  ;;  %v5864_v32 = vld [vmem:[#allocation5 + $0x460] sm:$0xf0] }
  0x87   :  { %2141 = vmatpush.bf16.msrb.mxu1 %v5911_v57  ;;  %v5719_v57 = vor.u32 %v7730_v36, %v5718_v35  ;;  %v5870_v35 = vld [vmem:[#allocation5 + $0x438] sm:$0xf]  ;;  %v7767_v36 = vld [vmem:[#allocation5 + $0x464] sm:$0xf0] }
  0x88   :  { %2160 = vmatpush.bf16.msrb.mxu2 %v6295_v47  ;;  %v5679_v47 = vor.u32 %v7719_v30, %v5678_v29  ;;  %v5871_v43 = vor.u32 %v7767_v36, %v5870_v35  ;;  %v7899_v35 = vld [vmem:[#allocation5 + $0x884] sm:$0xf0]  ;;  %v7701_v36 = vld [vmem:[#allocation5 + $0x25c] sm:$0xf] }
  0x89   :  { %2179 = vmatpush.bf16.msrb.mxu3 %v5531_v58  ;;  %2056 = vmatmul.bf16.gmra.mxu0 %v8438_v45  ;;  %v5339_v58 = vor.u32 %v7628_v37, %v5336_v41  ;;  %v5487_v37 = vor.u32 %v7671_v28, %v5486_v27  ;;  %v7659_v41 = vld [vmem:[#allocation5 + $0x104] sm:$0xf0]  ;;  %v8468_v27 = vld [vmem:[#allocation7] sm:$0xff]  ;;  %v6067_v28 = vor.u32 %v7809_v15, %v6064_v16 }
  0x8a   :  { %2123 = vmatpush.bf16.msrb.mxu0 %v5479_v62  ;;  %2075 = vmatmul.bf16.gmra.mxu1 %v8434_v39  ;;  %v5631_v62 = vor.u32 %v7707_v54, %v5630_v53  ;;  %v5822_v53 = vld [vmem:[#allocation5 + $0x3d8] sm:$0xf]  ;;  %v7755_v54 = vld [vmem:[#allocation5 + $0x404] sm:$0xf0] }
  0x8b   :  { %2142 = vmatpush.bf16.msrb.mxu1 %v5863_v5  ;;  %2094 = vmatmul.bf16.gmra.mxu2 %v8436_v44 }
  0x8c   :  { %2161 = vmatpush.bf16.msrb.mxu2 %v6247_v61  ;;  %2113 = vmatmul.bf16.gmra.mxu3 %v8438_v45  ;;  %v7892_v61 = vld [vmem:[#allocation5 + $0x854] sm:$0xf] }
  0x8d   :  { %2180 = vmatpush.bf16.msrb.mxu3 %v5483_v6  ;;  %v6395_v5 = vor.u32 %v7892_v61, %v6392_v0  ;;  %v6015_v6 = vor.u32 %v7803_v2, %v6014_v1  ;;  %v7736_v61 = vld [vmem:[#allocation5 + $0x374] sm:$0xf]  ;;  %v6152_v0 = vld [vmem:[#allocation5 + $0x6a0] sm:$0xf0]  ;;  %v5774_v1 = vld [vmem:[#allocation5 + $0x378] sm:$0xf] }
  0x8e   :  { %2124 = vmatpush.bf16.msrb.mxu0 %v5431_v10  ;;  %v6344_v10 = vld [vmem:[#allocation5 + $0x820] sm:$0xf0]  ;;  %v7743_v2 = vld [vmem:[#allocation5 + $0x3a4] sm:$0xf0] }
  0x8f   :  { %2143 = vmatpush.bf16.msrb.mxu1 %v5815_v17 }
  0x90   :  { %2162 = vmatpush.bf16.msrb.mxu2 %v6199_v9  ;;  %v7880_v9 = vld [vmem:[#allocation5 + $0x7f4] sm:$0xf] }
  0x91   :  { %2181 = vmatpush.bf16.msrb.mxu3 %v5435_v18  ;;  %v6347_v17 = vor.u32 %v7880_v9, %v6344_v10  ;;  %v5967_v18 = vor.u32 %v7791_v12, %v5966_v11  ;;  %v5775_v10 = vor.u32 %v7743_v2, %v5774_v1  ;;  %v7820_v11 = vld [vmem:[#allocation5 + $0x614] sm:$0xf]  ;;  %v6104_v12 = vld [vmem:[#allocation5 + $0x640] sm:$0xf0]  ;;  %v5920_v1 = vld [vmem:[#allocation5 + $0x4c8] sm:$0xf0] }
  0x92   :  { %2125 = vmatpush.bf16.msrb.mxu0 %v5383_v23  ;;  %v5918_v23 = vld [vmem:[#allocation5 + $0x498] sm:$0xf] }
  0x93   :  { %2144 = vmatpush.bf16.msrb.mxu1 %v5767_v33  ;;  %v5919_v30 = vor.u32 %v7779_v24, %v5918_v23  ;;  %v7856_v33 = vld [vmem:[#allocation5 + $0x734] sm:$0xf]  ;;  %v7905_v23 = vld [vmem:[#allocation5 + $0x8bc] sm:$0xf]  ;;  %v6448_v24 = vld [vmem:[#allocation5 + $0x8e8] sm:$0xf0] }
  0x94   :  { %2163 = vmatpush.bf16.msrb.mxu2 %v6151_v22  ;;  %v6296_v22 = vld [vmem:[#allocation5 + $0x7c0] sm:$0xf0] }
  0x95   :  { %2182 = vmatpush.bf16.msrb.mxu3 %v5387_v34  ;;  %v6299_v29 = vor.u32 %v7868_v21, %v6296_v22  ;;  %v6248_v34 = vld [vmem:[#allocation5 + $0x760] sm:$0xf0]  ;;  %v5723_v21 = vor.u32 %v7724_v7, %v5720_v8  ;;  %v5680_v22 = vld [vmem:[#allocation5 + $0x2e8] sm:$0xf0]  ;;  %v7677_v7 = vld [vmem:[#allocation5 + $0x19c] sm:$0xf] }
  0x96   :  { %2126 = vmatpush.bf16.msrb.mxu0 %v5335_v40  ;;  %v5438_v40 = vld [vmem:[#allocation5 + $0xd8] sm:$0xf]  ;;  %v6251_v42 = vor.u32 %v7856_v33, %v6248_v34  ;;  %v6451_v33 = vor.u32 %v7905_v23, %v6448_v24  ;;  %v5536_v8 = vld [vmem:[#allocation5 + $0x1c8] sm:$0xf0] }
  0x97   :  { %2145 = vmatpush.bf16.msrb.mxu1 %v5719_v57  ;;  %v5439_v55 = vor.u32 %v7659_v41, %v5438_v40  ;;  %v5390_v57 = vld [vmem:[#allocation5 + $0x78] sm:$0xf]  ;;  %v6400_v40 = vld [vmem:[#allocation5 + $0x888] sm:$0xf0]  ;;  %v5539_v16 = vor.u32 %v7677_v7, %v5536_v8 }
  0x98   :  { %2164 = vmatpush.bf16.msrb.mxu2 %v6103_v38  ;;  %v5867_v38 = vor.u32 %v7760_v31, %v5864_v32  ;;  %v6016_v31 = vld [vmem:[#allocation5 + $0x588] sm:$0xf0]  ;;  %v5683_v32 = vor.u32 %v7713_v19, %v5680_v22  ;;  %v6398_v34 = vld [vmem:[#allocation5 + $0x858] sm:$0xf]  ;;  %v7863_v19 = vld [vmem:[#allocation5 + $0x764] sm:$0xf0] }
  0x99   :  { %2183 = vmatpush.bf16.msrb.mxu3 %v5339_v58  ;;  %2127 = vmatmul.bf16.vlgmr.msrb.gmra.mxu0 %v8424_v46  ;;  %v7647_v58 = vld [vmem:[#allocation5 + $0xa4] sm:$0xf0]  ;;  %v5488_v24 = vld [vmem:[#allocation5 + $0x168] sm:$0xf0] }
  0x9a   :  { %2195 = vmatpush.bf16.msra.mxu0 %v6059_v48  ;;  %2146 = vmatmul.bf16.vlgmr.msrb.gmra.mxu1 %v8426_v51  ;;  %v5816_v48 = vld [vmem:[#allocation5 + $0x400] sm:$0xf0]  ;;  %v5391_v4 = vor.u32 %v7647_v58, %v5390_v57  ;;  %v5584_v57 = vld [vmem:[#allocation5 + $0x228] sm:$0xf0]  ;;  %v7881_v58 = vld [vmem:[#allocation5 + $0x7fc] sm:$0xf] }
  0x9b   :  { %2214 = vmatpush.bf16.msra.mxu1 %v6443_v59  ;;  %2165 = vmatmul.bf16.vlgmr.msrb.gmra.mxu2 %v8428_v52  ;;  %v6203_v59 = vor.u32 %v7844_v49, %v6200_v50  ;;  %v7785_v49 = vld [vmem:[#allocation5 + $0x4fc] sm:$0xf]  ;;  %v5968_v50 = vld [vmem:[#allocation5 + $0x528] sm:$0xf0] }
  0x9c   :  { %2233 = vmatpush.bf16.msra.mxu2 %v5679_v47  ;;  %2184 = vmatmul.bf16.vlgmr.msrb.gmra.mxu3 %v8424_v46  ;;  %v7748_v47 = vld [vmem:[#allocation5 + $0x3d4] sm:$0xf] }
  0x9d   :  { %2252 = vmatpush.bf16.msra.mxu3 %v6063_v60  ;;  %v5819_v56 = vor.u32 %v7748_v47, %v5816_v48  ;;  %v5823_v60 = vor.u32 %v7755_v54, %v5822_v53  ;;  %v6350_v53 = vld [vmem:[#allocation5 + $0x7f8] sm:$0xf]  ;;  %v7887_v54 = vld [vmem:[#allocation5 + $0x824] sm:$0xf0] }
  0x9e   :  { %2196 = vmatpush.bf16.msra.mxu0 %v6011_v63  ;;  %v7832_v63 = vld [vmem:[#allocation5 + $0x674] sm:$0xf] }
  0x9f   :  { %2215 = vmatpush.bf16.msra.mxu1 %v6395_v5  ;;  %v6155_v9 = vor.u32 %v7832_v63, %v6152_v0  ;;  %v6351_v63 = vor.u32 %v7887_v54, %v6350_v53  ;;  %v7773_v0 = vld [vmem:[#allocation5 + $0x49c] sm:$0xf]  ;;  %v5776_v53 = vld [vmem:[#allocation5 + $0x3a8] sm:$0xf0] }
  0xa0   :  { %2234 = vmatpush.bf16.msra.mxu2 %v5631_v62  ;;  %v5768_v62 = vld [vmem:[#allocation5 + $0x3a0] sm:$0xf0] }
  0xa1   :  { %2253 = vmatpush.bf16.msra.mxu3 %v6015_v6  ;;  %v5771_v5 = vor.u32 %v7736_v61, %v5768_v62  ;;  %v7635_v6 = vld [vmem:[#allocation5 + $0x44] sm:$0xf0]  ;;  %v5971_v62 = vor.u32 %v7785_v49, %v5968_v50  ;;  %v7737_v50 = vld [vmem:[#allocation5 + $0x37c] sm:$0xf] }
  0xa2   :  { %2197 = vmatpush.bf16.msra.mxu0 %v5963_v14  ;;  %v7731_v14 = vld [vmem:[#allocation5 + $0x344] sm:$0xf0]  ;;  %v5343_v20 = vor.u32 %v7635_v6, %v5342_v3  ;;  %v5779_v8 = vor.u32 %v7737_v50, %v5776_v53  ;;  %v5638_v53 = vld [vmem:[#allocation5 + $0x260] sm:$0xf] }
  0xa3   :  { %2216 = vmatpush.bf16.msra.mxu1 %v6347_v17  ;;  %v6446_v17 = vld [vmem:[#allocation5 + $0x8b8] sm:$0xf]  ;;  %v7875_v6 = vld [vmem:[#allocation5 + $0x7c4] sm:$0xf0] }
  0xa4   :  { %2235 = vmatpush.bf16.msra.mxu2 %v5583_v13  ;;  %v5726_v13 = vld [vmem:[#allocation5 + $0x318] sm:$0xf] }
  0xa5   :  { %2254 = vmatpush.bf16.msra.mxu3 %v5967_v18  ;;  %v7911_v18 = vld [vmem:[#allocation5 + $0x8e4] sm:$0xf0] }
  0xa6   :  { %2198 = vmatpush.bf16.msra.mxu0 %v5915_v26  ;;  %v5727_v26 = vor.u32 %v7731_v14, %v5726_v13  ;;  %v7761_v13 = vld [vmem:[#allocation5 + $0x43c] sm:$0xf]  ;;  %v5872_v14 = vld [vmem:[#allocation5 + $0x468] sm:$0xf0] }
  0xa7   :  { %2217 = vmatpush.bf16.msra.mxu1 %v6299_v29  ;;  %v6447_v29 = vor.u32 %v7911_v18, %v6446_v17  ;;  %v6254_v18 = vld [vmem:[#allocation5 + $0x738] sm:$0xf] }
  0xa8   :  { %2236 = vmatpush.bf16.msra.mxu2 %v5535_v25  ;;  %v6107_v25 = vor.u32 %v7820_v11, %v6104_v12  ;;  %v5923_v11 = vor.u32 %v7773_v0, %v5920_v1  ;;  %v7833_v0 = vld [vmem:[#allocation5 + $0x67c] sm:$0xf]  ;;  %v6160_v1 = vld [vmem:[#allocation5 + $0x6a8] sm:$0xf0] }
  0xa9   :  { %2255 = vmatpush.bf16.msra.mxu3 %v5919_v30  ;;  %2132 = vmatmul.bf16.gmra.mxu0 %v8434_v39  ;;  %v7797_v30 = vld [vmem:[#allocation5 + $0x55c] sm:$0xf] }
  0xaa   :  { %2199 = vmatpush.bf16.msra.mxu0 %v5867_v38  ;;  %2151 = vmatmul.bf16.gmra.mxu1 %v8436_v44  ;;  %v7893_v38 = vld [vmem:[#allocation5 + $0x85c] sm:$0xf]  ;;  %v6019_v41 = vor.u32 %v7797_v30, %v6016_v31  ;;  %v5875_v30 = vor.u32 %v7761_v13, %v5872_v14  ;;  %v6255_v31 = vor.u32 %v7863_v19, %v6254_v18  ;;  %v6112_v19 = vld [vmem:[#allocation5 + $0x648] sm:$0xf0] }
  0xab   :  { %2218 = vmatpush.bf16.msra.mxu1 %v6251_v42  ;;  %2170 = vmatmul.bf16.gmra.mxu2 %v8438_v45  ;;  %v6399_v42 = vor.u32 %v7899_v35, %v6398_v34  ;;  %v6403_v48 = vor.u32 %v7893_v38, %v6400_v40  ;;  %v7851_v38 = vld [vmem:[#allocation5 + $0x704] sm:$0xf0]  ;;  %v7653_v40 = vld [vmem:[#allocation5 + $0xdc] sm:$0xf]  ;;  %v6163_v14 = vor.u32 %v7833_v0, %v6160_v1  ;;  %v6358_v1 = vld [vmem:[#allocation5 + $0x800] sm:$0xf] }
  0xac   :  { %2237 = vmatpush.bf16.msra.mxu2 %v5487_v37  ;;  %2189 = vmatmul.bf16.gmra.mxu3 %v8434_v39  ;;  %v5632_v37 = vld [vmem:[#allocation5 + $0x288] sm:$0xf0] }
  0xad   :  { %2256 = vmatpush.bf16.msra.mxu3 %v5871_v43  ;;  %v8471_v43 = vperm.slane %v8468_v27, 0  ;;  %v5635_v47 = vor.u32 %v7701_v36, %v5632_v37  ;;  %v6206_v37 = vld [vmem:[#allocation5 + $0x6d8] sm:$0xf] }
  0xae   :  { %2200 = vmatpush.bf16.msra.mxu0 %v5819_v56  ;;  %v6207_v49 = vor.u32 %v7851_v38, %v6206_v37 }
  0xaf   :  { %2219 = vmatpush.bf16.msra.mxu1 %v6203_v59  ;;  %v6352_v59 = vld [vmem:[#allocation5 + $0x828] sm:$0xf0] }
  0xb0   :  { %2238 = vmatpush.bf16.msra.mxu2 %v5439_v55  ;;  %v7689_v55 = vld [vmem:[#allocation5 + $0x1fc] sm:$0xf] }
  0xb1   :  { %2257 = vmatpush.bf16.msra.mxu3 %v5823_v60  ;;  %v5587_v3 = vor.u32 %v7689_v55, %v5584_v57  ;;  %v6158_v57 = vld [vmem:[#allocation5 + $0x678] sm:$0xf] }
  0xb2   :  { %2201 = vmatpush.bf16.msra.mxu0 %v5771_v5  ;;  %v6302_v5 = vld [vmem:[#allocation5 + $0x798] sm:$0xf] }
  0xb3   :  { %2220 = vmatpush.bf16.msra.mxu1 %v6155_v9  ;;  %v7869_v9 = vld [vmem:[#allocation5 + $0x79c] sm:$0xf]  ;;  %v6303_v12 = vor.u32 %v7875_v6, %v6302_v5  ;;  %v5728_v5 = vld [vmem:[#allocation5 + $0x348] sm:$0xf0] }
  0xb4   :  { %2239 = vmatpush.bf16.msra.mxu2 %v5391_v4  ;;  %v6355_v4 = vor.u32 %v7881_v58, %v6352_v59  ;;  %v7839_v58 = vld [vmem:[#allocation5 + $0x6a4] sm:$0xf0]  ;;  %v7641_v59 = vld [vmem:[#allocation5 + $0x7c] sm:$0xf] }
  0xb5   :  { %2258 = vmatpush.bf16.msra.mxu3 %v5775_v10  ;;  %v6304_v10 = vld [vmem:[#allocation5 + $0x7c8] sm:$0xf0] }
  0xb6   :  { %2202 = vmatpush.bf16.msra.mxu0 %v5723_v21  ;;  %v1900_v56 = vpop.f32.mrf.mxu0  ;;  %v6307_v17 = vor.u32 %v7869_v9, %v6304_v10  ;;  %v6159_v9 = vor.u32 %v7839_v58, %v6158_v57  ;;  %v6110_v10 = vld [vmem:[#allocation5 + $0x618] sm:$0xf]  ;;  %v7702_v57 = vld [vmem:[#allocation5 + $0x264] sm:$0xf]  ;;  %v5640_v58 = vld [vmem:[#allocation5 + $0x290] sm:$0xf0] }
  0xb7   :  { %2221 = vmatpush.bf16.msra.mxu1 %v6107_v25  ;;  %v1901_v60 = vadd.f32 %v1900_v56, %v8471_v43  ;;  %v1919_v61 = vpop.f32.mrf.mxu1  ;;  %v7857_v25 = vld [vmem:[#allocation5 + $0x73c] sm:$0xf]  ;;  %v5643_v0 = vor.u32 %v7702_v57, %v5640_v58  ;;  %v5496_v57 = vld [vmem:[#allocation5 + $0x170] sm:$0xf0] }
  0xb8   :  { %2240 = vmatpush.bf16.msra.mxu2 %v5343_v20  ;;  %v7665_v20 = vld [vmem:[#allocation5 + $0x13c] sm:$0xf] }
  0xb9   :  { %2259 = vmatpush.bf16.msra.mxu3 %v5727_v26  ;;  %v1920_v2 = vadd.f32 %v1919_v61, %v1901_v60  ;;  %2203 = vmatmul.bf16.vlgmr.msra.gmra.mxu0 %v8426_v51  ;;  %v6256_v26 = vld [vmem:[#allocation5 + $0x768] sm:$0xf0]  ;;  %v5491_v35 = vor.u32 %v7665_v20, %v5488_v24  ;;  %v6454_v20 = vld [vmem:[#allocation5 + $0x8c0] sm:$0xf]  ;;  %v7720_v24 = vld [vmem:[#allocation5 + $0x2ec] sm:$0xf0] }
  0xba   :  { %2271 = vmatpush.bf16.msrb.mxu0 %v6447_v29  ;;  %2222 = vmatmul.bf16.vlgmr.msra.gmra.mxu1 %v8428_v52  ;;  %v6259_v36 = vor.u32 %v7857_v25, %v6256_v26  ;;  %v6070_v25 = vld [vmem:[#allocation5 + $0x5c0] sm:$0xf] }
  0xbb   :  { %2290 = vmatpush.bf16.msrb.mxu1 %v5683_v32  ;;  %2241 = vmatmul.bf16.vlgmr.msra.gmra.mxu2 %v8424_v46  ;;  %v7749_v32 = vld [vmem:[#allocation5 + $0x3dc] sm:$0xf] }
  0xbc   :  { %2309 = vmatpush.bf16.msrb.mxu2 %v6067_v28  ;;  %2260 = vmatmul.bf16.vlgmr.msra.gmra.mxu3 %v8426_v51 }
  0xbd   :  { %2328 = vmatpush.bf16.msrb.mxu3 %v6451_v33  ;;  %v5824_v33 = vld [vmem:[#allocation5 + $0x408] sm:$0xf0] }
  0xbe   :  { %2272 = vmatpush.bf16.msrb.mxu0 %v6399_v42  ;;  %v1938_v15 = vpop.f32.mrf.mxu2  ;;  %v1902_v23 = vpop.f32.mrf.mxu0  ;;  %v7845_v42 = vld [vmem:[#allocation5 + $0x6dc] sm:$0xf] }
  0xbf   :  { %2291 = vmatpush.bf16.msrb.mxu1 %v5635_v47  ;;  %v8478_v21 = vadd.f32 %v1938_v15, %v1920_v2  ;;  %v8480_v22 = vpop.f32.mrf.mxu3  ;;  %v1903_v28 = vadd.f32 %v1902_v23, %v8471_v43  ;;  %v1921_v29 = vpop.f32.mrf.mxu1  ;;  %v6208_v47 = vld [vmem:[#allocation5 + $0x708] sm:$0xf0]  ;;  %v7629_v15 = vld [vmem:[#allocation5 + $0x1c] sm:$0xf]  ;;  %v5686_v23 = vld [vmem:[#allocation5 + $0x2c0] sm:$0xf] }
  0xc0   :  { %2310 = vmatpush.bf16.msrb.mxu2 %v6019_v41  ;;  %v5440_v41 = vld [vmem:[#allocation5 + $0x108] sm:$0xf0]  ;;  %v6211_v56 = vor.u32 %v7845_v42, %v6208_v47  ;;  %v7900_v42 = vld [vmem:[#allocation5 + $0x88c] sm:$0xf0] }
  0xc1   :  { %2329 = vmatpush.bf16.msrb.mxu3 %v6403_v48  ;;  %v1922_v34 = vadd.f32 %v1921_v29, %v1903_v28  ;;  %v5827_v48 = vor.u32 %v7749_v32, %v5824_v33  ;;  %v5443_v55 = vor.u32 %v7653_v40, %v5440_v41  ;;  %v2575_v6 = vmax.f32 %v8478_v21, 0.0  ;;  %v7912_v21 = vld [vmem:[#allocation5 + $0x8ec] sm:$0xf0]  ;;  %v6406_v41 = vld [vmem:[#allocation5 + $0x860] sm:$0xf] }
  0xc2   :  { %2273 = vmatpush.bf16.msrb.mxu0 %v6351_v63  ;;  %v5392_v63 = vld [vmem:[#allocation5 + $0xa8] sm:$0xf0]  ;;  %v7816_v29 = vld [vmem:[#allocation5 + $0x5ec] sm:$0xf0]  ;;  %v6455_v38 = vor.u32 %v7912_v21, %v6454_v20  ;;  %v5687_v40 = vor.u32 %v7720_v24, %v5686_v23  ;;  %v6310_v21 = vld [vmem:[#allocation5 + $0x7a0] sm:$0xf] }
  0xc3   :  { %2292 = vmatpush.bf16.msrb.mxu1 %v5587_v3  ;;  %v5395_v13 = vor.u32 %v7641_v59, %v5392_v63 }
  0xc4   :  { %2311 = vmatpush.bf16.msrb.mxu2 %v5971_v62 }
  0xc5   :  { %2330 = vmatpush.bf16.msrb.mxu3 %v6355_v4  ;;  %v7725_v4 = vld [vmem:[#allocation5 + $0x31c] sm:$0xf] }
  0xc6   :  { %2274 = vmatpush.bf16.msrb.mxu0 %v6303_v12  ;;  %v1940_v54 = vpop.f32.mrf.mxu2  ;;  %v1905_v62 = vpop.f32.mrf.mxu0  ;;  %v5731_v26 = vor.u32 %v7725_v4, %v5728_v5  ;;  %v5590_v4 = vld [vmem:[#allocation5 + $0x200] sm:$0xf]  ;;  %v7696_v5 = vld [vmem:[#allocation5 + $0x22c] sm:$0xf0] }
  0xc7   :  { %2293 = vmatpush.bf16.msrb.mxu1 %v5539_v16  ;;  %v1941_v60 = vadd.f32 %v1940_v54, %v1922_v34  ;;  %v8483_v61 = vpop.f32.mrf.mxu3  ;;  %v1906_v2 = vadd.f32 %v1905_v62, %v8471_v43  ;;  %v1924_v3 = vpop.f32.mrf.mxu1  ;;  %v5344_v16 = vld [vmem:[#allocation5 + $0x48] sm:$0xf0]  ;;  %v7708_v54 = vld [vmem:[#allocation5 + $0x28c] sm:$0xf0]  ;;  %v5591_v20 = vor.u32 %v7696_v5, %v5590_v4  ;;  %v5446_v5 = vld [vmem:[#allocation5 + $0xe0] sm:$0xf] }
  0xc8   :  { %2312 = vmatpush.bf16.msrb.mxu2 %v5923_v11  ;;  %v7827_v11 = vld [vmem:[#allocation5 + $0x644] sm:$0xf0]  ;;  %v5347_v33 = vor.u32 %v7629_v15, %v5344_v16  ;;  %v5639_v62 = vor.u32 %v7708_v54, %v5638_v53 }
  0xc9   :  { %2331 = vmatpush.bf16.msrb.mxu3 %v6307_v17  ;;  %v2587_v7 = vmax.f32 %v1941_v60, 0.0  ;;  %v1925_v12 = vadd.f32 %v1924_v3, %v1906_v2  ;;  %v7821_v17 = vld [vmem:[#allocation5 + $0x61c] sm:$0xf]  ;;  %2208 = vmatmul.bf16.gmra.mxu0 %v8436_v44  ;;  %v6111_v28 = vor.u32 %v7827_v11, %v6110_v10  ;;  %v8499_v60 = vperm.slane %v8468_v27, 1  ;;  %v7888_v2 = vld [vmem:[#allocation5 + $0x82c] sm:$0xf0] }
  0xca   :  { %2275 = vmatpush.bf16.msrb.mxu0 %v6255_v31  ;;  %2227 = vmatmul.bf16.gmra.mxu1 %v8438_v45  ;;  %v5688_v31 = vld [vmem:[#allocation5 + $0x2f0] sm:$0xf0]  ;;  %v6115_v34 = vor.u32 %v7821_v17, %v6112_v19  ;;  %v7792_v10 = vld [vmem:[#allocation5 + $0x52c] sm:$0xf0]  ;;  %v7690_v11 = vld [vmem:[#allocation5 + $0x204] sm:$0xf]  ;;  %v6359_v15 = vor.u32 %v7888_v2, %v6358_v1 }
  0xcb   :  { %2294 = vmatpush.bf16.msrb.mxu1 %v5491_v35  ;;  %v8487_v18 = vpack.c.bf16 %v2587_v7, %v2575_v6  ;;  %2246 = vmatmul.bf16.gmra.mxu2 %v8434_v39  ;;  %v5974_v6 = vld [vmem:[#allocation5 + $0x500] sm:$0xf]  ;;  %v1958_v7 = vadd.f32 %v8480_v22, %v8499_v60  ;;  %v7876_v22 = vld [vmem:[#allocation5 + $0x7cc] sm:$0xf0] }
  0xcc   :  { %2313 = vmatpush.bf16.msrb.mxu2 %v5875_v30  ;;  %2265 = vmatmul.bf16.gmra.mxu3 %v8436_v44  ;;  %v7714_v30 = vld [vmem:[#allocation5 + $0x2c4] sm:$0xf]  ;;  %v5975_v23 = vor.u32 %v7792_v10, %v5974_v6  ;;  %v6214_v1 = vld [vmem:[#allocation5 + $0x6e0] sm:$0xf]  ;;  %v7852_v2 = vld [vmem:[#allocation5 + $0x70c] sm:$0xf0] }
  0xcd   :  { %2332 = vmatpush.bf16.msrb.mxu3 %v6259_v36  ;;  %v5691_v50 = vor.u32 %v7714_v30, %v5688_v31  ;;  %v7780_v30 = vld [vmem:[#allocation5 + $0x4cc] sm:$0xf0]  ;;  %v7678_v31 = vld [vmem:[#allocation5 + $0x1a4] sm:$0xf] }
  0xce   :  { %2276 = vmatpush.bf16.msrb.mxu0 %v6207_v49  ;;  %v1943_v32 = vpop.f32.mrf.mxu2  ;;  %v1907_v37 = vpop.f32.mrf.mxu0  ;;  %v6071_v49 = vor.u32 %v7816_v29, %v6070_v25  ;;  %v5542_v25 = vld [vmem:[#allocation5 + $0x1a0] sm:$0xf]  ;;  %v7660_v6 = vld [vmem:[#allocation5 + $0x10c] sm:$0xf0] }
  0xcf   :  { %2295 = vmatpush.bf16.msrb.mxu1 %v5443_v55  ;;  %v8493_v35 = vadd.f32 %v1943_v32, %v1925_v12  ;;  %v8495_v36 = vpop.f32.mrf.mxu3  ;;  %v1908_v47 = vadd.f32 %v1907_v37, %v8471_v43  ;;  %v6022_v55 = vld [vmem:[#allocation5 + $0x560] sm:$0xf]  ;;  %v6407_v43 = vor.u32 %v7900_v42, %v6406_v41  ;;  %v5592_v12 = vld [vmem:[#allocation5 + $0x230] sm:$0xf0]  ;;  %v7756_v10 = vld [vmem:[#allocation5 + $0x40c] sm:$0xf0] }
  0xd0   :  { %2314 = vmatpush.bf16.msrb.mxu2 %v5827_v48  ;;  %v1926_v48 = vpop.f32.mrf.mxu1  ;;  %v5595_v24 = vor.u32 %v7690_v11, %v5592_v12  ;;  %v5544_v32 = vld [vmem:[#allocation5 + $0x1d0] sm:$0xf0]  ;;  %v7654_v11 = vld [vmem:[#allocation5 + $0xe4] sm:$0xf] }
  0xd1   :  { %2333 = vmatpush.bf16.msrb.mxu3 %v6211_v56  ;;  %v7804_v56 = vld [vmem:[#allocation5 + $0x58c] sm:$0xf0]  ;;  %v1927_v59 = vadd.f32 %v1926_v48, %v1908_v47  ;;  %v2599_v16 = vmax.f32 %v8493_v35, 0.0  ;;  %v6311_v35 = vor.u32 %v7876_v22, %v6310_v21  ;;  %v5547_v42 = vor.u32 %v7678_v31, %v5544_v32  ;;  %v5494_v47 = vld [vmem:[#allocation5 + $0x140] sm:$0xf] }
  0xd2   :  { %2277 = vmatpush.bf16.msrb.mxu0 %v6159_v9  ;;  %v6023_v63 = vor.u32 %v7804_v56, %v6022_v55  ;;  %v7672_v48 = vld [vmem:[#allocation5 + $0x16c] sm:$0xf0]  ;;  %v7666_v56 = vld [vmem:[#allocation5 + $0x144] sm:$0xf]  ;;  %v5448_v12 = vld [vmem:[#allocation5 + $0x110] sm:$0xf0] }
  0xd3   :  { %2296 = vmatpush.bf16.msrb.mxu1 %v5395_v13  ;;  %v7768_v55 = vld [vmem:[#allocation5 + $0x46c] sm:$0xf0]  ;;  %v5499_v4 = vor.u32 %v7666_v56, %v5496_v57  ;;  %v5451_v21 = vor.u32 %v7654_v11, %v5448_v12  ;;  %v5398_v22 = vld [vmem:[#allocation5 + $0x80] sm:$0xf]  ;;  %v7642_v31 = vld [vmem:[#allocation5 + $0x84] sm:$0xf] }
  0xd4   :  { %2315 = vmatpush.bf16.msrb.mxu2 %v5779_v8  ;;  %v5400_v32 = vld [vmem:[#allocation5 + $0xb0] sm:$0xf0]  ;;  %v7732_v56 = vld [vmem:[#allocation5 + $0x34c] sm:$0xf0]  ;;  %v7630_v57 = vld [vmem:[#allocation5 + $0x24] sm:$0xf] }
  0xd5   :  { %2334 = vmatpush.bf16.msrb.mxu3 %v6163_v14 }
  0xd6   :  { %2278 = vmatpush.bf16.msrb.mxu0 %v6111_v28  ;;  %v1945_v3 = vpop.f32.mrf.mxu2  ;;  %v1976_v13 = vpop.f32.mrf.mxu0  ;;  %v5926_v28 = vld [vmem:[#allocation5 + $0x4a0] sm:$0xf] }
  0xd7   :  { %2297 = vmatpush.bf16.msrb.mxu1 %v5347_v33  ;;  %v1946_v8 = vadd.f32 %v1945_v3, %v1927_v59  ;;  %v8503_v9 = vpop.f32.mrf.mxu3  ;;  %v1977_v19 = vadd.f32 %v1976_v13, %v1958_v7  ;;  %v5927_v41 = vor.u32 %v7780_v30, %v5926_v28  ;;  %v5830_v7 = vld [vmem:[#allocation5 + $0x3e0] sm:$0xf]  ;;  %v7744_v30 = vld [vmem:[#allocation5 + $0x3ac] sm:$0xf0] }
  0xd8   :  { %2316 = vmatpush.bf16.msrb.mxu2 %v5731_v26  ;;  %v1995_v14 = vpop.f32.mrf.mxu1  ;;  %v7684_v26 = vld [vmem:[#allocation5 + $0x1cc] sm:$0xf0] }
  0xd9   :  { %2335 = vmatpush.bf16.msrb.mxu3 %v6115_v34  ;;  %v2611_v17 = vmax.f32 %v1946_v8, 0.0  ;;  %v8506_v29 = vadd.f32 %v1995_v14, %v1977_v19  ;;  %2279 = vmatmul.bf16.vlgmr.msrb.gmra.mxu0 %v8428_v52  ;;  %v8515_v34 = vperm.slane %v8468_v27, 2  ;;  %v5543_v37 = vor.u32 %v7684_v26, %v5542_v25  ;;  %v7840_v19 = vld [vmem:[#allocation5 + $0x6ac] sm:$0xf0] }
  0xda   :  { %2347 = vmatpush.bf16.msra.mxu0 %v5687_v40  ;;  %2298 = vmatmul.bf16.vlgmr.msrb.gmra.mxu1 %v8424_v46  ;;  %v7864_v40 = vld [vmem:[#allocation5 + $0x76c] sm:$0xf0]  ;;  %v1963_v25 = vadd.f32 %v8495_v36, %v8499_v60 }
  0xdb   :  { %2366 = vmatpush.bf16.msra.mxu1 %v6071_v49  ;;  %v8510_v33 = vpack.c.bf16 %v2611_v17, %v2599_v16  ;;  %2317 = vmatmul.bf16.vlgmr.msrb.gmra.mxu2 %v8426_v51  ;;  %v5878_v49 = vld [vmem:[#allocation5 + $0x440] sm:$0xf]  ;;  %v2576_v13 = vmax.f32 %v8506_v29, 0.0  ;;  %v5447_v16 = vor.u32 %v7660_v6, %v5446_v5  ;;  %v7636_v36 = vld [vmem:[#allocation5 + $0x4c] sm:$0xf0] }
  0xdc   :  { %2385 = vmatpush.bf16.msra.mxu2 %v6455_v38  ;;  %2336 = vmatmul.bf16.vlgmr.msrb.gmra.mxu3 %v8428_v52  ;;  %v6262_v38 = vld [vmem:[#allocation5 + $0x740] sm:$0xf]  ;;  %v6078_v5 = vld [vmem:[#allocation5 + $0x5c8] sm:$0xf]  ;;  %v7817_v6 = vld [vmem:[#allocation5 + $0x5f4] sm:$0xf0] }
  0xdd   :  { %2404 = vmatpush.bf16.msra.mxu3 %v5691_v50  ;;  %v1960_v50 = vadd.f32 %v8483_v61, %v8499_v60  ;;  %v5879_v61 = vor.u32 %v7768_v55, %v5878_v49  ;;  %v6166_v17 = vld [vmem:[#allocation5 + $0x680] sm:$0xf] }
  0xde   :  { %2348 = vmatpush.bf16.msra.mxu0 %v5639_v62  ;;  %v2014_v53 = vpop.f32.mrf.mxu2  ;;  %v1978_v59 = vpop.f32.mrf.mxu0  ;;  %v5350_v49 = vld [vmem:[#allocation5 + $0x20] sm:$0xf] }
  0xdf   :  { %2367 = vmatpush.bf16.msra.mxu1 %v6023_v63  ;;  %v2033_v54 = vpop.f32.mrf.mxu3  ;;  %v2015_v58 = vadd.f32 %v2014_v53, %v8515_v34  ;;  %v1979_v62 = vadd.f32 %v1978_v59, %v1960_v50  ;;  %v6263_v63 = vor.u32 %v7864_v40, %v6262_v38  ;;  %v6118_v40 = vld [vmem:[#allocation5 + $0x620] sm:$0xf]  ;;  %v5352_v59 = vld [vmem:[#allocation5 + $0x50] sm:$0xf0] }
  0xe0   :  { %2386 = vmatpush.bf16.msra.mxu2 %v6407_v43  ;;  %v1997_v43 = vpop.f32.mrf.mxu1  ;;  %v5734_v55 = vld [vmem:[#allocation5 + $0x320] sm:$0xf] }
  0xe1   :  { %2405 = vmatpush.bf16.msra.mxu3 %v5643_v0  ;;  %v5495_v0 = vor.u32 %v7672_v48, %v5494_v47  ;;  %v8520_v3 = vadd.f32 %v2033_v54, %v2015_v58  ;;  %v1998_v8 = vadd.f32 %v1997_v43, %v1979_v62  ;;  %v7828_v48 = vld [vmem:[#allocation5 + $0x64c] sm:$0xf0]  ;;  %v5403_v54 = vor.u32 %v7642_v31, %v5400_v32  ;;  %v5694_v43 = vld [vmem:[#allocation5 + $0x2c8] sm:$0xf]  ;;  %v7721_v62 = vld [vmem:[#allocation5 + $0x2f4] sm:$0xf0] }
  0xe2   :  { %2349 = vmatpush.bf16.msra.mxu0 %v5591_v20  ;;  %v5831_v20 = vor.u32 %v7756_v10, %v5830_v7  ;;  %v5735_v7 = vor.u32 %v7732_v56, %v5734_v55  ;;  %v1965_v10 = vadd.f32 %v8503_v9, %v8499_v60  ;;  %v6030_v60 = vld [vmem:[#allocation5 + $0x568] sm:$0xf]  ;;  %v7805_v9 = vld [vmem:[#allocation5 + $0x594] sm:$0xf0]  ;;  %v6360_v55 = vld [vmem:[#allocation5 + $0x830] sm:$0xf0] }
  0xe3   :  { %2368 = vmatpush.bf16.msra.mxu1 %v5975_v23  ;;  %v2588_v14 = vmax.f32 %v1998_v8, 0.0  ;;  %v7648_v23 = vld [vmem:[#allocation5 + $0xac] sm:$0xf0]  ;;  %v5355_v8 = vor.u32 %v7630_v57, %v5352_v59  ;;  %v5982_v56 = vld [vmem:[#allocation5 + $0x508] sm:$0xf] }
  0xe4   :  { %2387 = vmatpush.bf16.msra.mxu2 %v6359_v15  ;;  %v6215_v15 = vor.u32 %v7852_v2, %v6214_v1  ;;  %v5399_v47 = vor.u32 %v7648_v23, %v5398_v22  ;;  %v7906_v1 = vld [vmem:[#allocation5 + $0x8c4] sm:$0xf]  ;;  %v6119_v2 = vor.u32 %v7828_v48, %v6118_v40  ;;  %v6079_v22 = vor.u32 %v7817_v6, %v6078_v5  ;;  %v7793_v57 = vld [vmem:[#allocation5 + $0x534] sm:$0xf0] }
  0xe5   :  { %2406 = vmatpush.bf16.msra.mxu3 %v5595_v24  ;;  %v5782_v24 = vld [vmem:[#allocation5 + $0x380] sm:$0xf]  ;;  %v8525_v26 = vpack.c.bf16 %v2588_v14, %v2576_v13  ;;  %v5695_v13 = vor.u32 %v7721_v62, %v5694_v43  ;;  %v7798_v23 = vld [vmem:[#allocation5 + $0x564] sm:$0xf] }
  0xe6   :  { %2350 = vmatpush.bf16.msra.mxu0 %v5543_v37  ;;  %v2016_v28 = vpop.f32.mrf.mxu2  ;;  %v1981_v37 = vpop.f32.mrf.mxu0  ;;  %v5783_v53 = vor.u32 %v7744_v30, %v5782_v24  ;;  %v6024_v24 = vld [vmem:[#allocation5 + $0x590] sm:$0xf0]  ;;  %v7786_v48 = vld [vmem:[#allocation5 + $0x504] sm:$0xf] }
  0xe7   :  { %2369 = vmatpush.bf16.msra.mxu1 %v5927_v41  ;;  %v2035_v29 = vpop.f32.mrf.mxu3  ;;  %v1982_v41 = vadd.f32 %v1981_v37, %v1963_v25  ;;  %v7894_v25 = vld [vmem:[#allocation5 + $0x864] sm:$0xf] }
  0xe8   :  { %2388 = vmatpush.bf16.msra.mxu2 %v6311_v35  ;;  %v2017_v35 = vadd.f32 %v2016_v28, %v8515_v34  ;;  %v2000_v38 = vpop.f32.mrf.mxu1 }
  0xe9   :  { %2407 = vmatpush.bf16.msra.mxu3 %v5547_v42  ;;  %v6167_v42 = vor.u32 %v7840_v19, %v6166_v17  ;;  %v8530_v58 = vadd.f32 %v2000_v38, %v1982_v41  ;;  %2284 = vmatmul.bf16.gmra.mxu0 %v8438_v45  ;;  %v6031_v38 = vor.u32 %v7805_v9, %v6030_v60 }
  0xea   :  { %2351 = vmatpush.bf16.msra.mxu0 %v5495_v0  ;;  %v8528_v50 = vadd.f32 %v2035_v29, %v2017_v35  ;;  %2303 = vmatmul.bf16.gmra.mxu1 %v8434_v39  ;;  %v6072_v0 = vld [vmem:[#allocation5 + $0x5f0] sm:$0xf0]  ;;  %v6027_v35 = vor.u32 %v7798_v23, %v6024_v24 }
  0xeb   :  { %2370 = vmatpush.bf16.msra.mxu1 %v5879_v61  ;;  %2322 = vmatmul.bf16.gmra.mxu2 %v8436_v44  ;;  %v5351_v61 = vor.u32 %v7636_v36, %v5350_v49  ;;  %v6408_v29 = vld [vmem:[#allocation5 + $0x890] sm:$0xf0]  ;;  %v2600_v40 = vmax.f32 %v8530_v58, 0.0  ;;  %v7882_v36 = vld [vmem:[#allocation5 + $0x804] sm:$0xf]  ;;  %v8546_v58 = vperm.slane %v8468_v27, 3 }
  0xec   :  { %2389 = vmatpush.bf16.msra.mxu2 %v6263_v63  ;;  %2341 = vmatmul.bf16.gmra.mxu3 %v8438_v45  ;;  %v7810_v63 = vld [vmem:[#allocation5 + $0x5c4] sm:$0xf]  ;;  %v6411_v37 = vor.u32 %v7894_v25, %v6408_v29  ;;  %v5976_v49 = vld [vmem:[#allocation5 + $0x530] sm:$0xf0]  ;;  %v6363_v6 = vor.u32 %v7882_v36, %v6360_v55  ;;  %v7769_v29 = vld [vmem:[#allocation5 + $0x474] sm:$0xf0] }
  0xed   :  { %2408 = vmatpush.bf16.msra.mxu3 %v5499_v4  ;;  %v6456_v4 = vld [vmem:[#allocation5 + $0x8f0] sm:$0xf0]  ;;  %v6075_v14 = vor.u32 %v7810_v63, %v6072_v0  ;;  %v7846_v36 = vld [vmem:[#allocation5 + $0x6e4] sm:$0xf] }
  0xee   :  { %2352 = vmatpush.bf16.msra.mxu0 %v5447_v16  ;;  %v2019_v11 = vpop.f32.mrf.mxu2  ;;  %v7709_v16 = vld [vmem:[#allocation5 + $0x294] sm:$0xf0]  ;;  %v1983_v19 = vpop.f32.mrf.mxu0  ;;  %v6312_v27 = vld [vmem:[#allocation5 + $0x7d0] sm:$0xf0] }
  0xef   :  { %2371 = vmatpush.bf16.msra.mxu1 %v5831_v20  ;;  %v2038_v12 = vpop.f32.mrf.mxu3  ;;  %v2020_v17 = vadd.f32 %v2019_v11, %v8515_v34  ;;  %v1984_v28 = vadd.f32 %v1983_v19, %v1965_v10  ;;  %v5928_v10 = vld [vmem:[#allocation5 + $0x4d0] sm:$0xf0]  ;;  %v5934_v11 = vld [vmem:[#allocation5 + $0x4a8] sm:$0xf] }
  0xf0   :  { %2390 = vmatpush.bf16.msra.mxu2 %v6215_v15  ;;  %v5646_v15 = vld [vmem:[#allocation5 + $0x268] sm:$0xf]  ;;  %v2002_v20 = vpop.f32.mrf.mxu1  ;;  %v6264_v25 = vld [vmem:[#allocation5 + $0x770] sm:$0xf0] }
  0xf1   :  { %2409 = vmatpush.bf16.msra.mxu3 %v5451_v21  ;;  %v6459_v21 = vor.u32 %v7906_v1, %v6456_v4  ;;  %v8539_v30 = vadd.f32 %v2038_v12, %v2020_v17  ;;  %v2003_v31 = vadd.f32 %v2002_v20, %v1984_v28  ;;  %v5647_v32 = vor.u32 %v7709_v16, %v5646_v15  ;;  %v7685_v4 = vld [vmem:[#allocation5 + $0x1d4] sm:$0xf0]  ;;  %v5502_v15 = vld [vmem:[#allocation5 + $0x148] sm:$0xf]  ;;  %v7762_v20 = vld [vmem:[#allocation5 + $0x444] sm:$0xf] }
  0xf2   :  { %2353 = vmatpush.bf16.msra.mxu0 %v5399_v47  ;;  %v7697_v47 = vld [vmem:[#allocation5 + $0x234] sm:$0xf0]  ;;  %v5886_v28 = vld [vmem:[#allocation5 + $0x448] sm:$0xf] }
  0xf3   :  { %2372 = vmatpush.bf16.msra.mxu1 %v5783_v53  ;;  %v2612_v41 = vmax.f32 %v2003_v31, 0.0  ;;  %v7781_v12 = vld [vmem:[#allocation5 + $0x4d4] sm:$0xf0] }
  0xf4   :  { %2391 = vmatpush.bf16.msra.mxu2 %v6167_v42  ;;  %v5598_v42 = vld [vmem:[#allocation5 + $0x208] sm:$0xf]  ;;  %v7673_v16 = vld [vmem:[#allocation5 + $0x174] sm:$0xf0]  ;;  %v5935_v19 = vor.u32 %v7781_v12, %v5934_v11 }
  0xf5   :  { %2410 = vmatpush.bf16.msra.mxu3 %v5403_v54  ;;  %v8542_v59 = vpack.c.bf16 %v2612_v41, %v2600_v40  ;;  %v5599_v1 = vor.u32 %v7697_v47, %v5598_v42  ;;  %v7661_v40 = vld [vmem:[#allocation5 + $0x114] sm:$0xf0]  ;;  %v7750_v41 = vld [vmem:[#allocation5 + $0x3e4] sm:$0xf] }
  0xf6   :  { %2354 = vmatpush.bf16.msra.mxu0 %v5351_v61  ;;  %v2021_v53 = vpop.f32.mrf.mxu2  ;;  %v2052_v62 = vpop.f32.mrf.mxu0  ;;  %v5550_v61 = vld [vmem:[#allocation5 + $0x1a8] sm:$0xf]  ;;  %v7745_v11 = vld [vmem:[#allocation5 + $0x3b4] sm:$0xf0] }
  0xf7   :  { %2373 = vmatpush.bf16.msra.mxu1 %v5735_v7  ;;  %v2040_v54 = vpop.f32.mrf.mxu3  ;;  %v2022_v43 = vadd.f32 %v2021_v53, %v8515_v34  ;;  %v2053_v0 = vadd.f32 %v2052_v62, %v8520_v3  ;;  %v5983_v7 = vor.u32 %v7793_v57, %v5982_v56  ;;  %v7870_v34 = vld [vmem:[#allocation5 + $0x7a4] sm:$0xf]  ;;  %v6216_v53 = vld [vmem:[#allocation5 + $0x710] sm:$0xf0]  ;;  %v5838_v56 = vld [vmem:[#allocation5 + $0x3e8] sm:$0xf] }
  0xf8   :  { %2392 = vmatpush.bf16.msra.mxu2 %v6119_v2  ;;  %v2071_v63 = vpop.f32.mrf.mxu1  ;;  %v5979_v2 = vor.u32 %v7786_v48, %v5976_v49  ;;  %v6315_v17 = vor.u32 %v7870_v34, %v6312_v27  ;;  %v5887_v48 = vor.u32 %v7769_v29, %v5886_v28  ;;  %v5832_v49 = vld [vmem:[#allocation5 + $0x410] sm:$0xf0]  ;;  %v5790_v27 = vld [vmem:[#allocation5 + $0x388] sm:$0xf] }
  0xf9   :  { %2411 = vmatpush.bf16.msra.mxu3 %v5355_v8  ;;  %v8549_v5 = vadd.f32 %v2040_v54, %v2022_v43  ;;  %v7774_v8 = vld [vmem:[#allocation5 + $0x4a4] sm:$0xf]  ;;  %2355 = vmatmul.bf16.vlgmr.msra.gmra.mxu0 %v8424_v46  ;;  %v2072_v3 = vadd.f32 %v2071_v63, %v8546_v58  ;;  %v2577_v54 = vmax.f32 %v2053_v0, 0.0  ;;  %v5835_v62 = vor.u32 %v7750_v41, %v5832_v49  ;;  %v5406_v63 = vld [vmem:[#allocation5 + $0x88] sm:$0xf] }
  0xfa   :  { %2423 = vmatpush.bf16.msrb.mxu0 %v6075_v14  ;;  %2374 = vmatmul.bf16.vlgmr.msra.gmra.mxu1 %v8426_v51  ;;  %v5931_v14 = vor.u32 %v7774_v8, %v5928_v10  ;;  %v7834_v0 = vld [vmem:[#allocation5 + $0x684] sm:$0xf]  ;;  %v6168_v34 = vld [vmem:[#allocation5 + $0x6b0] sm:$0xf0]  ;;  %v5742_v29 = vld [vmem:[#allocation5 + $0x328] sm:$0xf] }
  0xfb   :  { %2442 = vmatpush.bf16.msrb.mxu1 %v6459_v21  ;;  %2393 = vmatmul.bf16.vlgmr.msra.gmra.mxu2 %v8428_v52  ;;  %v5880_v21 = vld [vmem:[#allocation5 + $0x470] sm:$0xf0]  ;;  %v7907_v49 = vld [vmem:[#allocation5 + $0x8cc] sm:$0xf] }
  0xfc   :  { %2461 = vmatpush.bf16.msrb.mxu2 %v5695_v13  ;;  %2412 = vmatmul.bf16.vlgmr.msra.gmra.mxu3 %v8424_v46  ;;  %v5551_v13 = vor.u32 %v7685_v4, %v5550_v61  ;;  %v6219_v61 = vor.u32 %v7846_v36, %v6216_v53  ;;  %v6120_v28 = vld [vmem:[#allocation5 + $0x650] sm:$0xf0]  ;;  %v6464_v36 = vld [vmem:[#allocation5 + $0x8f8] sm:$0xf0] }
  0xfd   :  { %2480 = vmatpush.bf16.msrb.mxu3 %v6079_v22  ;;  %v7858_v22 = vld [vmem:[#allocation5 + $0x744] sm:$0xf] }
  0xfe   :  { %2424 = vmatpush.bf16.msrb.mxu0 %v6027_v35  ;;  %v2090_v23 = vpop.f32.mrf.mxu2  ;;  %v2054_v9 = vpop.f32.mrf.mxu0  ;;  %v5503_v35 = vor.u32 %v7673_v16, %v5502_v15  ;;  %v6267_v47 = vor.u32 %v7858_v22, %v6264_v25  ;;  %v7637_v15 = vld [vmem:[#allocation5 + $0x54] sm:$0xf0]  ;;  %v7822_v22 = vld [vmem:[#allocation5 + $0x624] sm:$0xf]  ;;  %v5791_v25 = vor.u32 %v7745_v11, %v5790_v27  ;;  %v7895_v27 = vld [vmem:[#allocation5 + $0x86c] sm:$0xf] }
  0xff   :  { %2443 = vmatpush.bf16.msrb.mxu1 %v6411_v37  ;;  %v2109_v24 = vpop.f32.mrf.mxu3  ;;  %v2091_v60 = vadd.f32 %v2090_v23, %v2072_v3  ;;  %v5883_v37 = vor.u32 %v7762_v20, %v5880_v21  ;;  %v7726_v20 = vld [vmem:[#allocation5 + $0x324] sm:$0xf]  ;;  %v5736_v21 = vld [vmem:[#allocation5 + $0x350] sm:$0xf0]  ;;  %v6416_v11 = vld [vmem:[#allocation5 + $0x898] sm:$0xf0] }
 0x100   :  { %2462 = vmatpush.bf16.msrb.mxu2 %v5647_v32  ;;  %v2073_v31 = vpop.f32.mrf.mxu1  ;;  %v2055_v32 = vadd.f32 %v2054_v9, %v8528_v50  ;;  %v7757_v50 = vld [vmem:[#allocation5 + $0x414] sm:$0xf0]  ;;  %v6080_v9 = vld [vmem:[#allocation5 + $0x5f8] sm:$0xf0] }
 0x101   :  { %2481 = vmatpush.bf16.msrb.mxu3 %v6031_v38  ;;  %v5454_v38 = vld [vmem:[#allocation5 + $0xe8] sm:$0xf]  ;;  %v8557_v42 = vadd.f32 %v2109_v24, %v2091_v60  ;;  %v5839_v4 = vor.u32 %v7757_v50, %v5838_v56  ;;  %v6171_v24 = vor.u32 %v7834_v0, %v6168_v34  ;;  %v7733_v60 = vld [vmem:[#allocation5 + $0x354] sm:$0xf0]  ;;  %v5648_v34 = vld [vmem:[#allocation5 + $0x298] sm:$0xf0] }
 0x102   :  { %2425 = vmatpush.bf16.msrb.mxu0 %v5979_v2  ;;  %v2589_v55 = vmax.f32 %v2055_v32, 0.0  ;;  %v5455_v43 = vor.u32 %v7661_v40, %v5454_v38  ;;  %v2074_v2 = vadd.f32 %v2073_v31, %v8546_v58  ;;  %v6462_v31 = vld [vmem:[#allocation5 + $0x8c8] sm:$0xf]  ;;  %v7913_v38 = vld [vmem:[#allocation5 + $0x8f4] sm:$0xf0] }
 0x103   :  { %2444 = vmatpush.bf16.msrb.mxu1 %v6363_v6  ;;  %v7738_v6 = vld [vmem:[#allocation5 + $0x384] sm:$0xf]  ;;  %v2578_v32 = vmax.f32 %v8557_v42, 0.0  ;;  %v7715_v40 = vld [vmem:[#allocation5 + $0x2cc] sm:$0xf]  ;;  %v6123_v42 = vor.u32 %v7822_v22, %v6120_v28 }
 0x104   :  { %2463 = vmatpush.bf16.msrb.mxu2 %v5599_v1  ;;  %v8559_v57 = vpack.c.bf16 %v2589_v55, %v2577_v54  ;;  %v7649_v1 = vld [vmem:[#allocation5 + $0xb4] sm:$0xf0]  ;;  %v5743_v54 = vor.u32 %v7733_v60, %v5742_v29  ;;  %v5984_v22 = vld [vmem:[#allocation5 + $0x538] sm:$0xf0]  ;;  %v7691_v28 = vld [vmem:[#allocation5 + $0x20c] sm:$0xf] }
 0x105   :  { %2482 = vmatpush.bf16.msrb.mxu3 %v5983_v7  ;;  %v5784_v7 = vld [vmem:[#allocation5 + $0x3b0] sm:$0xf0]  ;;  %v7901_v0 = vld [vmem:[#allocation5 + $0x894] sm:$0xf0] }
 0x106   :  { %2426 = vmatpush.bf16.msrb.mxu0 %v5931_v14  ;;  %v2092_v8 = vpop.f32.mrf.mxu2  ;;  %v2057_v3 = vpop.f32.mrf.mxu0  ;;  %v5358_v14 = vld [vmem:[#allocation5 + $0x28] sm:$0xf] }
 0x107   :  { %2445 = vmatpush.bf16.msrb.mxu1 %v6315_v17  ;;  %v2111_v10 = vpop.f32.mrf.mxu3  ;;  %v2093_v12 = vadd.f32 %v2092_v8, %v2074_v2  ;;  %v8563_v16 = vadd.f32 %v2057_v3, %v8539_v30  ;;  %v5407_v17 = vor.u32 %v7649_v1, %v5406_v63  ;;  %v7811_v30 = vld [vmem:[#allocation5 + $0x5cc] sm:$0xf]  ;;  %v5359_v41 = vor.u32 %v7637_v15, %v5358_v14  ;;  %v6032_v63 = vld [vmem:[#allocation5 + $0x598] sm:$0xf0] }
 0x108   :  { %2464 = vmatpush.bf16.msrb.mxu2 %v5551_v13  ;;  %v2076_v13 = vpop.f32.mrf.mxu1  ;;  %v6083_v50 = vor.u32 %v7811_v30, %v6080_v9  ;;  %v7703_v8 = vld [vmem:[#allocation5 + $0x26c] sm:$0xf]  ;;  %v5600_v30 = vld [vmem:[#allocation5 + $0x238] sm:$0xf0] }
 0x109   :  { %2483 = vmatpush.bf16.msrb.mxu3 %v5935_v19  ;;  %v5787_v19 = vor.u32 %v7738_v6, %v5784_v7  ;;  %v2112_v23 = vadd.f32 %v2111_v10, %v2093_v12  ;;  %2360 = vmatmul.bf16.gmra.mxu0 %v8434_v39  ;;  %v6467_v6 = vor.u32 %v7907_v49, %v6464_v36  ;;  %v6414_v7 = vld [vmem:[#allocation5 + $0x868] sm:$0xf]  ;;  %v2601_v3 = vmax.f32 %v8563_v16, 0.0  ;;  %v7883_v9 = vld [vmem:[#allocation5 + $0x80c] sm:$0xf] }
 0x10a   :  { %2427 = vmatpush.bf16.msrb.mxu0 %v5883_v37  ;;  %2379 = vmatmul.bf16.gmra.mxu1 %v8436_v44  ;;  %v2077_v37 = vadd.f32 %v2076_v13, %v8546_v58  ;;  %v6415_v15 = vor.u32 %v7901_v0, %v6414_v7  ;;  %v5603_v49 = vor.u32 %v7691_v28, %v5600_v30  ;;  %v7853_v30 = vld [vmem:[#allocation5 + $0x714] sm:$0xf0] }
 0x10b   :  { %2446 = vmatpush.bf16.msrb.mxu1 %v6267_v47  ;;  %2398 = vmatmul.bf16.gmra.mxu2 %v8438_v45  ;;  %v5739_v47 = vor.u32 %v7726_v20, %v5736_v21  ;;  %v7787_v21 = vld [vmem:[#allocation5 + $0x50c] sm:$0xf] }
 0x10c   :  { %2465 = vmatpush.bf16.msrb.mxu2 %v5503_v35  ;;  %v2590_v35 = vmax.f32 %v2112_v23, 0.0  ;;  %2417 = vmatmul.bf16.gmra.mxu3 %v8434_v39 }
 0x10d   :  { %2484 = vmatpush.bf16.msrb.mxu3 %v5887_v48  ;;  %v5696_v48 = vld [vmem:[#allocation5 + $0x2f8] sm:$0xf0] }
 0x10e   :  { %2428 = vmatpush.bf16.msrb.mxu0 %v5835_v62  ;;  %v8571_v53 = vpack.c.bf16 %v2590_v35, %v2578_v32  ;;  %v2095_v55 = vpop.f32.mrf.mxu2  ;;  %v7799_v62 = vld [vmem:[#allocation5 + $0x56c] sm:$0xf]  ;;  %v2059_v2 = vpop.f32.mrf.mxu0 }
 0x10f   :  { %2447 = vmatpush.bf16.msrb.mxu1 %v6219_v61  ;;  %v2114_v56 = vpop.f32.mrf.mxu3  ;;  %v2096_v1 = vadd.f32 %v2095_v55, %v2077_v37  ;;  %v2060_v10 = vadd.f32 %v2059_v2, %v8549_v5  ;;  %v6035_v14 = vor.u32 %v7799_v62, %v6032_v63  ;;  %v6419_v5 = vor.u32 %v7895_v27, %v6416_v11  ;;  %v7679_v55 = vld [vmem:[#allocation5 + $0x1ac] sm:$0xf]  ;;  %v6320_v62 = vld [vmem:[#allocation5 + $0x7d8] sm:$0xf0] }
 0x110   :  { %2466 = vmatpush.bf16.msrb.mxu2 %v5455_v43  ;;  %v6463_v43 = vor.u32 %v7913_v38, %v6462_v31  ;;  %v2078_v61 = vpop.f32.mrf.mxu1  ;;  %v6368_v31 = vld [vmem:[#allocation5 + $0x838] sm:$0xf0] }
 0x111   :  { %2485 = vmatpush.bf16.msrb.mxu3 %v5839_v4  ;;  %v5699_v4 = vor.u32 %v7715_v40, %v5696_v48  ;;  %v8574_v12 = vadd.f32 %v2114_v56, %v2096_v1  ;;  %v2613_v13 = vmax.f32 %v2060_v10, 0.0  ;;  %v2079_v16 = vadd.f32 %v2078_v61, %v8546_v58  ;;  %v7775_v58 = vld [vmem:[#allocation5 + $0x4ac] sm:$0xf]  ;;  %v7865_v10 = vld [vmem:[#allocation5 + $0x774] sm:$0xf0] }
 0x112   :  { %2429 = vmatpush.bf16.msrb.mxu0 %v5787_v19  ;;  %v8577_v19 = vld [vmem:[#allocation7] sm:$0xff]  ;;  %v5987_v40 = vor.u32 %v7787_v21, %v5984_v22  ;;  %v6371_v36 = vor.u32 %v7883_v9, %v6368_v31  ;;  %v7655_v9 = vld [vmem:[#allocation5 + $0xec] sm:$0xf] }
 0x113   :  { %2448 = vmatpush.bf16.msrb.mxu1 %v6171_v24  ;;  %v8580_v20 = vperm.slane %v8577_v19, 4  ;;  %v8582_v23 = vpack.c.bf16 %v2613_v13, %v2601_v3  ;;  %v6366_v24 = vld [vmem:[#allocation5 + $0x808] sm:$0xf]  ;;  %v2602_v63 = vmax.f32 %v8574_v12, 0.0  ;;  %v5504_v3 = vld [vmem:[#allocation5 + $0x178] sm:$0xf0] }
 0x114   :  { %2467 = vmatpush.bf16.msrb.mxu2 %v5407_v17  ;;  %v5651_v17 = vor.u32 %v7703_v8, %v5648_v34  ;;  %v6270_v8 = vld [vmem:[#allocation5 + $0x748] sm:$0xf]  ;;  %v7667_v34 = vld [vmem:[#allocation5 + $0x14c] sm:$0xf] }
 0x115   :  { %2486 = vmatpush.bf16.msrb.mxu3 %v5791_v25  ;;  %v7889_v25 = vld [vmem:[#allocation5 + $0x834] sm:$0xf0]  ;;  %v7859_v13 = vld [vmem:[#allocation5 + $0x74c] sm:$0xf]  ;;  %v5507_v28 = vor.u32 %v7667_v34, %v5504_v3 }
 0x116   :  { %2430 = vmatpush.bf16.msrb.mxu0 %v5739_v47  ;;  %v2097_v29 = vpop.f32.mrf.mxu2  ;;  %v2128_v35 = vpop.f32.mrf.mxu0  ;;  %v5936_v47 = vld [vmem:[#allocation5 + $0x4d8] sm:$0xf0] }
 0x117   :  { %2449 = vmatpush.bf16.msrb.mxu1 %v6123_v42  ;;  %v2116_v60 = vpop.f32.mrf.mxu3  ;;  %v2098_v32 = vadd.f32 %v2097_v29, %v2079_v16  ;;  %v2129_v38 = vadd.f32 %v2128_v35, %v8580_v20  ;;  %v6318_v42 = vld [vmem:[#allocation5 + $0x7a8] sm:$0xf]  ;;  %v5939_v2 = vor.u32 %v7775_v58, %v5936_v47  ;;  %v6271_v16 = vor.u32 %v7865_v10, %v6270_v8  ;;  %v7847_v35 = vld [vmem:[#allocation5 + $0x6ec] sm:$0xf]  ;;  %v5792_v58 = vld [vmem:[#allocation5 + $0x3b8] sm:$0xf0] }
 0x118   :  { %2468 = vmatpush.bf16.msrb.mxu2 %v5359_v41  ;;  %v2147_v37 = vpop.f32.mrf.mxu1  ;;  %v6367_v41 = vor.u32 %v7889_v25, %v6366_v24  ;;  %v7751_v24 = vld [vmem:[#allocation5 + $0x3ec] sm:$0xf]  ;;  %v5840_v25 = vld [vmem:[#allocation5 + $0x418] sm:$0xf0]  ;;  %v7829_v8 = vld [vmem:[#allocation5 + $0x654] sm:$0xf0] }
 0x119   :  { %2487 = vmatpush.bf16.msrb.mxu3 %v5743_v54  ;;  %v2117_v48 = vadd.f32 %v2116_v60, %v2098_v32  ;;  %v7877_v54 = vld [vmem:[#allocation5 + $0x7d4] sm:$0xf0]  ;;  %v2148_v56 = vadd.f32 %v2147_v37, %v2129_v38  ;;  %2431 = vmatmul.bf16.vlgmr.msrb.gmra.mxu0 %v8426_v51  ;;  %v6222_v60 = vld [vmem:[#allocation5 + $0x6e8] sm:$0xf]  ;;  %v5456_v32 = vld [vmem:[#allocation5 + $0x118] sm:$0xf0]  ;;  %v5843_v38 = vor.u32 %v7751_v24, %v5840_v25 }
 0x11a   :  { %2499 = vmatpush.bf16.msra.mxu0 %v6463_v43  ;;  %2450 = vmatmul.bf16.vlgmr.msrb.gmra.mxu1 %v8428_v52  ;;  %v7871_v43 = vld [vmem:[#allocation5 + $0x7ac] sm:$0xf]  ;;  %v6319_v61 = vor.u32 %v7877_v54, %v6318_v42  ;;  %v6224_v37 = vld [vmem:[#allocation5 + $0x718] sm:$0xf0]  ;;  %v5459_v47 = vor.u32 %v7655_v9, %v5456_v32  ;;  %v7960_v25 = vld [vmem:[#allocation8 + $0x170] sm:$0xf0] }
 0x11b   :  { %2518 = vmatpush.bf16.msra.mxu1 %v5699_v4  ;;  %v2614_v1 = vmax.f32 %v2117_v48, 0.0  ;;  %2469 = vmatmul.bf16.vlgmr.msrb.gmra.mxu2 %v8424_v46  ;;  %v7763_v4 = vld [vmem:[#allocation5 + $0x44c] sm:$0xf]  ;;  %v6323_v0 = vor.u32 %v7871_v43, %v6320_v62  ;;  %v6227_v48 = vor.u32 %v7847_v35, %v6224_v37  ;;  %v6176_v43 = vld [vmem:[#allocation5 + $0x6b8] sm:$0xf0] }
 0x11c   :  { %2537 = vmatpush.bf16.msra.mxu2 %v6083_v50  ;;  %v5552_v50 = vld [vmem:[#allocation5 + $0x1d8] sm:$0xf0]  ;;  %2488 = vmatmul.bf16.vlgmr.msrb.gmra.mxu3 %v8426_v51  ;;  %v7643_v42 = vld [vmem:[#allocation5 + $0x8c] sm:$0xf]  ;;  %v6842_v9 = vld [vmem:[#allocation8 + $0x2e8] sm:$0xf] }
 0x11d   :  { %2556 = vmatpush.bf16.msra.mxu3 %v6467_v6  ;;  %v5888_v6 = vld [vmem:[#allocation5 + $0x478] sm:$0xf0]  ;;  %v5555_v7 = vor.u32 %v7679_v55, %v5552_v50  ;;  %v8591_v27 = vpack.c.bf16 %v2614_v1, %v2602_v63  ;;  %v7835_v50 = vld [vmem:[#allocation5 + $0x68c] sm:$0xf] }
 0x11e   :  { %2500 = vmatpush.bf16.msra.mxu0 %v6415_v15  ;;  %v2166_v11 = vpop.f32.mrf.mxu2  ;;  %v5891_v22 = vor.u32 %v7763_v4, %v5888_v6  ;;  %v7631_v10 = vld [vmem:[#allocation5 + $0x2c] sm:$0xf] }
 0x11f   :  { %2519 = vmatpush.bf16.msra.mxu1 %v5651_v17  ;;  %9075 = vst [vmem:[#allocation16_spill] sm:$0xff] %v8591_v27  ;;  %v8593_v12 = vpop.f32.mrf.mxu3  ;;  %v8595_v15 = vadd.f32 %v2166_v11, %v2148_v56  ;;  %v2130_v17 = vpop.f32.mrf.mxu0  ;;  %v5408_v56 = vld [vmem:[#allocation5 + $0xb8] sm:$0xf0] }
 0x120   :  { %2538 = vmatpush.bf16.msra.mxu2 %v6035_v14  ;;  %v6272_v14 = vld [vmem:[#allocation5 + $0x778] sm:$0xf0]  ;;  %v2131_v21 = vadd.f32 %v2130_v17, %v8580_v20  ;;  %v5411_v3 = vor.u32 %v7643_v42, %v5408_v56  ;;  %v7823_v17 = vld [vmem:[#allocation5 + $0x62c] sm:$0xf] }
 0x121   :  { %2557 = vmatpush.bf16.msra.mxu3 %v6419_v5  ;;  %v2149_v5 = vpop.f32.mrf.mxu1  ;;  %v6275_v29 = vor.u32 %v7859_v13, %v6272_v14  ;;  %v2579_v34 = vmax.f32 %v8595_v15, 0.0  ;;  %v6179_v13 = vor.u32 %v7835_v50, %v6176_v43  ;;  %v5360_v14 = vld [vmem:[#allocation5 + $0x58] sm:$0xf0]  ;;  %v6650_v15 = vld [vmem:[#allocation8 + $0x168] sm:$0xf] }
 0x122   :  { %2501 = vmatpush.bf16.msra.mxu0 %v6367_v41  ;;  %v2150_v31 = vadd.f32 %v2149_v5, %v2131_v21  ;;  %v7739_v41 = vld [vmem:[#allocation5 + $0x38c] sm:$0xf]  ;;  %v6128_v21 = vld [vmem:[#allocation5 + $0x658] sm:$0xf0]  ;;  %v5363_v32 = vor.u32 %v7631_v10, %v5360_v14  ;;  %v7957_v50 = vld [vmem:[#allocation8 + $0x158] sm:$0xf0] }
 0x123   :  { %2520 = vmatpush.bf16.msra.mxu1 %v5603_v49  ;;  %v6174_v49 = vld [vmem:[#allocation5 + $0x688] sm:$0xf]  ;;  %v5795_v6 = vor.u32 %v7739_v41, %v5792_v58  ;;  %v6131_v35 = vor.u32 %v7823_v17, %v6128_v21  ;;  %v6651_v41 = vor.u32 %v7960_v25, %v6650_v15  ;;  %v6542_v58 = vld [vmem:[#allocation8 + $0x90] sm:$0xf]  ;;  %v7930_v10 = vld [vmem:[#allocation8 + $0x80] sm:$0xf0] }
 0x124   :  { %2539 = vmatpush.bf16.msra.mxu2 %v5987_v40  ;;  %v6223_v40 = vor.u32 %v7853_v30, %v6222_v60  ;;  %v7984_v30 = vld [vmem:[#allocation8 + $0x230] sm:$0xf0]  ;;  %v6638_v56 = vld [vmem:[#allocation8 + $0x150] sm:$0xf]  ;;  %v7978_v17 = vld [vmem:[#allocation8 + $0x200] sm:$0xf0] }
 0x125   :  { %2558 = vmatpush.bf16.msra.mxu3 %v6371_v36  ;;  %v7841_v36 = vld [vmem:[#allocation5 + $0x6b4] sm:$0xf0]  ;;  %v6734_v43 = vld [vmem:[#allocation8 + $0x210] sm:$0xf]  ;;  %v8002_v21 = vld [vmem:[#allocation8 + $0x2c0] sm:$0xf0] }
 0x126   :  { %2502 = vmatpush.bf16.msra.mxu0 %v6319_v61  ;;  %v2168_v54 = vpop.f32.mrf.mxu2  ;;  %v5744_v61 = vld [vmem:[#allocation5 + $0x358] sm:$0xf0] }
 0x127   :  { %2521 = vmatpush.bf16.msra.mxu1 %v5555_v7  ;;  %v8598_v55 = vpop.f32.mrf.mxu3  ;;  %v2169_v62 = vadd.f32 %v2168_v54, %v2150_v31  ;;  %v2133_v63 = vpop.f32.mrf.mxu0  ;;  %v6175_v7 = vor.u32 %v7841_v36, %v6174_v49  ;;  %v8008_v31 = vld [vmem:[#allocation8 + $0x2f0] sm:$0xf0] }
 0x128   :  { %2540 = vmatpush.bf16.msra.mxu2 %v5939_v2  ;;  %v7727_v2 = vld [vmem:[#allocation5 + $0x32c] sm:$0xf]  ;;  %v2134_v4 = vadd.f32 %v2133_v63, %v8580_v20  ;;  %v6843_v54 = vor.u32 %v8008_v31, %v6842_v9  ;;  %v7981_v63 = vld [vmem:[#allocation8 + $0x218] sm:$0xf0] }
 0x129   :  { %2559 = vmatpush.bf16.msra.mxu3 %v6323_v0  ;;  %v2152_v1 = vpop.f32.mrf.mxu1  ;;  %v6126_v0 = vld [vmem:[#allocation5 + $0x628] sm:$0xf]  ;;  %v2591_v11 = vmax.f32 %v2169_v62, 0.0  ;;  %2436 = vmatmul.bf16.gmra.mxu0 %v8436_v44 }
 0x12a   :  { %2503 = vmatpush.bf16.msra.mxu0 %v6271_v16  ;;  %v2153_v5 = vadd.f32 %v2152_v1, %v2134_v4  ;;  %2455 = vmatmul.bf16.gmra.mxu1 %v8438_v45  ;;  %v7936_v16 = vld [vmem:[#allocation8 + $0xb0] sm:$0xf0]  ;;  %v6127_v60 = vor.u32 %v7829_v8, %v6126_v0  ;;  %v6830_v1 = vld [vmem:[#allocation8 + $0x2d0] sm:$0xf]  ;;  %v8614_v8 = vperm.slane %v8577_v19, 5 }
 0x12b   :  { %2522 = vmatpush.bf16.msra.mxu1 %v5507_v28  ;;  %v8604_v24 = vpack.c.bf16 %v2591_v11, %v2579_v34  ;;  %2474 = vmatmul.bf16.gmra.mxu2 %v8434_v39  ;;  %v6746_v28 = vld [vmem:[#allocation8 + $0x228] sm:$0xf]  ;;  %v6626_v34 = vld [vmem:[#allocation8 + $0x138] sm:$0xf]  ;;  %v7954_v11 = vld [vmem:[#allocation8 + $0x140] sm:$0xf0] }
 0x12c   :  { %2541 = vmatpush.bf16.msra.mxu2 %v5891_v22  ;;  %v6554_v22 = vld [vmem:[#allocation8 + $0xa8] sm:$0xf]  ;;  %2493 = vmatmul.bf16.gmra.mxu3 %v8436_v44  ;;  %v6747_v42 = vor.u32 %v7984_v30, %v6746_v28  ;;  %v6627_v28 = vor.u32 %v7954_v11, %v6626_v34  ;;  %v6614_v30 = vld [vmem:[#allocation8 + $0x120] sm:$0xf]  ;;  %v6494_v11 = vld [vmem:[#allocation8 + $0x30] sm:$0xf] }
 0x12d   :  { %2560 = vmatpush.bf16.msra.mxu3 %v6275_v29  ;;  %v5747_v29 = vor.u32 %v7727_v2, %v5744_v61  ;;  %v8005_v2 = vld [vmem:[#allocation8 + $0x2d8] sm:$0xf0] }
 0x12e   :  { %2504 = vmatpush.bf16.msra.mxu0 %v6223_v40  ;;  %v2171_v37 = vpop.f32.mrf.mxu2  ;;  %v6555_v40 = vor.u32 %v7936_v16, %v6554_v22  ;;  %v6831_v0 = vor.u32 %v8005_v2, %v6830_v1  ;;  %v7972_v2 = vld [vmem:[#allocation8 + $0x1d0] sm:$0xf0] }
 0x12f   :  { %2523 = vmatpush.bf16.msra.mxu1 %v5459_v47  ;;  %v7933_v47 = vld [vmem:[#allocation8 + $0x98] sm:$0xf0]  ;;  %v2135_v49 = vpop.f32.mrf.mxu0 }
 0x130   :  { %2542 = vmatpush.bf16.msra.mxu2 %v5843_v38  ;;  %v8608_v38 = vpop.f32.mrf.mxu3  ;;  %v2136_v62 = vadd.f32 %v2135_v49, %v8580_v20  ;;  %v6543_v4 = vor.u32 %v7933_v47, %v6542_v58  ;;  %v6530_v20 = vld [vmem:[#allocation8 + $0x78] sm:$0xf]  ;;  %v7975_v58 = vld [vmem:[#allocation8 + $0x1e8] sm:$0xf0]  ;;  %v6806_v47 = vld [vmem:[#allocation8 + $0x2a0] sm:$0xf] }
 0x131   :  { %2561 = vmatpush.bf16.msra.mxu3 %v6227_v48  ;;  %v8610_v48 = vadd.f32 %v2171_v37, %v2153_v5  ;;  %v2154_v36 = vpop.f32.mrf.mxu1  ;;  %v6818_v5 = vld [vmem:[#allocation8 + $0x2b8] sm:$0xf]  ;;  %v6531_v25 = vor.u32 %v7930_v10, %v6530_v20  ;;  %v7951_v37 = vld [vmem:[#allocation8 + $0x128] sm:$0xf0] }
 0x132   :  { %2505 = vmatpush.bf16.msra.mxu0 %v6175_v7  ;;  %v2155_v61 = vadd.f32 %v2154_v36, %v2136_v62  ;;  %v6735_v7 = vor.u32 %v7981_v63, %v6734_v43  ;;  %v7999_v49 = vld [vmem:[#allocation8 + $0x2a8] sm:$0xf0]  ;;  %v6602_v43 = vld [vmem:[#allocation8 + $0x108] sm:$0xf]  ;;  %v7948_v62 = vld [vmem:[#allocation8 + $0x110] sm:$0xf0] }
 0x133   :  { %2524 = vmatpush.bf16.msra.mxu1 %v5411_v3  ;;  %v6722_v3 = vld [vmem:[#allocation8 + $0x1f8] sm:$0xf]  ;;  %v2603_v9 = vmax.f32 %v8610_v48, 0.0  ;;  %v6698_v63 = vld [vmem:[#allocation8 + $0x1c8] sm:$0xf]  ;;  %v6603_v34 = vor.u32 %v7948_v62, %v6602_v43 }
 0x134   :  { %2543 = vmatpush.bf16.msra.mxu2 %v5795_v6  ;;  %v6639_v6 = vor.u32 %v7957_v50, %v6638_v56  ;;  %v6506_v56 = vld [vmem:[#allocation8 + $0x48] sm:$0xf]  ;;  %v7915_v62 = vld [vmem:[#allocation8 + $0x8] sm:$0xf0] }
 0x135   :  { %2562 = vmatpush.bf16.msra.mxu3 %v6179_v13 }
 0x136   :  { %2506 = vmatpush.bf16.msra.mxu0 %v6127_v60  ;;  %v2173_v13 = vpop.f32.mrf.mxu2  ;;  %v7927_v60 = vld [vmem:[#allocation8 + $0x68] sm:$0xf0] }
 0x137   :  { %2525 = vmatpush.bf16.msra.mxu1 %v5363_v32  ;;  %v2174_v22 = vadd.f32 %v2173_v13, %v2155_v61  ;;  %v2204_v16 = vpop.f32.mrf.mxu0  ;;  %v6723_v32 = vor.u32 %v7978_v17, %v6722_v3  ;;  %v6794_v61 = vld [vmem:[#allocation8 + $0x288] sm:$0xf]  ;;  %v7921_v3 = vld [vmem:[#allocation8 + $0x38] sm:$0xf0]  ;;  %v6590_v17 = vld [vmem:[#allocation8 + $0xf0] sm:$0xf] }
 0x138   :  { %2544 = vmatpush.bf16.msra.mxu2 %v5747_v29  ;;  %v8616_v14 = vpop.f32.mrf.mxu3  ;;  %v6518_v29 = vld [vmem:[#allocation8 + $0x60] sm:$0xf] }
 0x139   :  { %2563 = vmatpush.bf16.msra.mxu3 %v6131_v35  ;;  %v2223_v15 = vpop.f32.mrf.mxu1  ;;  %v2615_v31 = vmax.f32 %v2174_v22, 0.0  ;;  %v6819_v35 = vor.u32 %v8002_v21, %v6818_v5  ;;  %2507 = vmatmul.bf16.vlgmr.msra.gmra.mxu0 %v8428_v52  ;;  %v7945_v5 = vld [vmem:[#allocation8 + $0xf8] sm:$0xf0]  ;;  %v6686_v21 = vld [vmem:[#allocation8 + $0x1b0] sm:$0xf] }
 0x13a   :  { %4575 = vmatpush.bf16.msrb.mxu0 %v6555_v40  ;;  %v6710_v40 = vld [vmem:[#allocation8 + $0x1e0] sm:$0xf]  ;;  %2526 = vmatmul.bf16.vlgmr.msra.gmra.mxu1 %v8424_v46  ;;  %v6807_v46 = vor.u32 %v7999_v49, %v6806_v47 }
 0x13b   :  { %4594 = vmatpush.bf16.msrb.mxu1 %v6651_v41  ;;  %v2186_v41 = vadd.f32 %v8593_v12, %v8614_v8  ;;  %2545 = vmatmul.bf16.vlgmr.msra.gmra.mxu2 %v8426_v51  ;;  %v8625_v48 = vpack.c.bf16 %v2615_v31, %v2603_v9  ;;  %v7924_v12 = vld [vmem:[#allocation8 + $0x50] sm:$0xf0]  ;;  %v6711_v50 = vor.u32 %v7975_v58, %v6710_v40  ;;  %v6482_v9 = vld [vmem:[#allocation8 + $0x18] sm:$0xf]  ;;  %v7918_v31 = vld [vmem:[#allocation8 + $0x20] sm:$0xf0] }
 0x13c   :  { %4613 = vmatpush.bf16.msrb.mxu2 %v6747_v42  ;;  %2564 = vmatmul.bf16.vlgmr.msra.gmra.mxu3 %v8428_v52  ;;  %v6519_v42 = vor.u32 %v7927_v60, %v6518_v29  ;;  %v2188_v51 = vadd.f32 %v8598_v55, %v8614_v8  ;;  %v6699_v55 = vor.u32 %v7972_v2, %v6698_v63  ;;  %v7942_v40 = vld [vmem:[#allocation8 + $0xe0] sm:$0xf0]  ;;  %v6566_v63 = vld [vmem:[#allocation8 + $0xc0] sm:$0xf] }
 0x13d   :  { %4632 = vmatpush.bf16.msrb.mxu3 %v6843_v54  ;;  %v2205_v36 = vadd.f32 %v2204_v16, %v2186_v41  ;;  %v6615_v54 = vor.u32 %v7951_v37, %v6614_v30  ;;  %v7969_v16 = vld [vmem:[#allocation8 + $0x1b8] sm:$0xf0]  ;;  %v6591_v30 = vor.u32 %v7945_v5, %v6590_v17  ;;  %v6578_v37 = vld [vmem:[#allocation8 + $0xd8] sm:$0xf] }
 0x13e   :  { %4576 = vmatpush.bf16.msrb.mxu0 %v6543_v4  ;;  %v8629_v52 = vpop.f32.mrf.mxu2  ;;  %v7996_v4 = vld [vmem:[#allocation8 + $0x290] sm:$0xf0]  ;;  %v6674_v41 = vld [vmem:[#allocation8 + $0x198] sm:$0xf]  ;;  %v6579_v43 = vor.u32 %v7942_v40, %v6578_v37  ;;  %v8053_v37 = vld [vmem:[#allocation8 + $0x458] sm:$0xf0] }
 0x13f   :  { %4595 = vmatpush.bf16.msrb.mxu1 %v6639_v6  ;;  %v2206_v6 = vpop.f32.mrf.mxu0  ;;  %v2224_v20 = vadd.f32 %v2223_v15, %v2205_v36  ;;  %v6795_v13 = vor.u32 %v7996_v4, %v6794_v61  ;;  %v6495_v15 = vor.u32 %v7921_v3, %v6494_v11  ;;  %v7966_v36 = vld [vmem:[#allocation8 + $0x1a0] sm:$0xf0]  ;;  %v6662_v4 = vld [vmem:[#allocation8 + $0x180] sm:$0xf]  ;;  %v7034_v11 = vld [vmem:[#allocation8 + $0x468] sm:$0xf] }
 0x140   :  { %4614 = vmatpush.bf16.msrb.mxu2 %v6735_v7  ;;  %v8631_v1 = vpop.f32.mrf.mxu3  ;;  %v2207_v10 = vadd.f32 %v2206_v6, %v2188_v51  ;;  %v7939_v51 = vld [vmem:[#allocation8 + $0xc8] sm:$0xf0]  ;;  %v6675_v2 = vor.u32 %v7966_v36, %v6674_v41  ;;  %v8056_v3 = vld [vmem:[#allocation8 + $0x470] sm:$0xf0]  ;;  %v7118_v40 = vld [vmem:[#allocation8 + $0x510] sm:$0xf] }
 0x141   :  { %4633 = vmatpush.bf16.msrb.mxu3 %v6831_v0  ;;  %v2225_v7 = vpop.f32.mrf.mxu1  ;;  %v6507_v0 = vor.u32 %v7924_v12, %v6506_v56  ;;  %v2580_v29 = vmax.f32 %v2224_v20, 0.0  ;;  %v7963_v6 = vld [vmem:[#allocation8 + $0x188] sm:$0xf0]  ;;  %v6567_v5 = vor.u32 %v7939_v51, %v6566_v63  ;;  %v8026_v51 = vld [vmem:[#allocation8 + $0x380] sm:$0xf0] }
 0x142   :  { %4577 = vmatpush.bf16.msrb.mxu0 %v6531_v25  ;;  %v2226_v22 = vadd.f32 %v2225_v7, %v2207_v10  ;;  %v6782_v25 = vld [vmem:[#allocation8 + $0x270] sm:$0xf]  ;;  %v6758_v7 = vld [vmem:[#allocation8 + $0x240] sm:$0xf]  ;;  %v7987_v20 = vld [vmem:[#allocation8 + $0x248] sm:$0xf0] }
 0x143   :  { %4596 = vmatpush.bf16.msrb.mxu1 %v6627_v28  ;;  %v7993_v28 = vld [vmem:[#allocation8 + $0x278] sm:$0xf0]  ;;  %v6938_v10 = vld [vmem:[#allocation8 + $0x3a8] sm:$0xf] }
 0x144   :  { %4615 = vmatpush.bf16.msrb.mxu2 %v6723_v32  ;;  %v2592_v60 = vmax.f32 %v2226_v22, 0.0  ;;  %v6687_v32 = vor.u32 %v7969_v16, %v6686_v21  ;;  %v7226_v21 = vld [vmem:[#allocation8 + $0x5e8] sm:$0xf]  ;;  %v8104_v22 = vld [vmem:[#allocation8 + $0x5f0] sm:$0xf0]  ;;  %v6759_v16 = vor.u32 %v7987_v20, %v6758_v7 }
 0x145   :  { %4634 = vmatpush.bf16.msrb.mxu3 %v6819_v35  ;;  %v6783_v35 = vor.u32 %v7993_v28, %v6782_v25  ;;  %v7202_v20 = vld [vmem:[#allocation8 + $0x5b8] sm:$0xf] }
 0x146   :  { %4578 = vmatpush.bf16.msrb.mxu0 %v6519_v42  ;;  %v8633_v58 = vpack.c.bf16 %v2592_v60, %v2580_v29  ;;  %v8635_v47 = vpop.f32.mrf.mxu2  ;;  %v6770_v42 = vld [vmem:[#allocation8 + $0x258] sm:$0xf]  ;;  %v7035_v29 = vor.u32 %v8056_v3, %v7034_v11  ;;  %v6926_v60 = vld [vmem:[#allocation8 + $0x390] sm:$0xf] }
 0x147   :  { %4597 = vmatpush.bf16.msrb.mxu1 %v6615_v54  ;;  %v7990_v54 = vld [vmem:[#allocation8 + $0x260] sm:$0xf0]  ;;  %v2209_v56 = vpop.f32.mrf.mxu0 }
 0x148   :  { %4616 = vmatpush.bf16.msrb.mxu2 %v6711_v50  ;;  %v8637_v49 = vpop.f32.mrf.mxu3  ;;  %v6470_v50 = vld [vmem:[#allocation8] sm:$0xf]  ;;  %v6771_v61 = vor.u32 %v7990_v54, %v6770_v42  ;;  %v8101_v42 = vld [vmem:[#allocation8 + $0x5d8] sm:$0xf0] }
 0x149   :  { %4635 = vmatpush.bf16.msrb.mxu3 %v6807_v46  ;;  %v2228_v12 = vpop.f32.mrf.mxu1  ;;  %v6483_v46 = vor.u32 %v7918_v31, %v6482_v9  ;;  %2512 = vmatmul.bf16.gmra.mxu0 %v8438_v45  ;;  %v6471_v17 = vor.u32 %v7915_v62, %v6470_v50 }
 0x14a   :  { %4579 = vmatpush.bf16.msrb.mxu0 %v6507_v0  ;;  %v2191_v0 = vadd.f32 %v8608_v38, %v8614_v8  ;;  %2531 = vmatmul.bf16.gmra.mxu1 %v8434_v39  ;;  %v8080_v38 = vld [vmem:[#allocation8 + $0x530] sm:$0xf0]  ;;  %v6663_v39 = vor.u32 %v7963_v6, %v6662_v4  ;;  %v7106_v4 = vld [vmem:[#allocation8 + $0x4f8] sm:$0xf] }
 0x14b   :  { %4598 = vmatpush.bf16.msrb.mxu1 %v6603_v34  ;;  %v8032_v34 = vld [vmem:[#allocation8 + $0x3b0] sm:$0xf0]  ;;  %2550 = vmatmul.bf16.gmra.mxu2 %v8436_v44  ;;  %v2193_v44 = vadd.f32 %v8616_v14, %v8614_v8  ;;  %v8077_v8 = vld [vmem:[#allocation8 + $0x518] sm:$0xf0]  ;;  %v7214_v14 = vld [vmem:[#allocation8 + $0x5d0] sm:$0xf] }
 0x14c   :  { %4617 = vmatpush.bf16.msrb.mxu2 %v6699_v55  ;;  %2569 = vmatmul.bf16.gmra.mxu3 %v8438_v45  ;;  %v7130_v55 = vld [vmem:[#allocation8 + $0x528] sm:$0xf]  ;;  %v6939_v28 = vor.u32 %v8032_v34, %v6938_v10  ;;  %v8098_v10 = vld [vmem:[#allocation8 + $0x5c0] sm:$0xf0] }
 0x14d   :  { %4636 = vmatpush.bf16.msrb.mxu3 %v6795_v13  ;;  %v2210_v13 = vadd.f32 %v2209_v56, %v2191_v0  ;;  %v7131_v31 = vor.u32 %v8080_v38, %v7130_v55  ;;  %v8074_v0 = vld [vmem:[#allocation8 + $0x500] sm:$0xf0] }
 0x14e   :  { %4580 = vmatpush.bf16.msrb.mxu0 %v6495_v15  ;;  %v8647_v25 = vpop.f32.mrf.mxu2  ;;  %v8029_v15 = vld [vmem:[#allocation8 + $0x398] sm:$0xf0]  ;;  %v7107_v38 = vor.u32 %v8074_v0, %v7106_v4  ;;  %v7166_v0 = vld [vmem:[#allocation8 + $0x570] sm:$0xf] }
 0x14f   :  { %4599 = vmatpush.bf16.msrb.mxu1 %v6591_v30  ;;  %v2211_v30 = vpop.f32.mrf.mxu0  ;;  %v2229_v41 = vadd.f32 %v2228_v12, %v2210_v13  ;;  %v6927_v56 = vor.u32 %v8029_v15, %v6926_v60  ;;  %v6914_v12 = vld [vmem:[#allocation8 + $0x378] sm:$0xf]  ;;  %v8065_v4 = vld [vmem:[#allocation8 + $0x4b8] sm:$0xf0] }
 0x150   :  { %4618 = vmatpush.bf16.msrb.mxu2 %v6687_v32  ;;  %v8649_v45 = vpop.f32.mrf.mxu3  ;;  %v7227_v32 = vor.u32 %v8104_v22, %v7226_v21  ;;  %v2212_v36 = vadd.f32 %v2211_v30, %v2193_v44  ;;  %v6915_v55 = vor.u32 %v8026_v51, %v6914_v12  ;;  %v7203_v21 = vor.u32 %v8098_v10, %v7202_v20  ;;  %v6998_v22 = vld [vmem:[#allocation8 + $0x420] sm:$0xf]  ;;  %v8071_v44 = vld [vmem:[#allocation8 + $0x4e8] sm:$0xf0]  ;;  %v6890_v30 = vld [vmem:[#allocation8 + $0x348] sm:$0xf] }
 0x151   :  { %4637 = vmatpush.bf16.msrb.mxu3 %v6783_v35  ;;  %v2230_v9 = vpop.f32.mrf.mxu1  ;;  %v7022_v35 = vld [vmem:[#allocation8 + $0x450] sm:$0xf]  ;;  %v2604_v62 = vmax.f32 %v2229_v41, 0.0  ;;  %v8089_v20 = vld [vmem:[#allocation8 + $0x578] sm:$0xf0] }
 0x152   :  { %4581 = vmatpush.bf16.msrb.mxu0 %v6483_v46  ;;  %v2231_v54 = vadd.f32 %v2230_v9, %v2212_v36  ;;  %v7023_v50 = vor.u32 %v8053_v37, %v7022_v35  ;;  %v7119_v46 = vor.u32 %v8077_v8, %v7118_v40  ;;  %v8020_v9 = vld [vmem:[#allocation8 + $0x350] sm:$0xf0]  ;;  %v6986_v35 = vld [vmem:[#allocation8 + $0x408] sm:$0xf]  ;;  %v6974_v51 = vld [vmem:[#allocation8 + $0x3f0] sm:$0xf] }
 0x153   :  { %4600 = vmatpush.bf16.msrb.mxu1 %v6579_v43  ;;  %v7215_v43 = vor.u32 %v8101_v42, %v7214_v14  ;;  %v8044_v37 = vld [vmem:[#allocation8 + $0x410] sm:$0xf0]  ;;  %v7082_v40 = vld [vmem:[#allocation8 + $0x4c8] sm:$0xf] }
 0x154   :  { %4619 = vmatpush.bf16.msrb.mxu2 %v6675_v2  ;;  %v2616_v63 = vmax.f32 %v2231_v54, 0.0  ;;  %v7010_v2 = vld [vmem:[#allocation8 + $0x438] sm:$0xf]  ;;  %v8068_v8 = vld [vmem:[#allocation8 + $0x4d0] sm:$0xf0] }
 0x155   :  { %4638 = vmatpush.bf16.msrb.mxu3 %v6771_v61  ;;  %v8050_v61 = vld [vmem:[#allocation8 + $0x440] sm:$0xf0]  ;;  %v7178_v14 = vld [vmem:[#allocation8 + $0x588] sm:$0xf]  ;;  %v8092_v42 = vld [vmem:[#allocation8 + $0x590] sm:$0xf0] }
 0x156   :  { %4582 = vmatpush.bf16.msrb.mxu0 %v6471_v17  ;;  %v8651_v6 = vpop.f32.mrf.mxu2  ;;  %v8655_v34 = vpack.c.bf16 %v2616_v63, %v2604_v62  ;;  %v7011_v13 = vor.u32 %v8050_v61, %v7010_v2  ;;  %v6902_v17 = vld [vmem:[#allocation8 + $0x360] sm:$0xf]  ;;  %v8017_v62 = vld [vmem:[#allocation8 + $0x338] sm:$0xf0]  ;;  %v7083_v63 = vor.u32 %v8068_v8, %v7082_v40  ;;  %v7179_v12 = vor.u32 %v8092_v42, %v7178_v14  ;;  %v7070_v61 = vld [vmem:[#allocation8 + $0x4b0] sm:$0xf] }
 0x157   :  { %4601 = vmatpush.bf16.msrb.mxu1 %v6567_v5  ;;  %v8657_v11 = vpop.f32.mrf.mxu0  ;;  %v8023_v5 = vld [vmem:[#allocation8 + $0x368] sm:$0xf0]  ;;  %v8041_v2 = vld [vmem:[#allocation8 + $0x3f8] sm:$0xf0]  ;;  %v6950_v8 = vld [vmem:[#allocation8 + $0x3c0] sm:$0xf] }
 0x158   :  { %4620 = vmatpush.bf16.msrb.mxu2 %v6663_v39  ;;  %v8653_v7 = vpop.f32.mrf.mxu3  ;;  %v8047_v39 = vld [vmem:[#allocation8 + $0x428] sm:$0xf0]  ;;  %v6903_v60 = vor.u32 %v8023_v5, %v6902_v17  ;;  %v8014_v17 = vld [vmem:[#allocation8 + $0x320] sm:$0xf0]  ;;  %v7071_v5 = vor.u32 %v8065_v4, %v7070_v61  ;;  %v8128_v61 = vld [vmem:[#allocation8 + $0x6b0] sm:$0xf0] }
 0x159   :  { %4639 = vmatpush.bf16.msrb.mxu3 %v6759_v16  ;;  %v8659_v3 = vpop.f32.mrf.mxu1  ;;  %v7094_v16 = vld [vmem:[#allocation8 + $0x4e0] sm:$0xf]  ;;  %4583 = vmatmul.bf16.vlgmr.msrb.gmra.mxu0 %v8487_v18  ;;  %v6999_v15 = vor.u32 %v8047_v39, %v6998_v22  ;;  %v8038_v22 = vld [vmem:[#allocation8 + $0x3e0] sm:$0xf0]  ;;  %v7058_v39 = vld [vmem:[#allocation8 + $0x498] sm:$0xf] }
 0x15a   :  { %4651 = vmatpush.bf16.msra.mxu0 %v6939_v28  ;;  %4602 = vmatmul.bf16.vlgmr.msrb.gmra.mxu1 %v8525_v26  ;;  %v7190_v28 = vld [vmem:[#allocation8 + $0x5a0] sm:$0xf]  ;;  %v8011_v40 = vld [vmem:[#allocation8 + $0x308] sm:$0xf0]  ;;  %v7418_v4 = vld [vmem:[#allocation8 + $0x768] sm:$0xf] }
 0x15b   :  { %4670 = vmatpush.bf16.msra.mxu1 %v7035_v29  ;;  %v8095_v29 = vld [vmem:[#allocation8 + $0x5a8] sm:$0xf0]  ;;  %4621 = vmatmul.bf16.vlgmr.msrb.gmra.mxu2 %v8559_v57 }
 0x15c   :  { %4689 = vmatpush.bf16.msra.mxu2 %v7131_v31  ;;  %4640 = vmatmul.bf16.vlgmr.msrb.gmra.mxu3 %v8571_v53  ;;  %v7095_v31 = vor.u32 %v8071_v44, %v7094_v16 }
 0x15d   :  { %4708 = vmatpush.bf16.msra.mxu3 %v7227_v32  ;;  %v7191_v32 = vor.u32 %v8095_v29, %v7190_v28  ;;  %v8062_v28 = vld [vmem:[#allocation8 + $0x4a0] sm:$0xf0]  ;;  %v7154_v29 = vld [vmem:[#allocation8 + $0x558] sm:$0xf] }
 0x15e   :  { %4652 = vmatpush.bf16.msra.mxu0 %v6927_v56  ;;  %v8665_v41 = vpop.f32.mrf.mxu2  ;;  %v7059_v14 = vor.u32 %v8062_v28, %v7058_v39 }
 0x15f   :  { %4671 = vmatpush.bf16.msra.mxu1 %v7023_v50  ;;  %v8669_v54 = vpop.f32.mrf.mxu0  ;;  %v6891_v50 = vor.u32 %v8020_v9, %v6890_v30  ;;  %v8675_v30 = vperm.slane %v8577_v19, 7 }
 0x160   :  { %4690 = vmatpush.bf16.msra.mxu2 %v7119_v46  ;;  %v8667_v36 = vpop.f32.mrf.mxu3  ;;  %v6987_v46 = vor.u32 %v8044_v37, %v6986_v35  ;;  %v6854_v37 = vld [vmem:[#allocation8 + $0x300] sm:$0xf] }
 0x161   :  { %4709 = vmatpush.bf16.msra.mxu3 %v7215_v43  ;;  %v2301_v56 = vpop.f32.mrf.mxu1  ;;  %v6878_v43 = vld [vmem:[#allocation8 + $0x330] sm:$0xf] }
 0x162   :  { %4653 = vmatpush.bf16.msra.mxu0 %v6915_v55  ;;  %v6879_v10 = vor.u32 %v8017_v62, %v6878_v43  ;;  %v6975_v55 = vor.u32 %v8041_v2, %v6974_v51  ;;  %v8059_v43 = vld [vmem:[#allocation8 + $0x488] sm:$0xf0]  ;;  %v2300_v51 = vadd.f32 %v8659_v3, %v8675_v30  ;;  %v2302_v2 = vadd.f32 %v2301_v56, %v8675_v30 }
 0x163   :  { %4672 = vmatpush.bf16.msra.mxu1 %v7011_v13  ;;  %v6866_v13 = vld [vmem:[#allocation8 + $0x318] sm:$0xf]  ;;  %v8083_v62 = vld [vmem:[#allocation8 + $0x548] sm:$0xf0] }
 0x164   :  { %4691 = vmatpush.bf16.msra.mxu2 %v7107_v38  ;;  %v7167_v38 = vor.u32 %v8089_v20, %v7166_v0  ;;  %v8152_v0 = vld [vmem:[#allocation8 + $0x770] sm:$0xf0] }
 0x165   :  { %4710 = vmatpush.bf16.msra.mxu3 %v7203_v21  ;;  %v6962_v21 = vld [vmem:[#allocation8 + $0x3d8] sm:$0xf] }
 0x166   :  { %4654 = vmatpush.bf16.msra.mxu0 %v6903_v60  ;;  %v2320_v16 = vpop.f32.mrf.mxu2  ;;  %v8086_v60 = vld [vmem:[#allocation8 + $0x560] sm:$0xf0]  ;;  %v6963_v35 = vor.u32 %v8038_v22, %v6962_v21  ;;  %v7419_v21 = vor.u32 %v8152_v0, %v7418_v4  ;;  %v8119_v4 = vld [vmem:[#allocation8 + $0x668] sm:$0xf0]  ;;  %v7382_v0 = vld [vmem:[#allocation8 + $0x720] sm:$0xf] }
 0x167   :  { %4673 = vmatpush.bf16.msra.mxu1 %v6999_v15  ;;  %v8672_v15 = vperm.slane %v8577_v19, 6  ;;  %v8677_v9 = vpop.f32.mrf.mxu0  ;;  %v7155_v42 = vor.u32 %v8086_v60, %v7154_v29  ;;  %v7142_v19 = vld [vmem:[#allocation8 + $0x540] sm:$0xf]  ;;  %v8125_v29 = vld [vmem:[#allocation8 + $0x698] sm:$0xf0] }
 0x168   :  { %4692 = vmatpush.bf16.msra.mxu2 %v7095_v31  ;;  %v2339_v44 = vpop.f32.mrf.mxu3  ;;  %v8149_v60 = vld [vmem:[#allocation8 + $0x758] sm:$0xf0] }
 0x169   :  { %4711 = vmatpush.bf16.msra.mxu3 %v7191_v32  ;;  %v8679_v31 = vpop.f32.mrf.mxu1  ;;  %v6867_v32 = vor.u32 %v8014_v17, %v6866_v13  ;;  %4588 = vmatmul.bf16.gmra.mxu0 %v8510_v33  ;;  %v2243_v20 = vadd.f32 %v8629_v52, %v8672_v15  ;;  %v7143_v13 = vor.u32 %v8083_v62, %v7142_v19  ;;  %v8146_v19 = vld [vmem:[#allocation8 + $0x740] sm:$0xf0] }
 0x16a   :  { %4655 = vmatpush.bf16.msra.mxu0 %v6891_v50  ;;  %v8035_v50 = vld [vmem:[#allocation8 + $0x3c8] sm:$0xf0]  ;;  %4607 = vmatmul.bf16.gmra.mxu1 %v8542_v59  ;;  %v2319_v52 = vadd.f32 %v8665_v41, %v2300_v51 }
 0x16b   :  { %4674 = vmatpush.bf16.msra.mxu1 %v6987_v46  ;;  %v7046_v46 = vld [vmem:[#allocation8 + $0x480] sm:$0xf]  ;;  %4626 = vmatmul.bf16.gmra.mxu2 %v8582_v23 }
 0x16c   :  { %4693 = vmatpush.bf16.msra.mxu2 %v7083_v63  ;;  %v7322_v63 = vld [vmem:[#allocation8 + $0x6a8] sm:$0xf]  ;;  %4645 = vmatmul.bf16.gmra.mxu3 %v8591_v27  ;;  %v7047_v3 = vor.u32 %v8059_v43, %v7046_v46  ;;  %v7394_v43 = vld [vmem:[#allocation8 + $0x738] sm:$0xf] }
 0x16d   :  { %4712 = vmatpush.bf16.msra.mxu3 %v7179_v12  ;;  %v2245_v12 = vadd.f32 %v8635_v47, %v8672_v15  ;;  %v2321_v47 = vadd.f32 %v2320_v16, %v2302_v2  ;;  %v7406_v16 = vld [vmem:[#allocation8 + $0x750] sm:$0xf]  ;;  %v7395_v2 = vor.u32 %v8146_v19, %v7394_v43  ;;  %v8110_v19 = vld [vmem:[#allocation8 + $0x620] sm:$0xf0] }
 0x16e   :  { %4656 = vmatpush.bf16.msra.mxu0 %v6879_v10  ;;  %v6855_v10 = vor.u32 %v8011_v40, %v6854_v37  ;;  %v8692_v56 = vpop.f32.mrf.mxu2 }
 0x16f   :  { %4675 = vmatpush.bf16.msra.mxu1 %v6975_v55  ;;  %v6951_v55 = vor.u32 %v8035_v50, %v6950_v8  ;;  %v2264_v22 = vadd.f32 %v8637_v49, %v2245_v12  ;;  %v8698_v39 = vpop.f32.mrf.mxu0  ;;  %v2340_v37 = vadd.f32 %v2339_v44, %v2321_v47  ;;  %v7407_v49 = vor.u32 %v8149_v60, %v7406_v16 }
 0x170   :  { %4694 = vmatpush.bf16.msra.mxu2 %v7071_v5  ;;  %v8694_v17 = vpop.f32.mrf.mxu3  ;;  %v7323_v5 = vor.u32 %v8128_v61, %v7322_v63  ;;  %v2338_v8 = vadd.f32 %v8667_v36, %v2319_v52  ;;  %v2305_v47 = vadd.f32 %v8679_v31, %v8675_v30  ;;  %v8140_v52 = vld [vmem:[#allocation8 + $0x710] sm:$0xf0] }
 0x171   :  { %4713 = vmatpush.bf16.msra.mxu3 %v7167_v38  ;;  %v7310_v38 = vld [vmem:[#allocation8 + $0x690] sm:$0xf]  ;;  %v2306_v28 = vpop.f32.mrf.mxu1  ;;  %v2594_v46 = vmax.f32 %v2340_v37, 0.0 }
 0x172   :  { %4657 = vmatpush.bf16.msra.mxu0 %v6867_v32  ;;  %v2262_v32 = vadd.f32 %v8631_v1, %v2243_v20  ;;  %v7311_v40 = vor.u32 %v8125_v29, %v7310_v38  ;;  %v2582_v44 = vmax.f32 %v2338_v8, 0.0  ;;  %v8143_v20 = vld [vmem:[#allocation8 + $0x728] sm:$0xf0]  ;;  %v8116_v38 = vld [vmem:[#allocation8 + $0x650] sm:$0xf0]  ;;  %v2324_v31 = vadd.f32 %v8692_v56, %v2305_v47 }
 0x173   :  { %4676 = vmatpush.bf16.msra.mxu1 %v6963_v35  ;;  %v2283_v35 = vadd.f32 %v8669_v54, %v2264_v22  ;;  %v7370_v22 = vld [vmem:[#allocation8 + $0x708] sm:$0xf]  ;;  %v8137_v8 = vld [vmem:[#allocation8 + $0x6f8] sm:$0xf0]  ;;  %v8107_v47 = vld [vmem:[#allocation8 + $0x608] sm:$0xf0] }
 0x174   :  { %4695 = vmatpush.bf16.msra.mxu2 %v7059_v14  ;;  %v2281_v41 = vadd.f32 %v8657_v11, %v2262_v32  ;;  %v7298_v14 = vld [vmem:[#allocation8 + $0x678] sm:$0xf]  ;;  %v7286_v11 = vld [vmem:[#allocation8 + $0x660] sm:$0xf]  ;;  %v8710_v61 = vpack.c.bf16 %v2594_v46, %v2582_v44  ;;  %v8176_v44 = vld [vmem:[#allocation8 + $0x830] sm:$0xf0] }
 0x175   :  { %4714 = vmatpush.bf16.msra.mxu3 %v7155_v42  ;;  %v8122_v42 = vld [vmem:[#allocation8 + $0x680] sm:$0xf0]  ;;  %v2593_v50 = vmax.f32 %v2283_v35, 0.0 }
 0x176   :  { %4658 = vmatpush.bf16.msra.mxu0 %v6855_v10  ;;  %v2325_v1 = vpop.f32.mrf.mxu2  ;;  %v2581_v54 = vmax.f32 %v2281_v41, 0.0  ;;  %v7299_v51 = vor.u32 %v8122_v42, %v7298_v14  ;;  %9077 = vst [vmem:[#allocation18_spill] sm:$0xff] %v8710_v61  ;;  %v2250_v10 = vadd.f32 %v8651_v6, %v8672_v15  ;;  %v7383_v6 = vor.u32 %v8143_v20, %v7382_v0  ;;  %v7358_v41 = vld [vmem:[#allocation8 + $0x6f0] sm:$0xf]  ;;  %v7238_v20 = vld [vmem:[#allocation8 + $0x600] sm:$0xf] }
 0x177   :  { %4677 = vmatpush.bf16.msra.mxu1 %v6951_v55  ;;  %v8704_v63 = vpop.f32.mrf.mxu0  ;;  %v2307_v55 = vadd.f32 %v2306_v28, %v8675_v30  ;;  %v2343_v14 = vadd.f32 %v8694_v17, %v2324_v31  ;;  %v7959_v31 = vld [vmem:[#allocation8 + $0x16c] sm:$0xf] }
 0x178   :  { %4696 = vmatpush.bf16.msra.mxu2 %v7047_v3  ;;  %v2344_v62 = vpop.f32.mrf.mxu3  ;;  %v8708_v36 = vpack.c.bf16 %v2593_v50, %v2581_v54  ;;  %v2269_v28 = vadd.f32 %v8653_v7, %v2250_v10  ;;  %v7514_v54 = vld [vmem:[#allocation8 + $0x828] sm:$0xf] }
 0x179   :  { %4715 = vmatpush.bf16.msra.mxu3 %v7143_v13  ;;  %v8706_v12 = vpop.f32.mrf.mxu1  ;;  %4659 = vmatmul.bf16.vlgmr.msra.gmra.mxu0 %v8604_v24  ;;  %v2326_v3 = vadd.f32 %v2325_v1, %v2307_v55  ;;  %v7287_v13 = vor.u32 %v8119_v4, %v7286_v11  ;;  %v7359_v1 = vor.u32 %v8137_v8, %v7358_v41  ;;  %v7610_v8 = vld [vmem:[#allocation8 + $0x8e8] sm:$0xf] }
 0x17a   :  { %4727 = vmatpush.bf16.msrb.mxu0 %v7323_v5  ;;  %9076 = vst [vmem:[#allocation17_spill] sm:$0xff] %v8708_v36  ;;  %4678 = vmatmul.bf16.vlgmr.msra.gmra.mxu1 %v8633_v58  ;;  %v7274_v5 = vld [vmem:[#allocation8 + $0x648] sm:$0xf]  ;;  %v2288_v35 = vadd.f32 %v8698_v39, %v2269_v28  ;;  %v7250_v39 = vld [vmem:[#allocation8 + $0x618] sm:$0xf] }
 0x17b   :  { %4746 = vmatpush.bf16.msrb.mxu1 %v7419_v21  ;;  %4697 = vmatmul.bf16.vlgmr.msra.gmra.mxu2 %v8708_v36  ;;  %v2248_v21 = vadd.f32 %v8647_v25, %v8672_v15  ;;  %v7275_v32 = vor.u32 %v8116_v38, %v7274_v5  ;;  %v2345_v37 = vadd.f32 %v2344_v62, %v2326_v3  ;;  %v7262_v25 = vld [vmem:[#allocation8 + $0x630] sm:$0xf]  ;;  %v7346_v62 = vld [vmem:[#allocation8 + $0x6d8] sm:$0xf]  ;;  %v7935_v3 = vld [vmem:[#allocation8 + $0xac] sm:$0xf] }
 0x17c   :  { %4716 = vmatmul.bf16.vlgmr.msra.gmra.mxu3 %v8710_v61  ;;  %v7371_v15 = vor.u32 %v8140_v52, %v7370_v22  ;;  %v2617_v50 = vmax.f32 %v2288_v35, 0.0  ;;  %v7251_v55 = vor.u32 %v8110_v19, %v7250_v39  ;;  %v7334_v5 = vld [vmem:[#allocation8 + $0x6c0] sm:$0xf]  ;;  %v7502_v22 = vld [vmem:[#allocation8 + $0x810] sm:$0xf] }
 0x17d   :  { %v2267_v7 = vadd.f32 %v8649_v45, %v2248_v21  ;;  %v2618_v46 = vmax.f32 %v2345_v37, 0.0  ;;  %v8134_v45 = vld [vmem:[#allocation8 + $0x6e0] sm:$0xf0]  ;;  %v8131_v21 = vld [vmem:[#allocation8 + $0x6c8] sm:$0xf0] }
 0x17e   :  { %4728 = vmatpush.bf16.msrb.mxu0 %v7311_v40  ;;  %v8724_v29 = vpop.f32.mrf.mxu2  ;;  %v8732_v40 = vld [vmem:[#allocation7 + $0x8] sm:$0xf] }
 0x17f   :  { %4747 = vmatpush.bf16.msrb.mxu1 %v7407_v49  ;;  %v2358_v16 = vpop.f32.mrf.mxu0  ;;  %v8113_v49 = vld [vmem:[#allocation8 + $0x638] sm:$0xf0]  ;;  %v2286_v56 = vadd.f32 %v8677_v9, %v2267_v7  ;;  %v8738_v42 = vperm.slane %v8732_v40, 0  ;;  %v7515_v9 = vor.u32 %v8176_v44, %v7514_v54  ;;  %v6544_v7 = vld [vmem:[#allocation8 + $0x9c] sm:$0xf0] }
 0x180   :  { %v8726_v30 = vpop.f32.mrf.mxu3  ;;  %v7263_v43 = vor.u32 %v8113_v49, %v7262_v25  ;;  %v8173_v52 = vld [vmem:[#allocation8 + $0x818] sm:$0xf0]  ;;  %v7239_v25 = vor.u32 %v8107_v47, %v7238_v20 }
 0x181   :  { %v8729_v60 = vpop.f32.mrf.mxu1  ;;  %v2605_v17 = vmax.f32 %v2286_v56, 0.0  ;;  %v2357_v10 = vadd.f32 %v8704_v63, %v8738_v42  ;;  %4765 = vmatpush.bf16.msrb.mxu2 %v7515_v9  ;;  %v2359_v28 = vadd.f32 %v2358_v16, %v8738_v42  ;;  %v6556_v63 = vld [vmem:[#allocation8 + $0xb4] sm:$0xf0]  ;;  %v7503_v35 = vor.u32 %v8173_v52, %v7502_v22  ;;  %v8200_v56 = vld [vmem:[#allocation8 + $0x8f0] sm:$0xf0] }
 0x182   :  { %4729 = vmatpush.bf16.msrb.mxu0 %v7299_v51  ;;  %v7335_v16 = vor.u32 %v8131_v21, %v7334_v5  ;;  %v6559_v49 = vor.u32 %v7935_v3, %v6556_v63  ;;  %v7611_v19 = vor.u32 %v8200_v56, %v7610_v8  ;;  %v8197_v47 = vld [vmem:[#allocation8 + $0x8d8] sm:$0xf0]  ;;  %v6628_v3 = vld [vmem:[#allocation8 + $0x144] sm:$0xf0]  ;;  %v7478_v5 = vld [vmem:[#allocation8 + $0x7e0] sm:$0xf] }
 0x183   :  { %4748 = vmatpush.bf16.msrb.mxu1 %v7395_v2  ;;  %v2606_v2 = vmax.f32 %v2343_v14, 0.0  ;;  %v8748_v38 = vpack.c.bf16 %v2617_v50, %v2605_v17  ;;  %v2376_v37 = vadd.f32 %v8706_v12, %v2357_v10  ;;  %v7490_v14 = vld [vmem:[#allocation8 + $0x7f8] sm:$0xf]  ;;  %v2378_v39 = vadd.f32 %v8729_v60, %v2359_v28  ;;  %v6640_v12 = vld [vmem:[#allocation8 + $0x15c] sm:$0xf0] }
 0x184   :  { %v7929_v17 = vld [vmem:[#allocation8 + $0x7c] sm:$0xf]  ;;  %4784 = vmatpush.bf16.msrb.mxu3 %v7611_v19  ;;  %v8167_v21 = vld [vmem:[#allocation8 + $0x7e8] sm:$0xf0]  ;;  %v7926_v28 = vld [vmem:[#allocation8 + $0x64] sm:$0xf] }
 0x185   :  { %9078 = vst [vmem:[#allocation19_spill] sm:$0xff] %v8748_v38  ;;  %4766 = vmatpush.bf16.msrb.mxu2 %v7503_v35  ;;  %v2395_v44 = vadd.f32 %v8724_v29, %v2376_v37  ;;  %v7953_v10 = vld [vmem:[#allocation8 + $0x13c] sm:$0xf]  ;;  %v8767_v29 = vperm.slane %v8732_v40, 1  ;;  %v6520_v63 = vld [vmem:[#allocation8 + $0x6c] sm:$0xf0] }
 0x186   :  { %4730 = vmatpush.bf16.msrb.mxu0 %v7287_v13  ;;  %v2396_v51 = vpop.f32.mrf.mxu2  ;;  %v7347_v13 = vor.u32 %v8134_v45, %v7346_v62  ;;  %v7586_v35 = vld [vmem:[#allocation8 + $0x8b8] sm:$0xf]  ;;  %v8194_v37 = vld [vmem:[#allocation8 + $0x8c0] sm:$0xf0]  ;;  %v8164_v8 = vld [vmem:[#allocation8 + $0x7d0] sm:$0xf0] }
 0x187   :  { %4749 = vmatpush.bf16.msrb.mxu1 %v7383_v6  ;;  %v8742_v4 = vpop.f32.mrf.mxu0  ;;  %v8750_v6 = vpack.c.bf16 %v2618_v46, %v2606_v2  ;;  %v2397_v9 = vadd.f32 %v2396_v51, %v2378_v39  ;;  %v6532_v2 = vld [vmem:[#allocation8 + $0x84] sm:$0xf0]  ;;  %v7479_v51 = vor.u32 %v8167_v21, %v7478_v5  ;;  %v2583_v22 = vmax.f32 %v2395_v44, 0.0  ;;  %v7923_v19 = vld [vmem:[#allocation8 + $0x4c] sm:$0xf] }
 0x188   :  { %v8740_v11 = vpop.f32.mrf.mxu3  ;;  %v7920_v21 = vld [vmem:[#allocation8 + $0x34] sm:$0xf] }
 0x189   :  { %v8744_v0 = vpop.f32.mrf.mxu1  ;;  %9079 = vst [vmem:[#allocation20_spill] sm:$0xff] %v8750_v6  ;;  %4664 = vmatmul.bf16.gmra.mxu0 %v8625_v48  ;;  %v2595_v52 = vmax.f32 %v2397_v9, 0.0  ;;  %v7947_v9 = vld [vmem:[#allocation8 + $0x10c] sm:$0xf] }
 0x18a   :  { %4731 = vmatpush.bf16.msrb.mxu0 %v7275_v32  ;;  %4683 = vmatmul.bf16.gmra.mxu1 %v8655_v34  ;;  %v6652_v32 = vld [vmem:[#allocation8 + $0x174] sm:$0xf0] }
 0x18b   :  { %4750 = vmatpush.bf16.msrb.mxu1 %v7371_v15  ;;  %4702 = vmatmul.bf16.gmra.mxu2 %v8748_v38  ;;  %v7932_v15 = vld [vmem:[#allocation8 + $0x94] sm:$0xf]  ;;  %v6655_v41 = vor.u32 %v7959_v31, %v6652_v32  ;;  %v6535_v31 = vor.u32 %v7929_v17, %v6532_v2  ;;  %v6631_v32 = vor.u32 %v7953_v10, %v6628_v3  ;;  %v7574_v17 = vld [vmem:[#allocation8 + $0x8a0] sm:$0xf]  ;;  %v8191_v2 = vld [vmem:[#allocation8 + $0x8a8] sm:$0xf0] }
 0x18c   :  { %4721 = vmatmul.bf16.gmra.mxu3 %v8750_v6  ;;  %v6547_v60 = vor.u32 %v7932_v15, %v6544_v7  ;;  %v6604_v10 = vld [vmem:[#allocation8 + $0x114] sm:$0xf0] }
 0x18e   :  { %4732 = vmatpush.bf16.msrb.mxu0 %v7263_v43  ;;  %v8759_v50 = vpop.f32.mrf.mxu2  ;;  %v7956_v43 = vld [vmem:[#allocation8 + $0x154] sm:$0xf] }
 0x18f   :  { %4751 = vmatpush.bf16.msrb.mxu1 %v7359_v1  ;;  %v8170_v1 = vld [vmem:[#allocation8 + $0x800] sm:$0xf0]  ;;  %v2363_v62 = vpop.f32.mrf.mxu0  ;;  %v6643_v20 = vor.u32 %v7956_v43, %v6640_v12  ;;  %v8771_v43 = vpack.c.bf16 %v2595_v52, %v2583_v22  ;;  %v2362_v12 = vadd.f32 %v8742_v4, %v8738_v42  ;;  %v7454_v4 = vld [vmem:[#allocation8 + $0x7b0] sm:$0xf]  ;;  %v7562_v52 = vld [vmem:[#allocation8 + $0x888] sm:$0xf] }
 0x190   :  { %v8761_v46 = vpop.f32.mrf.mxu3  ;;  %v7491_v54 = vor.u32 %v8170_v1, %v7490_v14  ;;  %v6508_v1 = vld [vmem:[#allocation8 + $0x54] sm:$0xf0] }
 0x191   :  { %v8763_v45 = vpop.f32.mrf.mxu1  ;;  %v6511_v22 = vor.u32 %v7923_v19, %v6508_v1 }
 0x192   :  { %4733 = vmatpush.bf16.msrb.mxu0 %v7251_v55  ;;  %v7598_v55 = vld [vmem:[#allocation8 + $0x8d0] sm:$0xf]  ;;  %4767 = vmatpush.bf16.msrb.mxu2 %v7491_v54  ;;  %v6523_v54 = vor.u32 %v7926_v28, %v6520_v63  ;;  %v2416_v28 = vadd.f32 %v8740_v11, %v8767_v29 }
 0x193   :  { %4752 = vmatpush.bf16.msrb.mxu1 %v7347_v13  ;;  %v7599_v13 = vor.u32 %v8197_v47, %v7598_v55  ;;  %v7575_v55 = vor.u32 %v8191_v2, %v7574_v17  ;;  %v8161_v47 = vld [vmem:[#allocation8 + $0x7b8] sm:$0xf0] }
 0x194   :  { %v7455_v3 = vor.u32 %v8161_v47, %v7454_v4  ;;  %v7941_v2 = vld [vmem:[#allocation8 + $0xdc] sm:$0xf]  ;;  %v7914_v47 = vld [vmem:[#allocation8 + $0x4] sm:$0xf] }
 0x195   :  { %4785 = vmatpush.bf16.msrb.mxu3 %v7599_v13  ;;  %v2381_v13 = vadd.f32 %v8744_v0, %v2362_v12  ;;  %v7944_v0 = vld [vmem:[#allocation8 + $0xf4] sm:$0xf]  ;;  %v7917_v12 = vld [vmem:[#allocation8 + $0x1c] sm:$0xf] }
 0x196   :  { %4734 = vmatpush.bf16.msrb.mxu0 %v7239_v25  ;;  %v7466_v25 = vld [vmem:[#allocation8 + $0x7c8] sm:$0xf]  ;;  %v2401_v15 = vpop.f32.mrf.mxu2  ;;  %4768 = vmatpush.bf16.msrb.mxu2 %v7479_v51  ;;  %v6496_v51 = vld [vmem:[#allocation8 + $0x3c] sm:$0xf0] }
 0x197   :  { %4753 = vmatpush.bf16.msrb.mxu1 %v7335_v16  ;;  %v7950_v16 = vld [vmem:[#allocation8 + $0x124] sm:$0xf]  ;;  %v2432_v56 = vpop.f32.mrf.mxu0  ;;  %v7467_v39 = vor.u32 %v8164_v8, %v7466_v25  ;;  %v2400_v8 = vadd.f32 %v8759_v50, %v2381_v13  ;;  %v6499_v19 = vor.u32 %v7920_v21, %v6496_v51  ;;  %v7538_v51 = vld [vmem:[#allocation8 + $0x858] sm:$0xf] }
 0x198   :  { %v8769_v7 = vpop.f32.mrf.mxu3  ;;  %v8158_v25 = vld [vmem:[#allocation8 + $0x7a0] sm:$0xf0] }
 0x199   :  { %v2451_v14 = vpop.f32.mrf.mxu1  ;;  %4735 = vmatmul.bf16.vlgmr.msrb.gmra.mxu0 %v8771_v43 }
 0x19a   :  { %4803 = vmatpush.bf16.msra.mxu0 %v6559_v49  ;;  %v6616_v49 = vld [vmem:[#allocation8 + $0x12c] sm:$0xf0]  ;;  %4769 = vmatpush.bf16.msrb.mxu2 %v7467_v39 }
 0x19b   :  { %4822 = vmatpush.bf16.msra.mxu1 %v6655_v41  ;;  %v7587_v41 = vor.u32 %v8194_v37, %v7586_v35  ;;  %v6619_v44 = vor.u32 %v7950_v16, %v6616_v49  ;;  %v6592_v35 = vld [vmem:[#allocation8 + $0xfc] sm:$0xf0] }
 0x19c   :  { %v6595_v1 = vor.u32 %v7944_v0, %v6592_v35  ;;  %v6748_v35 = vld [vmem:[#allocation8 + $0x234] sm:$0xf0] }
 0x19d   :  { %4786 = vmatpush.bf16.msrb.mxu3 %v7587_v41 }
 0x19e   :  { %4804 = vmatpush.bf16.msra.mxu0 %v6547_v60  ;;  %v2414_v60 = vadd.f32 %v8726_v30, %v8767_v29  ;;  %v6607_v30 = vor.u32 %v7947_v9, %v6604_v10  ;;  %4770 = vmatpush.bf16.msrb.mxu2 %v7455_v3  ;;  %v7430_v9 = vld [vmem:[#allocation8 + $0x780] sm:$0xf]  ;;  %v8155_v10 = vld [vmem:[#allocation8 + $0x788] sm:$0xf0]  ;;  %v6472_v3 = vld [vmem:[#allocation8 + $0xc] sm:$0xf0] }
 0x19f   :  { %4823 = vmatpush.bf16.msra.mxu1 %v6643_v20  ;;  %v2364_v20 = vadd.f32 %v2363_v62, %v8738_v42  ;;  %v8188_v42 = vld [vmem:[#allocation8 + $0x890] sm:$0xf0]  ;;  %v7442_v62 = vld [vmem:[#allocation8 + $0x798] sm:$0xf]  ;;  %v2434_v16 = vpop.f32.mrf.mxu0  ;;  %v7431_v50 = vor.u32 %v8155_v10, %v7430_v9 }
 0x1a0   :  { %v2433_v5 = vadd.f32 %v2432_v56, %v2414_v60  ;;  %v7563_v37 = vor.u32 %v8188_v42, %v7562_v52  ;;  %v7443_v41 = vor.u32 %v8158_v25, %v7442_v62  ;;  %v2435_v11 = vadd.f32 %v2434_v16, %v2416_v28  ;;  %v6580_v60 = vld [vmem:[#allocation8 + $0xe4] sm:$0xf0]  ;;  %v7938_v28 = vld [vmem:[#allocation8 + $0xc4] sm:$0xf]  ;;  %v6940_v16 = vld [vmem:[#allocation8 + $0x3b4] sm:$0xf0] }
 0x1a1   :  { %v2383_v63 = vadd.f32 %v8763_v45, %v2364_v20  ;;  %4787 = vmatpush.bf16.msrb.mxu3 %v7575_v55  ;;  %v2453_v49 = vpop.f32.mrf.mxu1  ;;  %v6484_v45 = vld [vmem:[#allocation8 + $0x24] sm:$0xf0]  ;;  %v6583_v21 = vor.u32 %v7941_v2, %v6580_v60  ;;  %v6928_v2 = vld [vmem:[#allocation8 + $0x39c] sm:$0xf0]  ;;  %v8052_v10 = vld [vmem:[#allocation8 + $0x454] sm:$0xf] }
 0x1a2   :  { %4805 = vmatpush.bf16.msra.mxu0 %v6535_v31  ;;  %v8783_v31 = vpop.f32.mrf.mxu2  ;;  %v2452_v39 = vadd.f32 %v2451_v14, %v2433_v5  ;;  %v2454_v17 = vadd.f32 %v2453_v49, %v2435_v11  ;;  %4771 = vmatpush.bf16.msrb.mxu2 %v7443_v41  ;;  %v6487_v13 = vor.u32 %v7917_v12, %v6484_v45  ;;  %v8031_v5 = vld [vmem:[#allocation8 + $0x3ac] sm:$0xf]  ;;  %v7526_v12 = vld [vmem:[#allocation8 + $0x840] sm:$0xf] }
 0x1a3   :  { %4824 = vmatpush.bf16.msra.mxu1 %v6631_v32  ;;  %v8785_v32 = vpop.f32.mrf.mxu3  ;;  %v2402_v56 = vadd.f32 %v2401_v15, %v2383_v63  ;;  %v2607_v15 = vmax.f32 %v2400_v8, 0.0  ;;  %v6568_v63 = vld [vmem:[#allocation8 + $0xcc] sm:$0xf0]  ;;  %v8055_v41 = vld [vmem:[#allocation8 + $0x46c] sm:$0xf] }
 0x1a4   :  { %v2584_v55 = vmax.f32 %v2452_v39, 0.0  ;;  %v2596_v4 = vmax.f32 %v2454_v17, 0.0  ;;  %v7036_v8 = vld [vmem:[#allocation8 + $0x474] sm:$0xf0]  ;;  %v6475_v39 = vor.u32 %v7914_v47, %v6472_v3  ;;  %v6571_v11 = vor.u32 %v7938_v28, %v6568_v63  ;;  %v8179_v45 = vld [vmem:[#allocation8 + $0x848] sm:$0xf0] }
 0x1a5   :  { %4788 = vmatpush.bf16.msrb.mxu3 %v7563_v37  ;;  %v2619_v14 = vmax.f32 %v2402_v56, 0.0  ;;  %v7039_v9 = vor.u32 %v8055_v41, %v7036_v8  ;;  %v6736_v17 = vld [vmem:[#allocation8 + $0x21c] sm:$0xf0]  ;;  %v7527_v60 = vor.u32 %v8179_v45, %v7526_v12  ;;  %v7974_v8 = vld [vmem:[#allocation8 + $0x1e4] sm:$0xf] }
 0x1a6   :  { %4806 = vmatpush.bf16.msra.mxu0 %v6523_v54  ;;  %v7550_v54 = vld [vmem:[#allocation8 + $0x870] sm:$0xf]  ;;  %v8788_v52 = vpack.c.bf16 %v2596_v4, %v2584_v55  ;;  %4772 = vmatpush.bf16.msrb.mxu2 %v7431_v50  ;;  %v7024_v50 = vld [vmem:[#allocation8 + $0x45c] sm:$0xf0]  ;;  %v6844_v55 = vld [vmem:[#allocation8 + $0x2f4] sm:$0xf0] }
 0x1a7   :  { %4825 = vmatpush.bf16.msra.mxu1 %v6619_v44  ;;  %v8185_v44 = vld [vmem:[#allocation8 + $0x878] sm:$0xf0]  ;;  %v2437_v37 = vpop.f32.mrf.mxu0  ;;  %v8795_v56 = vpack.c.bf16 %v2619_v14, %v2607_v15  ;;  %v2421_v14 = vadd.f32 %v8769_v7, %v8767_v29  ;;  %v6832_v41 = vld [vmem:[#allocation8 + $0x2dc] sm:$0xf0]  ;;  %v6712_v45 = vld [vmem:[#allocation8 + $0x1ec] sm:$0xf0] }
 0x1a8   :  { %v7551_v20 = vor.u32 %v8185_v44, %v7550_v54  ;;  %9080 = vst [vmem:[#allocation21_spill] sm:$0xff] %v8788_v52  ;;  %4754 = vmatmul.bf16.vlgmr.msrb.gmra.mxu1 %v8788_v52  ;;  %v6943_v54 = vor.u32 %v8031_v5, %v6940_v16  ;;  %v8028_v44 = vld [vmem:[#allocation8 + $0x394] sm:$0xf]  ;;  %v7977_v4 = vld [vmem:[#allocation8 + $0x1fc] sm:$0xf] }
 0x1a9   :  { %v2456_v25 = vpop.f32.mrf.mxu1  ;;  %9081 = vst [vmem:[#allocation22_spill] sm:$0xff] %v8795_v56  ;;  %4740 = vmatmul.bf16.gmra.mxu0 %v8795_v56  ;;  %v8025_v5 = vld [vmem:[#allocation8 + $0x37c] sm:$0xf] }
 0x1aa   :  { %4807 = vmatpush.bf16.msra.mxu0 %v6511_v22  ;;  %v8182_v22 = vld [vmem:[#allocation8 + $0x860] sm:$0xf0]  ;;  %v8790_v42 = vpop.f32.mrf.mxu2  ;;  %4789 = vmatpush.bf16.msrb.mxu3 %v7551_v20  ;;  %v8049_v7 = vld [vmem:[#allocation8 + $0x43c] sm:$0xf] }
 0x1ab   :  { %4826 = vmatpush.bf16.msra.mxu1 %v6607_v30  ;;  %v7983_v30 = vld [vmem:[#allocation8 + $0x22c] sm:$0xf]  ;;  %v8792_v62 = vpop.f32.mrf.mxu3  ;;  %v7539_v0 = vor.u32 %v8182_v22, %v7538_v51  ;;  %v7027_v51 = vor.u32 %v8052_v10, %v7024_v50 }
 0x1ac   :  { %v6751_v49 = vor.u32 %v7983_v30, %v6748_v35  ;;  %v6724_v30 = vld [vmem:[#allocation8 + $0x204] sm:$0xf0]  ;;  %v7971_v10 = vld [vmem:[#allocation8 + $0x1cc] sm:$0xf] }
 0x1ae   :  { %4808 = vmatpush.bf16.msra.mxu0 %v6499_v19  ;;  %v7980_v19 = vld [vmem:[#allocation8 + $0x214] sm:$0xf]  ;;  %4790 = vmatpush.bf16.msrb.mxu3 %v7539_v0  ;;  %v7012_v0 = vld [vmem:[#allocation8 + $0x444] sm:$0xf0] }
 0x1af   :  { %4827 = vmatpush.bf16.msra.mxu1 %v6595_v1  ;;  %v2419_v1 = vadd.f32 %v8761_v46, %v8767_v29  ;;  %4841 = vmatpush.bf16.msra.mxu2 %v6751_v49  ;;  %v6739_v20 = vor.u32 %v7980_v19, %v6736_v17  ;;  %v8007_v46 = vld [vmem:[#allocation8 + $0x2ec] sm:$0xf]  ;;  %v2439_v28 = vpop.f32.mrf.mxu0  ;;  %v6727_v29 = vor.u32 %v7977_v4, %v6724_v30  ;;  %v8004_v49 = vld [vmem:[#allocation8 + $0x2d4] sm:$0xf]  ;;  %v8807_v19 = vperm.slane %v8732_v40, 2 }
 0x1b0   :  { %v6847_v22 = vor.u32 %v8007_v46, %v6844_v55  ;;  %v6835_v12 = vor.u32 %v8004_v49, %v6832_v41  ;;  %v8022_v17 = vld [vmem:[#allocation8 + $0x364] sm:$0xf]  ;;  %v6700_v4 = vld [vmem:[#allocation8 + $0x1d4] sm:$0xf0]  ;;  %v6688_v41 = vld [vmem:[#allocation8 + $0x1bc] sm:$0xf0] }
 0x1b1   :  { %v2438_v15 = vadd.f32 %v2437_v37, %v2419_v1  ;;  %v2458_v63 = vpop.f32.mrf.mxu1  ;;  %v2440_v37 = vadd.f32 %v2439_v28, %v2421_v14  ;;  %v6715_v1 = vor.u32 %v7974_v8, %v6712_v45  ;;  %v2471_v30 = vadd.f32 %v8783_v31, %v8807_v19  ;;  %v8019_v28 = vld [vmem:[#allocation8 + $0x34c] sm:$0xf] }
 0x1b2   :  { %4809 = vmatpush.bf16.msra.mxu0 %v6487_v13  ;;  %v8802_v47 = vpop.f32.mrf.mxu2  ;;  %v6931_v13 = vor.u32 %v8028_v44, %v6928_v2  ;;  %4791 = vmatpush.bf16.msrb.mxu3 %v7527_v60  ;;  %v7000_v44 = vld [vmem:[#allocation8 + $0x42c] sm:$0xf0]  ;;  %v8001_v60 = vld [vmem:[#allocation8 + $0x2bc] sm:$0xf]  ;;  %v8822_v31 = vperm.slane %v8732_v40, 3 }
 0x1b3   :  { %4828 = vmatpush.bf16.msra.mxu1 %v6583_v21  ;;  %v8804_v3 = vpop.f32.mrf.mxu3  ;;  %v6916_v21 = vld [vmem:[#allocation8 + $0x384] sm:$0xf0]  ;;  %4842 = vmatpush.bf16.msra.mxu2 %v6739_v20  ;;  %v2457_v35 = vadd.f32 %v2456_v25, %v2438_v15  ;;  %v6904_v2 = vld [vmem:[#allocation8 + $0x36c] sm:$0xf0]  ;;  %v2490_v45 = vadd.f32 %v8785_v32, %v2471_v30 }
 0x1b4   :  { %v6919_v16 = vor.u32 %v8025_v5, %v6916_v21  ;;  %v6820_v20 = vld [vmem:[#allocation8 + $0x2c4] sm:$0xf0]  ;;  %v6907_v21 = vor.u32 %v8022_v17, %v6904_v2 }
 0x1b5   :  { %v2608_v25 = vmax.f32 %v2457_v35, 0.0  ;;  %v6823_v55 = vor.u32 %v8001_v60, %v6820_v20  ;;  %v7968_v35 = vld [vmem:[#allocation8 + $0x1b4] sm:$0xf] }
 0x1b6   :  { %4810 = vmatpush.bf16.msra.mxu0 %v6475_v39  ;;  %4860 = vmatpush.bf16.msra.mxu3 %v6847_v22  ;;  %v2459_v39 = vadd.f32 %v2458_v63, %v2440_v37  ;;  %v8043_v22 = vld [vmem:[#allocation8 + $0x40c] sm:$0xf]  ;;  %v6892_v63 = vld [vmem:[#allocation8 + $0x354] sm:$0xf0]  ;;  %v2473_v37 = vadd.f32 %v8790_v42, %v8807_v19 }
 0x1b7   :  { %4829 = vmatpush.bf16.msra.mxu1 %v6571_v11  ;;  %v7015_v11 = vor.u32 %v8049_v7, %v7012_v0  ;;  %4843 = vmatpush.bf16.msra.mxu2 %v6727_v29  ;;  %v6988_v29 = vld [vmem:[#allocation8 + $0x414] sm:$0xf0]  ;;  %v7998_v7 = vld [vmem:[#allocation8 + $0x2a4] sm:$0xf]  ;;  %v6808_v0 = vld [vmem:[#allocation8 + $0x2ac] sm:$0xf0]  ;;  %v6895_v8 = vor.u32 %v8019_v28, %v6892_v63 }
 0x1b8   :  { %v6811_v49 = vor.u32 %v7998_v7, %v6808_v0  ;;  %v7995_v42 = vld [vmem:[#allocation8 + $0x28c] sm:$0xf]  ;;  %v8013_v28 = vld [vmem:[#allocation8 + $0x31c] sm:$0xf]  ;;  %v6784_v63 = vld [vmem:[#allocation8 + $0x27c] sm:$0xf0] }
 0x1b9   :  { %v2527_v5 = vpop.f32.mrf.mxu1  ;;  %4811 = vmatmul.bf16.vlgmr.msra.gmra.mxu0 %v8487_v18 }
 0x1ba   :  { %4879 = vmatpush.bf16.msrb.mxu0 %v6943_v54  ;;  %v8046_v54 = vld [vmem:[#allocation8 + $0x424] sm:$0xf]  ;;  %4861 = vmatpush.bf16.msra.mxu3 %v6835_v12  ;;  %v8809_v50 = vpop.f32.mrf.mxu2  ;;  %v6976_v12 = vld [vmem:[#allocation8 + $0x3fc] sm:$0xf0] }
 0x1bb   :  { %4898 = vmatpush.bf16.msrb.mxu1 %v7039_v9  ;;  %v2620_v9 = vmax.f32 %v2459_v39, 0.0  ;;  %v8811_v15 = vpop.f32.mrf.mxu3  ;;  %v7003_v46 = vor.u32 %v8046_v54, %v7000_v44  ;;  %4844 = vmatpush.bf16.msra.mxu2 %v6715_v1  ;;  %v6691_v39 = vor.u32 %v7968_v35, %v6688_v41  ;;  %v8016_v1 = vld [vmem:[#allocation8 + $0x334] sm:$0xf]  ;;  %v6880_v54 = vld [vmem:[#allocation8 + $0x33c] sm:$0xf0] }
 0x1bc   :  { %v6796_v44 = vld [vmem:[#allocation8 + $0x294] sm:$0xf0]  ;;  %v6883_v32 = vor.u32 %v8016_v1, %v6880_v54  ;;  %v8010_v41 = vld [vmem:[#allocation8 + $0x304] sm:$0xf]  ;;  %v6952_v54 = vld [vmem:[#allocation8 + $0x3cc] sm:$0xf0] }
 0x1bd   :  { %v8813_v14 = vpack.c.bf16 %v2620_v9, %v2608_v25  ;;  %v7965_v25 = vld [vmem:[#allocation8 + $0x19c] sm:$0xf]  ;;  %v2492_v9 = vadd.f32 %v8792_v62, %v2473_v37  ;;  %v6799_v20 = vor.u32 %v7995_v42, %v6796_v44  ;;  %v6868_v62 = vld [vmem:[#allocation8 + $0x324] sm:$0xf0]  ;;  %v6664_v37 = vld [vmem:[#allocation8 + $0x18c] sm:$0xf0] }
 0x1be   :  { %4880 = vmatpush.bf16.msrb.mxu0 %v6931_v13  ;;  %v2508_v13 = vpop.f32.mrf.mxu0  ;;  %4862 = vmatpush.bf16.msra.mxu3 %v6823_v55  ;;  %v7324_v1 = vld [vmem:[#allocation8 + $0x6b4] sm:$0xf0]  ;;  %v7989_v44 = vld [vmem:[#allocation8 + $0x25c] sm:$0xf] }
 0x1bf   :  { %4899 = vmatpush.bf16.msrb.mxu1 %v7027_v51  ;;  %9082 = vst [vmem:[#allocation23_spill] sm:$0xff] %v8813_v14  ;;  %v6703_v51 = vor.u32 %v7971_v10, %v6700_v4  ;;  %v2509_v17 = vadd.f32 %v2508_v13, %v2490_v45  ;;  %v6676_v10 = vld [vmem:[#allocation8 + $0x1a4] sm:$0xf0]  ;;  %v7992_v13 = vld [vmem:[#allocation8 + $0x274] sm:$0xf] }
 0x1c0   :  { %4759 = vmatmul.bf16.gmra.mxu1 %v8813_v14  ;;  %v8127_v45 = vld [vmem:[#allocation8 + $0x6ac] sm:$0xf] }
 0x1c1   :  { %4845 = vmatpush.bf16.msra.mxu2 %v6703_v51  ;;  %v2529_v4 = vpop.f32.mrf.mxu1  ;;  %v8037_v51 = vld [vmem:[#allocation8 + $0x3dc] sm:$0xf]  ;;  %v2585_v7 = vmax.f32 %v2509_v17, 0.0 }
 0x1c2   :  { %4881 = vmatpush.bf16.msrb.mxu0 %v6919_v16  ;;  %v6991_v16 = vor.u32 %v8043_v22, %v6988_v29  ;;  %4863 = vmatpush.bf16.msra.mxu3 %v6811_v49  ;;  %v2546_v2 = vpop.f32.mrf.mxu2  ;;  %v6964_v22 = vld [vmem:[#allocation8 + $0x3e4] sm:$0xf0]  ;;  %v7962_v29 = vld [vmem:[#allocation8 + $0x184] sm:$0xf]  ;;  %v6871_v49 = vor.u32 %v8013_v28, %v6868_v62  ;;  %v2530_v42 = vadd.f32 %v2529_v4, %v8822_v31  ;;  %v8151_v4 = vld [vmem:[#allocation8 + $0x76c] sm:$0xf] }
 0x1c3   :  { %4900 = vmatpush.bf16.msrb.mxu1 %v7015_v11  ;;  %v8040_v11 = vld [vmem:[#allocation8 + $0x3f4] sm:$0xf]  ;;  %v2565_v40 = vpop.f32.mrf.mxu3  ;;  %v6967_v35 = vor.u32 %v8037_v51, %v6964_v22  ;;  %v2476_v28 = vadd.f32 %v8802_v47, %v8807_v19  ;;  %v7327_v62 = vor.u32 %v8127_v45, %v7324_v1  ;;  %v7120_v47 = vld [vmem:[#allocation8 + $0x51c] sm:$0xf0]  ;;  %v8121_v45 = vld [vmem:[#allocation8 + $0x67c] sm:$0xf] }
 0x1c4   :  { %v6979_v60 = vor.u32 %v8040_v11, %v6976_v12  ;;  %v8034_v11 = vld [vmem:[#allocation8 + $0x3c4] sm:$0xf]  ;;  %v7300_v1 = vld [vmem:[#allocation8 + $0x684] sm:$0xf0] }
 0x1c5   :  { %4846 = vmatpush.bf16.msra.mxu2 %v6691_v39  ;;  %v6667_v39 = vor.u32 %v7962_v29, %v6664_v37 }
 0x1c6   :  { %4882 = vmatpush.bf16.msrb.mxu0 %v6907_v21  ;;  %v2510_v55 = vpop.f32.mrf.mxu0  ;;  %v6679_v21 = vor.u32 %v7965_v25, %v6676_v10  ;;  %4864 = vmatpush.bf16.msra.mxu3 %v6799_v20  ;;  %v6772_v25 = vld [vmem:[#allocation8 + $0x264] sm:$0xf0]  ;;  %v6955_v20 = vor.u32 %v8034_v11, %v6952_v54  ;;  %v7408_v54 = vld [vmem:[#allocation8 + $0x75c] sm:$0xf0] }
 0x1c7   :  { %4901 = vmatpush.bf16.msrb.mxu1 %v7003_v46  ;;  %v2528_v46 = vadd.f32 %v2527_v5, %v8822_v31  ;;  %v2511_v30 = vadd.f32 %v2510_v55, %v2492_v9  ;;  %v6787_v5 = vor.u32 %v7992_v13, %v6784_v63  ;;  %v8079_v9 = vld [vmem:[#allocation8 + $0x52c] sm:$0xf]  ;;  %v6775_v10 = vor.u32 %v7989_v44, %v6772_v25  ;;  %v8124_v13 = vld [vmem:[#allocation8 + $0x694] sm:$0xf]  ;;  %v7312_v63 = vld [vmem:[#allocation8 + $0x69c] sm:$0xf0] }
 0x1c8   :  { %v7315_v11 = vor.u32 %v8124_v13, %v7312_v63  ;;  %v7228_v44 = vld [vmem:[#allocation8 + $0x5f4] sm:$0xf0]  ;;  %v8073_v25 = vld [vmem:[#allocation8 + $0x4fc] sm:$0xf]  ;;  %v8100_v13 = vld [vmem:[#allocation8 + $0x5d4] sm:$0xf] }
 0x1c9   :  { %v2597_v0 = vmax.f32 %v2511_v30, 0.0  ;;  %4847 = vmatpush.bf16.msra.mxu2 %v6679_v21  ;;  %v2532_v51 = vpop.f32.mrf.mxu1  ;;  %v7420_v30 = vld [vmem:[#allocation8 + $0x774] sm:$0xf0]  ;;  %4816 = vmatmul.bf16.gmra.mxu0 %v8510_v33  ;;  %v7216_v63 = vld [vmem:[#allocation8 + $0x5dc] sm:$0xf0] }
 0x1ca   :  { %4883 = vmatpush.bf16.msrb.mxu0 %v6895_v8  ;;  %v6856_v8 = vld [vmem:[#allocation8 + $0x30c] sm:$0xf0]  ;;  %4865 = vmatpush.bf16.msra.mxu3 %v6787_v5  ;;  %v2548_v17 = vpop.f32.mrf.mxu2  ;;  %v7423_v29 = vor.u32 %v8151_v4, %v7420_v30  ;;  %v2478_v5 = vadd.f32 %v8809_v50, %v8807_v19  ;;  %v7396_v4 = vld [vmem:[#allocation8 + $0x744] sm:$0xf0] }
 0x1cb   :  { %4902 = vmatpush.bf16.msrb.mxu1 %v6991_v16  ;;  %v2547_v16 = vadd.f32 %v2546_v2, %v2528_v46  ;;  %v8827_v12 = vpack.c.bf16 %v2597_v0, %v2585_v7  ;;  %v2567_v2 = vpop.f32.mrf.mxu3  ;;  %v7132_v46 = vld [vmem:[#allocation8 + $0x534] sm:$0xf0]  ;;  %v6760_v0 = vld [vmem:[#allocation8 + $0x24c] sm:$0xf0] }
 0x1cc   :  { %v7135_v22 = vor.u32 %v8079_v9, %v7132_v46  ;;  %v2497_v9 = vadd.f32 %v8811_v15, %v2478_v5  ;;  %v7288_v15 = vld [vmem:[#allocation8 + $0x66c] sm:$0xf0] }
 0x1cd   :  { %9083 = vst [vmem:[#allocation24_spill] sm:$0xff] %v8827_v12  ;;  %4773 = vmatmul.bf16.vlgmr.msrb.gmra.mxu2 %v8827_v12  ;;  %v2566_v55 = vadd.f32 %v2565_v40, %v2547_v16  ;;  %v7986_v40 = vld [vmem:[#allocation8 + $0x244] sm:$0xf] }
 0x1ce   :  { %4884 = vmatpush.bf16.msrb.mxu0 %v6883_v32  ;;  %v2549_v32 = vadd.f32 %v2548_v17, %v2530_v42  ;;  %v2513_v21 = vpop.f32.mrf.mxu0  ;;  %4848 = vmatpush.bf16.msra.mxu2 %v6667_v39  ;;  %v6763_v37 = vor.u32 %v7986_v40, %v6760_v0  ;;  %v2495_v39 = vadd.f32 %v8804_v3, %v2476_v28  ;;  %v8103_v42 = vld [vmem:[#allocation8 + $0x5ec] sm:$0xf]  ;;  %v7108_v3 = vld [vmem:[#allocation8 + $0x504] sm:$0xf0]  ;;  %v7096_v0 = vld [vmem:[#allocation8 + $0x4ec] sm:$0xf0] }
 0x1cf   :  { %4903 = vmatpush.bf16.msrb.mxu1 %v6979_v60  ;;  %v6859_v60 = vor.u32 %v8010_v41, %v6856_v8  ;;  %4866 = vmatpush.bf16.msra.mxu3 %v6775_v10  ;;  %v2586_v16 = vmax.f32 %v2566_v55, 0.0  ;;  %v8148_v8 = vld [vmem:[#allocation8 + $0x754] sm:$0xf]  ;;  %v2533_v10 = vadd.f32 %v2532_v51, %v8822_v31  ;;  %v7303_v28 = vor.u32 %v8121_v45, %v7300_v1  ;;  %v8097_v45 = vld [vmem:[#allocation8 + $0x5bc] sm:$0xf] }
 0x1d0   :  { %4830 = vmatmul.bf16.vlgmr.msra.gmra.mxu1 %v8525_v26  ;;  %v2568_v7 = vadd.f32 %v2567_v2, %v2549_v32  ;;  %v7411_v50 = vor.u32 %v8148_v8, %v7408_v54  ;;  %v2514_v17 = vadd.f32 %v2513_v21, %v2495_v39  ;;  %v7111_v32 = vor.u32 %v8073_v25, %v7108_v3  ;;  %v7384_v8 = vld [vmem:[#allocation8 + $0x72c] sm:$0xf0]  ;;  %v7204_v1 = vld [vmem:[#allocation8 + $0x5c4] sm:$0xf0]  ;;  %v8067_v54 = vld [vmem:[#allocation8 + $0x4cc] sm:$0xf] }
 0x1d1   :  { %v2534_v55 = vpop.f32.mrf.mxu1  ;;  %v7219_v40 = vor.u32 %v8100_v13, %v7216_v63  ;;  %v8139_v3 = vld [vmem:[#allocation8 + $0x70c] sm:$0xf] }
 0x1d2   :  { %4885 = vmatpush.bf16.msrb.mxu0 %v6871_v49  ;;  %4917 = vmatpush.bf16.msrb.mxu2 %v7135_v22  ;;  %v2598_v49 = vmax.f32 %v2568_v7, 0.0  ;;  %v2551_v2 = vpop.f32.mrf.mxu2  ;;  %v8145_v22 = vld [vmem:[#allocation8 + $0x73c] sm:$0xf]  ;;  %v2609_v51 = vmax.f32 %v2514_v17, 0.0  ;;  %v2535_v39 = vadd.f32 %v2534_v55, %v8822_v31  ;;  %v7372_v31 = vld [vmem:[#allocation8 + $0x714] sm:$0xf0] }
 0x1d3   :  { %4904 = vmatpush.bf16.msrb.mxu1 %v6967_v35  ;;  %v8076_v35 = vld [vmem:[#allocation8 + $0x514] sm:$0xf]  ;;  %4867 = vmatpush.bf16.msra.mxu3 %v6763_v37  ;;  %v7399_v21 = vor.u32 %v8145_v22, %v7396_v4  ;;  %v8142_v37 = vld [vmem:[#allocation8 + $0x724] sm:$0xf]  ;;  %v7375_v22 = vor.u32 %v8139_v3, %v7372_v31  ;;  %v6562_v31 = vld [vmem:[#allocation8 + $0xb0] sm:$0xf] }
 0x1d4   :  { %v7123_v41 = vor.u32 %v8076_v35, %v7120_v47  ;;  %v8838_v19 = vpack.c.bf16 %v2598_v49, %v2586_v16  ;;  %v2552_v35 = vadd.f32 %v2551_v2, %v2533_v10  ;;  %v8115_v49 = vld [vmem:[#allocation8 + $0x64c] sm:$0xf]  ;;  %v8112_v55 = vld [vmem:[#allocation8 + $0x634] sm:$0xf]  ;;  %v8058_v3 = vld [vmem:[#allocation8 + $0x484] sm:$0xf] }
 0x1d6   :  { %4886 = vmatpush.bf16.msrb.mxu0 %v6859_v60  ;;  %9084 = vst [vmem:[#allocation25_spill] sm:$0xff] %v8838_v19  ;;  %4918 = vmatpush.bf16.msrb.mxu2 %v7123_v41  ;;  %v2570_v60 = vpop.f32.mrf.mxu3  ;;  %v2515_v46 = vpop.f32.mrf.mxu0  ;;  %v7276_v41 = vld [vmem:[#allocation8 + $0x654] sm:$0xf0] }
 0x1d7   :  { %4905 = vmatpush.bf16.msrb.mxu1 %v6955_v20  ;;  %v7231_v20 = vor.u32 %v8103_v42, %v7228_v44  ;;  %4792 = vmatmul.bf16.vlgmr.msrb.gmra.mxu3 %v8838_v19  ;;  %v2516_v30 = vadd.f32 %v2515_v46, %v2497_v9  ;;  %v7207_v42 = vor.u32 %v8097_v45, %v7204_v1  ;;  %v7084_v44 = vld [vmem:[#allocation8 + $0x4d4] sm:$0xf0]  ;;  %v8133_v45 = vld [vmem:[#allocation8 + $0x6dc] sm:$0xf]  ;;  %v7348_v1 = vld [vmem:[#allocation8 + $0x6e4] sm:$0xf0] }
 0x1d8   :  { %v2571_v25 = vadd.f32 %v2570_v60, %v2552_v35  ;;  %v7279_v46 = vor.u32 %v8115_v49, %v7276_v41  ;;  %v8094_v60 = vld [vmem:[#allocation8 + $0x5a4] sm:$0xf]  ;;  %v8061_v49 = vld [vmem:[#allocation8 + $0x49c] sm:$0xf] }
 0x1d9   :  { %4936 = vmatpush.bf16.msrb.mxu3 %v7231_v20  ;;  %v2621_v7 = vmax.f32 %v2516_v30, 0.0  ;;  %v8849_v2 = vpop.f32.mrf.mxu1  ;;  %v7087_v20 = vor.u32 %v8067_v54, %v7084_v44  ;;  %v7192_v30 = vld [vmem:[#allocation8 + $0x5ac] sm:$0xf0]  ;;  %4887 = vmatmul.bf16.vlgmr.msrb.gmra.mxu0 %v8604_v24  ;;  %v7351_v44 = vor.u32 %v8133_v45, %v7348_v1  ;;  %v7931_v45 = vld [vmem:[#allocation8 + $0x88] sm:$0xf0] }
 0x1da   :  { %4955 = vmatpush.bf16.msra.mxu0 %v7327_v62  ;;  %v8118_v62 = vld [vmem:[#allocation8 + $0x664] sm:$0xf]  ;;  %4919 = vmatpush.bf16.msrb.mxu2 %v7111_v32  ;;  %v7264_v32 = vld [vmem:[#allocation8 + $0x63c] sm:$0xf0] }
 0x1db   :  { %4974 = vmatpush.bf16.msra.mxu1 %v7423_v29  ;;  %v8070_v29 = vld [vmem:[#allocation8 + $0x4e4] sm:$0xf]  ;;  %v8843_v47 = vpack.c.bf16 %v2621_v7, %v2609_v51  ;;  %v7291_v16 = vor.u32 %v8118_v62, %v7288_v15  ;;  %v7195_v62 = vor.u32 %v8094_v60, %v7192_v30  ;;  %v7072_v15 = vld [vmem:[#allocation8 + $0x4bc] sm:$0xf0]  ;;  %v7267_v7 = vor.u32 %v8112_v55, %v7264_v32  ;;  %v7048_v55 = vld [vmem:[#allocation8 + $0x48c] sm:$0xf0] }
 0x1dc   :  { %v7099_v5 = vor.u32 %v8070_v29, %v7096_v0  ;;  %v8136_v29 = vld [vmem:[#allocation8 + $0x6f4] sm:$0xf]  ;;  %v7360_v51 = vld [vmem:[#allocation8 + $0x6fc] sm:$0xf0]  ;;  %v7252_v0 = vld [vmem:[#allocation8 + $0x624] sm:$0xf0]  ;;  %v7051_v32 = vor.u32 %v8058_v3, %v7048_v55 }
 0x1dd   :  { %9085 = vst [vmem:[#allocation26_spill] sm:$0xff] %v8843_v47  ;;  %4937 = vmatpush.bf16.msrb.mxu3 %v7219_v40  ;;  %4778 = vmatmul.bf16.gmra.mxu2 %v8843_v47  ;;  %v8109_v40 = vld [vmem:[#allocation8 + $0x61c] sm:$0xf]  ;;  %v7363_v35 = vor.u32 %v8136_v29, %v7360_v51  ;;  %v7516_v51 = vld [vmem:[#allocation8 + $0x834] sm:$0xf0] }
 0x1de   :  { %4956 = vmatpush.bf16.msra.mxu0 %v7315_v11  ;;  %4920 = vmatpush.bf16.msrb.mxu2 %v7099_v5  ;;  %v7387_v11 = vor.u32 %v8142_v37, %v7384_v8  ;;  %v8847_v17 = vpop.f32.mrf.mxu0  ;;  %v2572_v10 = vpop.f32.mrf.mxu3  ;;  %v8091_v37 = vld [vmem:[#allocation8 + $0x58c] sm:$0xf]  ;;  %v7060_v8 = vld [vmem:[#allocation8 + $0x4a4] sm:$0xf0]  ;;  %v7255_v54 = vor.u32 %v8109_v40, %v7252_v0  ;;  %v6658_v0 = vld [vmem:[#allocation8 + $0x170] sm:$0xf] }
 0x1df   :  { %4975 = vmatpush.bf16.msra.mxu1 %v7411_v50  ;;  %v2553_v50 = vpop.f32.mrf.mxu2  ;;  %v6526_v55 = vld [vmem:[#allocation8 + $0x68] sm:$0xf] }
 0x1e0   :  { %v2554_v9 = vadd.f32 %v2553_v50, %v2535_v39  ;;  %4835 = vmatmul.bf16.gmra.mxu1 %v8542_v59  ;;  %v8106_v50 = vld [vmem:[#allocation8 + $0x604] sm:$0xf] }
 0x1e1   :  { %4938 = vmatpush.bf16.msrb.mxu3 %v7207_v42  ;;  %v7240_v42 = vld [vmem:[#allocation8 + $0x60c] sm:$0xf0] }
 0x1e2   :  { %4957 = vmatpush.bf16.msra.mxu0 %v7303_v28  ;;  %v2573_v4 = vadd.f32 %v2572_v10, %v2554_v9  ;;  %4921 = vmatpush.bf16.msrb.mxu2 %v7087_v20  ;;  %v8064_v28 = vld [vmem:[#allocation8 + $0x4b4] sm:$0xf]  ;;  %v7168_v20 = vld [vmem:[#allocation8 + $0x57c] sm:$0xf0]  ;;  %v7937_v10 = vld [vmem:[#allocation8 + $0xb8] sm:$0xf0]  ;;  %v7243_v60 = vor.u32 %v8106_v50, %v7240_v42 }
 0x1e3   :  { %4976 = vmatpush.bf16.msra.mxu1 %v7399_v21  ;;  %v2610_v21 = vmax.f32 %v2571_v25, 0.0  ;;  %v7075_v63 = vor.u32 %v8064_v28, %v7072_v15  ;;  %v8858_v25 = vpop.f32.mrf.mxu1  ;;  %v8088_v9 = vld [vmem:[#allocation8 + $0x574] sm:$0xf]  ;;  %v6563_v28 = vor.u32 %v7937_v10, %v6562_v31  ;;  %v7156_v15 = vld [vmem:[#allocation8 + $0x564] sm:$0xf0] }
 0x1e4   :  { %v2622_v13 = vmax.f32 %v2573_v4, 0.0  ;;  %v7336_v4 = vld [vmem:[#allocation8 + $0x6cc] sm:$0xf0]  ;;  %v8199_v31 = vld [vmem:[#allocation8 + $0x8ec] sm:$0xf] }
 0x1e5   :  { %4939 = vmatpush.bf16.msrb.mxu3 %v7195_v62  ;;  %v8085_v62 = vld [vmem:[#allocation8 + $0x55c] sm:$0xf]  ;;  %v7612_v10 = vld [vmem:[#allocation8 + $0x8f4] sm:$0xf0] }
 0x1e6   :  { %4958 = vmatpush.bf16.msra.mxu0 %v7291_v16  ;;  %v8853_v5 = vpack.c.bf16 %v2622_v13, %v2610_v21  ;;  %4922 = vmatpush.bf16.msrb.mxu2 %v7075_v63  ;;  %v7180_v16 = vld [vmem:[#allocation8 + $0x594] sm:$0xf0]  ;;  %v8856_v39 = vpop.f32.mrf.mxu0  ;;  %v8175_v21 = vld [vmem:[#allocation8 + $0x82c] sm:$0xf]  ;;  %v7934_v63 = vld [vmem:[#allocation8 + $0xa0] sm:$0xf0]  ;;  %v7159_v29 = vor.u32 %v8085_v62, %v7156_v15 }
 0x1e7   :  { %4977 = vmatpush.bf16.msra.mxu1 %v7387_v11  ;;  %v7183_v41 = vor.u32 %v8091_v37, %v7180_v16  ;;  %v7063_v11 = vor.u32 %v8061_v49, %v7060_v8  ;;  %v6550_v13 = vld [vmem:[#allocation8 + $0x98] sm:$0xf]  ;;  %v7519_v40 = vor.u32 %v8175_v21, %v7516_v51  ;;  %v8082_v49 = vld [vmem:[#allocation8 + $0x544] sm:$0xf]  ;;  %v8172_v8 = vld [vmem:[#allocation8 + $0x814] sm:$0xf] }
 0x1e8   :  { %4797 = vmatmul.bf16.gmra.mxu3 %v8853_v5  ;;  %v6551_v16 = vor.u32 %v7934_v63, %v6550_v13  ;;  %v7955_v62 = vld [vmem:[#allocation8 + $0x148] sm:$0xf0]  ;;  %v8196_v13 = vld [vmem:[#allocation8 + $0x8d4] sm:$0xf]  ;;  %v7600_v63 = vld [vmem:[#allocation8 + $0x8dc] sm:$0xf0] }
 0x1e9   :  { %4940 = vmatpush.bf16.msrb.mxu3 %v7183_v41  ;;  %v7144_v41 = vld [vmem:[#allocation8 + $0x54c] sm:$0xf0]  ;;  %4892 = vmatmul.bf16.gmra.mxu0 %v8625_v48 }
 0x1ea   :  { %4959 = vmatpush.bf16.msra.mxu0 %v7279_v46  ;;  %4923 = vmatpush.bf16.msrb.mxu2 %v7063_v11  ;;  %v7171_v46 = vor.u32 %v8088_v9, %v7168_v20  ;;  %v6538_v11 = vld [vmem:[#allocation8 + $0x80] sm:$0xf]  ;;  %v7147_v1 = vor.u32 %v8082_v49, %v7144_v41  ;;  %v7958_v9 = vld [vmem:[#allocation8 + $0x160] sm:$0xf0]  ;;  %v6514_v51 = vld [vmem:[#allocation8 + $0x50] sm:$0xf] }
 0x1eb   :  { %4978 = vmatpush.bf16.msra.mxu1 %v7375_v22  ;;  %v8130_v22 = vld [vmem:[#allocation8 + $0x6c4] sm:$0xf]  ;;  %v8865_v50 = vpop.f32.mrf.mxu1  ;;  %v6539_v3 = vor.u32 %v7931_v45, %v6538_v11  ;;  %v7952_v49 = vld [vmem:[#allocation8 + $0x130] sm:$0xf0]  ;;  %v8193_v45 = vld [vmem:[#allocation8 + $0x8bc] sm:$0xf] }
 0x1ec   :  { %v7339_v30 = vor.u32 %v8130_v22, %v7336_v4  ;;  %v7615_v22 = vor.u32 %v8199_v31, %v7612_v10  ;;  %v7492_v4 = vld [vmem:[#allocation8 + $0x804] sm:$0xf0]  ;;  %v6610_v10 = vld [vmem:[#allocation8 + $0x110] sm:$0xf] }
 0x1ed   :  { %4941 = vmatpush.bf16.msrb.mxu3 %v7171_v46  ;;  %4849 = vmatmul.bf16.vlgmr.msra.gmra.mxu2 %v8559_v57  ;;  %v8169_v46 = vld [vmem:[#allocation8 + $0x7fc] sm:$0xf] }
 0x1ee   :  { %4960 = vmatpush.bf16.msra.mxu0 %v7267_v7  ;;  %4924 = vmatpush.bf16.msrb.mxu2 %v7051_v32  ;;  %v8861_v7 = vpop.f32.mrf.mxu0  ;;  %v7928_v32 = vld [vmem:[#allocation8 + $0x70] sm:$0xf0] }
 0x1ef   :  { %4979 = vmatpush.bf16.msra.mxu1 %v7363_v35  ;;  %v7961_v35 = vld [vmem:[#allocation8 + $0x178] sm:$0xf0]  ;;  %v6527_v21 = vor.u32 %v7928_v32, %v6526_v55 }
 0x1f0   :  { %4906 = vmatmul.bf16.vlgmr.msrb.gmra.mxu1 %v8633_v58  ;;  %v6659_v37 = vor.u32 %v7961_v35, %v6658_v0  ;;  %v7603_v0 = vor.u32 %v8196_v13, %v7600_v63  ;;  %v7480_v35 = vld [vmem:[#allocation8 + $0x7ec] sm:$0xf0]  ;;  %v8877_v13 = vpop.f32.mrf.mxu2 }
 0x1f1   :  { %4942 = vmatpush.bf16.msrb.mxu3 %v7159_v29  ;;  %v8166_v29 = vld [vmem:[#allocation8 + $0x7e4] sm:$0xf] }
 0x1f2   :  { %4961 = vmatpush.bf16.msra.mxu0 %v7255_v54  ;;  %4993 = vmatpush.bf16.msra.mxu2 %v7519_v40  ;;  %v7504_v54 = vld [vmem:[#allocation8 + $0x81c] sm:$0xf0]  ;;  %v7925_v40 = vld [vmem:[#allocation8 + $0x58] sm:$0xf0] }
 0x1f3   :  { %4980 = vmatpush.bf16.msra.mxu1 %v7351_v44  ;;  %v7507_v42 = vor.u32 %v8172_v8, %v7504_v54  ;;  %v6646_v44 = vld [vmem:[#allocation8 + $0x158] sm:$0xf]  ;;  %v8870_v8 = vpop.f32.mrf.mxu1  ;;  %v6515_v11 = vor.u32 %v7925_v40, %v6514_v51  ;;  %v8163_v54 = vld [vmem:[#allocation8 + $0x7cc] sm:$0xf]  ;;  %v7946_v51 = vld [vmem:[#allocation8 + $0x100] sm:$0xf0] }
 0x1f4   :  { %v6647_v20 = vor.u32 %v7958_v9, %v6646_v44  ;;  %v7922_v44 = vld [vmem:[#allocation8 + $0x40] sm:$0xf0]  ;;  %v6478_v40 = vld [vmem:[#allocation8 + $0x8] sm:$0xf] }
 0x1f5   :  { %4943 = vmatpush.bf16.msrb.mxu3 %v7147_v1  ;;  %v7588_v1 = vld [vmem:[#allocation8 + $0x8c4] sm:$0xf0] }
 0x1f6   :  { %4962 = vmatpush.bf16.msra.mxu0 %v7243_v60  ;;  %4994 = vmatpush.bf16.msra.mxu2 %v7507_v42  ;;  %v8868_v60 = vpop.f32.mrf.mxu0  ;;  %v6502_v42 = vld [vmem:[#allocation8 + $0x38] sm:$0xf]  ;;  %v7591_v9 = vor.u32 %v8193_v45, %v7588_v1  ;;  %v7444_v1 = vld [vmem:[#allocation8 + $0x7a4] sm:$0xf0] }
 0x1f7   :  { %4981 = vmatpush.bf16.msra.mxu1 %v7339_v30  ;;  %v7495_v30 = vor.u32 %v8169_v46, %v7492_v4  ;;  %v7949_v46 = vld [vmem:[#allocation8 + $0x118] sm:$0xf0]  ;;  %v6503_v32 = vor.u32 %v7922_v44, %v6502_v42  ;;  %v7576_v4 = vld [vmem:[#allocation8 + $0x8ac] sm:$0xf0] }
 0x1f8   :  { %4868 = vmatmul.bf16.vlgmr.msra.gmra.mxu3 %v8571_v53  ;;  %v6611_v55 = vor.u32 %v7949_v46, %v6610_v10  ;;  %v8033_v44 = vld [vmem:[#allocation8 + $0x3b8] sm:$0xf0]  ;;  %v8184_v46 = vld [vmem:[#allocation8 + $0x874] sm:$0xf] }
 0x1f9   :  { %5012 = vmatpush.bf16.msra.mxu3 %v7615_v22  ;;  %v8190_v22 = vld [vmem:[#allocation8 + $0x8a4] sm:$0xf]  ;;  %4963 = vmatmul.bf16.vlgmr.msra.gmra.mxu0 %v8771_v43 }
 0x1fa   :  { %5031 = vmatpush.bf16.msrb.mxu0 %v6563_v28  ;;  %v6634_v28 = vld [vmem:[#allocation8 + $0x140] sm:$0xf]  ;;  %4995 = vmatpush.bf16.msra.mxu2 %v7495_v30  ;;  %v8160_v30 = vld [vmem:[#allocation8 + $0x7b4] sm:$0xf] }
 0x1fb   :  { %5050 = vmatpush.bf16.msrb.mxu1 %v6659_v37  ;;  %v6635_v15 = vor.u32 %v7955_v62, %v6634_v28  ;;  %v7483_v37 = vor.u32 %v8166_v29, %v7480_v35  ;;  %v6490_v28 = vld [vmem:[#allocation8 + $0x20] sm:$0xf]  ;;  %v7919_v62 = vld [vmem:[#allocation8 + $0x28] sm:$0xf0]  ;;  %v6598_v29 = vld [vmem:[#allocation8 + $0xf8] sm:$0xf] }
 0x1fc   :  { %v6491_v35 = vor.u32 %v7919_v62, %v6490_v28 }
 0x1fd   :  { %5013 = vmatpush.bf16.msra.mxu3 %v7603_v0  ;;  %4854 = vmatmul.bf16.gmra.mxu2 %v8582_v23  ;;  %v6599_v0 = vor.u32 %v7946_v51, %v6598_v29  ;;  %v6934_v29 = vld [vmem:[#allocation8 + $0x398] sm:$0xf]  ;;  %v8030_v51 = vld [vmem:[#allocation8 + $0x3a0] sm:$0xf0] }
 0x1fe   :  { %5032 = vmatpush.bf16.msrb.mxu0 %v6551_v16  ;;  %v6622_v16 = vld [vmem:[#allocation8 + $0x128] sm:$0xf]  ;;  %4996 = vmatpush.bf16.msra.mxu2 %v7483_v37  ;;  %v8187_v37 = vld [vmem:[#allocation8 + $0x88c] sm:$0xf] }
 0x1ff   :  { %5051 = vmatpush.bf16.msrb.mxu1 %v6647_v20  ;;  %v6623_v41 = vor.u32 %v7952_v49, %v6622_v16  ;;  %v7468_v20 = vld [vmem:[#allocation8 + $0x7d4] sm:$0xf0]  ;;  %v8157_v49 = vld [vmem:[#allocation8 + $0x79c] sm:$0xf] }
 0x200   :  { %v7471_v31 = vor.u32 %v8163_v54, %v7468_v20  ;;  %4911 = vmatmul.bf16.gmra.mxu1 %v8655_v34  ;;  %v7564_v16 = vld [vmem:[#allocation8 + $0x894] sm:$0xf0]  ;;  %v8879_v54 = vpop.f32.mrf.mxu1  ;;  %v6586_v20 = vld [vmem:[#allocation8 + $0xe0] sm:$0xf] }
 0x201   :  { %5014 = vmatpush.bf16.msra.mxu3 %v7591_v9  ;;  %v7567_v45 = vor.u32 %v8187_v37, %v7564_v16  ;;  %v7447_v9 = vor.u32 %v8157_v49, %v7444_v1  ;;  %v8181_v16 = vld [vmem:[#allocation8 + $0x85c] sm:$0xf]  ;;  %v6922_v1 = vld [vmem:[#allocation8 + $0x380] sm:$0xf] }
 0x202   :  { %5033 = vmatpush.bf16.msrb.mxu0 %v6539_v3  ;;  %v8873_v3 = vpop.f32.mrf.mxu0  ;;  %4997 = vmatpush.bf16.msra.mxu2 %v7471_v31  ;;  %v7943_v31 = vld [vmem:[#allocation8 + $0xe8] sm:$0xf0] }
 0x203   :  { %5052 = vmatpush.bf16.msrb.mxu1 %v6635_v15  ;;  %v7579_v15 = vor.u32 %v8190_v22, %v7576_v4  ;;  %v6587_v10 = vor.u32 %v7943_v31, %v6586_v20  ;;  %v8057_v20 = vld [vmem:[#allocation8 + $0x478] sm:$0xf0]  ;;  %v8027_v31 = vld [vmem:[#allocation8 + $0x388] sm:$0xf0] }
 0x205   :  { %5015 = vmatpush.bf16.msra.mxu3 %v7579_v15  ;;  %v6574_v15 = vld [vmem:[#allocation8 + $0xc8] sm:$0xf] }
 0x206   :  { %5034 = vmatpush.bf16.msrb.mxu0 %v6527_v21  ;;  %v7456_v21 = vld [vmem:[#allocation8 + $0x7bc] sm:$0xf0] }
 0x207   :  { %5053 = vmatpush.bf16.msrb.mxu1 %v6623_v41  ;;  %v7459_v63 = vor.u32 %v8160_v30, %v7456_v21  ;;  %v7916_v41 = vld [vmem:[#allocation8 + $0x10] sm:$0xf0]  ;;  %v7432_v30 = vld [vmem:[#allocation8 + $0x78c] sm:$0xf0] }
 0x208   :  { %4873 = vmatmul.bf16.gmra.mxu3 %v8591_v27  ;;  %v6479_v22 = vor.u32 %v7916_v41, %v6478_v40  ;;  %v7940_v21 = vld [vmem:[#allocation8 + $0xd0] sm:$0xf0]  ;;  %v6754_v40 = vld [vmem:[#allocation8 + $0x230] sm:$0xf]  ;;  %v7985_v41 = vld [vmem:[#allocation8 + $0x238] sm:$0xf0] }
 0x209   :  { %4998 = vmatpush.bf16.msra.mxu2 %v7459_v63  ;;  %5016 = vmatpush.bf16.msra.mxu3 %v7567_v45  ;;  %v8884_v63 = vpop.f32.mrf.mxu3  ;;  %v6575_v37 = vor.u32 %v7940_v21, %v6574_v15  ;;  %v6935_v45 = vor.u32 %v8030_v51, %v6934_v29  ;;  %v7030_v15 = vld [vmem:[#allocation8 + $0x458] sm:$0xf]  ;;  %v8054_v21 = vld [vmem:[#allocation8 + $0x460] sm:$0xf0]  ;;  %v6910_v29 = vld [vmem:[#allocation8 + $0x368] sm:$0xf] }
 0x20a   :  { %5035 = vmatpush.bf16.msrb.mxu0 %v6515_v11  ;;  %v6946_v11 = vld [vmem:[#allocation8 + $0x3b0] sm:$0xf]  ;;  %v8882_v42 = vpop.f32.mrf.mxu0  ;;  %v8024_v51 = vld [vmem:[#allocation8 + $0x370] sm:$0xf0]  ;;  %v8102_v27 = vld [vmem:[#allocation8 + $0x5e0] sm:$0xf0] }
 0x20b   :  { %5054 = vmatpush.bf16.msrb.mxu1 %v6611_v55  ;;  %v7552_v55 = vld [vmem:[#allocation8 + $0x87c] sm:$0xf0]  ;;  %v6947_v28 = vor.u32 %v8033_v44, %v6946_v11  ;;  %v6755_v44 = vor.u32 %v7985_v41, %v6754_v40  ;;  %4968 = vmatmul.bf16.gmra.mxu0 %v8795_v56  ;;  %v8009_v40 = vld [vmem:[#allocation8 + $0x2f8] sm:$0xf0]  ;;  %v6898_v41 = vld [vmem:[#allocation8 + $0x350] sm:$0xf] }
 0x20c   :  { %v7555_v4 = vor.u32 %v8184_v46, %v7552_v55  ;;  %v8178_v46 = vld [vmem:[#allocation8 + $0x844] sm:$0xf]  ;;  %v7528_v55 = vld [vmem:[#allocation8 + $0x84c] sm:$0xf0]  ;;  %v6670_v56 = vld [vmem:[#allocation8 + $0x188] sm:$0xf] }
 0x20d   :  { %4999 = vmatpush.bf16.msra.mxu2 %v7447_v9  ;;  %v7042_v9 = vld [vmem:[#allocation8 + $0x470] sm:$0xf] }
 0x20e   :  { %5036 = vmatpush.bf16.msrb.mxu0 %v6503_v32  ;;  %v8154_v32 = vld [vmem:[#allocation8 + $0x784] sm:$0xf]  ;;  %5017 = vmatpush.bf16.msra.mxu3 %v7555_v4  ;;  %v6742_v4 = vld [vmem:[#allocation8 + $0x218] sm:$0xf] }
 0x20f   :  { %5055 = vmatpush.bf16.msrb.mxu1 %v6599_v0  ;;  %v7435_v62 = vor.u32 %v8154_v32, %v7432_v30  ;;  %v8886_v0 = vpop.f32.mrf.mxu2  ;;  %4925 = vmatmul.bf16.vlgmr.msrb.gmra.mxu2 %v8708_v36  ;;  %v8892_v32 = vpop.f32.mrf.mxu1  ;;  %v7982_v30 = vld [vmem:[#allocation8 + $0x220] sm:$0xf0] }
 0x210   :  { %4982 = vmatmul.bf16.vlgmr.msra.gmra.mxu1 %v8788_v52  ;;  %v7318_v52 = vld [vmem:[#allocation8 + $0x698] sm:$0xf] }
 0x211   :  { %5000 = vmatpush.bf16.msra.mxu2 %v7435_v62  ;;  %v6923_v62 = vor.u32 %v8027_v31, %v6922_v1  ;;  %v6911_v1 = vor.u32 %v8024_v51, %v6910_v29  ;;  %v8021_v31 = vld [vmem:[#allocation8 + $0x358] sm:$0xf0]  ;;  %v8048_v29 = vld [vmem:[#allocation8 + $0x430] sm:$0xf0]  ;;  %v6886_v51 = vld [vmem:[#allocation8 + $0x338] sm:$0xf] }
 0x212   :  { %5037 = vmatpush.bf16.msrb.mxu0 %v6491_v35  ;;  %v7540_v35 = vld [vmem:[#allocation8 + $0x864] sm:$0xf0]  ;;  %v8889_v11 = vpop.f32.mrf.mxu0 }
 0x213   :  { %5056 = vmatpush.bf16.msrb.mxu1 %v6587_v10  ;;  %v7543_v49 = vor.u32 %v8181_v16, %v7540_v35  ;;  %v7043_v10 = vor.u32 %v8057_v20, %v7042_v9  ;;  %v7031_v16 = vor.u32 %v8054_v21, %v7030_v15  ;;  %v6850_v35 = vld [vmem:[#allocation8 + $0x2f0] sm:$0xf]  ;;  %v7979_v9 = vld [vmem:[#allocation8 + $0x208] sm:$0xf0]  ;;  %v7976_v21 = vld [vmem:[#allocation8 + $0x1f0] sm:$0xf0] }
 0x215   :  { %5018 = vmatpush.bf16.msra.mxu3 %v7543_v49  ;;  %5069 = vmatpush.bf16.msrb.mxu2 %v6755_v44  ;;  %v8895_v49 = vpop.f32.mrf.mxu3  ;;  %v6851_v44 = vor.u32 %v8009_v40, %v6850_v35  ;;  %v6899_v40 = vor.u32 %v8021_v31, %v6898_v41  ;;  %v6874_v41 = vld [vmem:[#allocation8 + $0x320] sm:$0xf] }
 0x216   :  { %5038 = vmatpush.bf16.msrb.mxu0 %v6479_v22  ;;  %v7531_v22 = vor.u32 %v8178_v46, %v7528_v55  ;;  %v7018_v46 = vld [vmem:[#allocation8 + $0x440] sm:$0xf]  ;;  %v8051_v55 = vld [vmem:[#allocation8 + $0x448] sm:$0xf0] }
 0x217   :  { %5057 = vmatpush.bf16.msrb.mxu1 %v6575_v37  ;;  %v6730_v37 = vld [vmem:[#allocation8 + $0x200] sm:$0xf]  ;;  %v8897_v20 = vpop.f32.mrf.mxu2  ;;  %v8902_v35 = vpop.f32.mrf.mxu1 }
 0x218   :  { %4944 = vmatmul.bf16.vlgmr.msrb.gmra.mxu3 %v8710_v61 }
 0x219   :  { %5019 = vmatpush.bf16.msra.mxu3 %v7531_v22  ;;  %v7019_v22 = vor.u32 %v8051_v55, %v7018_v46  ;;  %v8003_v46 = vld [vmem:[#allocation8 + $0x2c8] sm:$0xf0]  ;;  %v6706_v55 = vld [vmem:[#allocation8 + $0x1d0] sm:$0xf] }
 0x21a   :  { %5107 = vmatpush.bf16.msra.mxu0 %v6947_v28  ;;  %v6743_v28 = vor.u32 %v7982_v30, %v6742_v4  ;;  %v6838_v4 = vld [vmem:[#allocation8 + $0x2d8] sm:$0xf]  ;;  %v8006_v30 = vld [vmem:[#allocation8 + $0x2e0] sm:$0xf0] }
 0x21b   :  { %5126 = vmatpush.bf16.msra.mxu1 %v7043_v10  ;;  %v6731_v10 = vor.u32 %v7979_v9, %v6730_v37  ;;  %v6839_v15 = vor.u32 %v8006_v30, %v6838_v4  ;;  %v8018_v37 = vld [vmem:[#allocation8 + $0x340] sm:$0xf0]  ;;  %v6994_v30 = vld [vmem:[#allocation8 + $0x410] sm:$0xf]  ;;  %5039 = vmatmul.bf16.vlgmr.msrb.gmra.mxu0 %v8487_v18 }
 0x21c   :  { %5070 = vmatpush.bf16.msrb.mxu2 %v6743_v28  ;;  %v6718_v28 = vld [vmem:[#allocation8 + $0x1e8] sm:$0xf] }
 0x21d   :  { %5088 = vmatpush.bf16.msrb.mxu3 %v6851_v44  ;;  %v6826_v44 = vld [vmem:[#allocation8 + $0x2c0] sm:$0xf] }
 0x21e   :  { %5108 = vmatpush.bf16.msra.mxu0 %v6935_v45  ;;  %v8900_v45 = vpop.f32.mrf.mxu0 }
 0x21f   :  { %5127 = vmatpush.bf16.msra.mxu1 %v7031_v16  ;;  %v6719_v16 = vor.u32 %v7976_v21, %v6718_v28  ;;  %4930 = vmatmul.bf16.gmra.mxu2 %v8748_v38  ;;  %v8045_v28 = vld [vmem:[#allocation8 + $0x418] sm:$0xf0]  ;;  %v8907_v21 = vpop.f32.mrf.mxu3  ;;  %v8012_v38 = vld [vmem:[#allocation8 + $0x310] sm:$0xf0]  ;;  %v8913_v61 = vpop.f32.mrf.mxu1 }
 0x220   :  { %5071 = vmatpush.bf16.msrb.mxu2 %v6731_v10  ;;  %v6827_v10 = vor.u32 %v8003_v46, %v6826_v44  ;;  %4987 = vmatmul.bf16.gmra.mxu1 %v8813_v14  ;;  %v6694_v46 = vld [vmem:[#allocation8 + $0x1b8] sm:$0xf]  ;;  %v8042_v14 = vld [vmem:[#allocation8 + $0x400] sm:$0xf0] }
 0x221   :  { %5089 = vmatpush.bf16.msrb.mxu3 %v6839_v15  ;;  %v8015_v15 = vld [vmem:[#allocation8 + $0x328] sm:$0xf0] }
 0x222   :  { %5109 = vmatpush.bf16.msra.mxu0 %v6923_v62  ;;  %v7006_v62 = vld [vmem:[#allocation8 + $0x428] sm:$0xf] }
 0x223   :  { %5128 = vmatpush.bf16.msra.mxu1 %v7019_v22  ;;  %v7007_v9 = vor.u32 %v8048_v29, %v7006_v62  ;;  %v7973_v22 = vld [vmem:[#allocation8 + $0x1d8] sm:$0xf0]  ;;  %v6814_v62 = vld [vmem:[#allocation8 + $0x2a8] sm:$0xf]  ;;  %v8000_v29 = vld [vmem:[#allocation8 + $0x2b0] sm:$0xf0] }
 0x224   :  { %5072 = vmatpush.bf16.msrb.mxu2 %v6719_v16  ;;  %v6707_v31 = vor.u32 %v7973_v22, %v6706_v55  ;;  %v6995_v16 = vor.u32 %v8045_v28, %v6994_v30  ;;  %v6815_v44 = vor.u32 %v8000_v29, %v6814_v62  ;;  %v6862_v55 = vld [vmem:[#allocation8 + $0x308] sm:$0xf]  ;;  %v6982_v22 = vld [vmem:[#allocation8 + $0x3f8] sm:$0xf]  ;;  %v8129_v30 = vld [vmem:[#allocation8 + $0x6b8] sm:$0xf0] }
 0x225   :  { %5090 = vmatpush.bf16.msrb.mxu3 %v6827_v10  ;;  %v7330_v10 = vld [vmem:[#allocation8 + $0x6b0] sm:$0xf]  ;;  %v6983_v28 = vor.u32 %v8042_v14, %v6982_v22  ;;  %v7997_v62 = vld [vmem:[#allocation8 + $0x298] sm:$0xf0]  ;;  %v6682_v29 = vld [vmem:[#allocation8 + $0x1a0] sm:$0xf] }
 0x226   :  { %5110 = vmatpush.bf16.msra.mxu0 %v6911_v1  ;;  %v8905_v4 = vpop.f32.mrf.mxu0  ;;  %v6887_v1 = vor.u32 %v8018_v37, %v6886_v51  ;;  %v6875_v37 = vor.u32 %v8015_v15, %v6874_v41  ;;  %v6863_v41 = vor.u32 %v8012_v38, %v6862_v55  ;;  %v6790_v22 = vld [vmem:[#allocation8 + $0x278] sm:$0xf]  ;;  %v6958_v38 = vld [vmem:[#allocation8 + $0x3c8] sm:$0xf]  ;;  %v8036_v55 = vld [vmem:[#allocation8 + $0x3d0] sm:$0xf0] }
 0x227   :  { %5129 = vmatpush.bf16.msra.mxu1 %v7007_v9  ;;  %v8910_v9 = vpop.f32.mrf.mxu2  ;;  %v8918_v36 = vpop.f32.mrf.mxu3 }
 0x228   :  { %5073 = vmatpush.bf16.msrb.mxu2 %v6707_v31  ;;  %v6802_v31 = vld [vmem:[#allocation8 + $0x290] sm:$0xf]  ;;  %4949 = vmatmul.bf16.gmra.mxu3 %v8750_v6 }
 0x229   :  { %5091 = vmatpush.bf16.msrb.mxu3 %v6815_v44  ;;  %v6803_v18 = vor.u32 %v7997_v62, %v6802_v31  ;;  %v6970_v44 = vld [vmem:[#allocation8 + $0x3e0] sm:$0xf]  ;;  %v7964_v62 = vld [vmem:[#allocation8 + $0x190] sm:$0xf0] }
 0x22a   :  { %5111 = vmatpush.bf16.msra.mxu0 %v6899_v40  ;;  %v7970_v40 = vld [vmem:[#allocation8 + $0x1c0] sm:$0xf0]  ;;  %v6671_v6 = vor.u32 %v7964_v62, %v6670_v56  ;;  %v6766_v62 = vld [vmem:[#allocation8 + $0x248] sm:$0xf] }
 0x22b   :  { %5130 = vmatpush.bf16.msra.mxu1 %v6995_v16  ;;  %v6695_v51 = vor.u32 %v7970_v40, %v6694_v46  ;;  %v7967_v16 = vld [vmem:[#allocation8 + $0x1a8] sm:$0xf0]  ;;  %v7331_v40 = vor.u32 %v8129_v30, %v7330_v10  ;;  %v7306_v30 = vld [vmem:[#allocation8 + $0x680] sm:$0xf]  ;;  %5044 = vmatmul.bf16.gmra.mxu0 %v8510_v33  ;;  %v7234_v33 = vld [vmem:[#allocation8 + $0x5f0] sm:$0xf] }
 0x22c   :  { %v6683_v15 = vor.u32 %v7967_v16, %v6682_v29  ;;  %v8039_v46 = vld [vmem:[#allocation8 + $0x3e8] sm:$0xf0]  ;;  %v8922_v16 = vpop.f32.mrf.mxu1 }
 0x22d   :  { %5074 = vmatpush.bf16.msrb.mxu2 %v6695_v51  ;;  %5092 = vmatpush.bf16.msrb.mxu3 %v6803_v18  ;;  %v6971_v14 = vor.u32 %v8039_v46, %v6970_v44  ;;  %v7994_v51 = vld [vmem:[#allocation8 + $0x280] sm:$0xf0]  ;;  %v8123_v29 = vld [vmem:[#allocation8 + $0x688] sm:$0xf0]  ;;  %v6959_v18 = vor.u32 %v8036_v55, %v6958_v38  ;;  %v7138_v46 = vld [vmem:[#allocation8 + $0x530] sm:$0xf] }
 0x22e   :  { %5112 = vmatpush.bf16.msra.mxu0 %v6887_v1  ;;  %v8916_v1 = vpop.f32.mrf.mxu0  ;;  %v6791_v31 = vor.u32 %v7994_v51, %v6790_v22  ;;  %v7991_v44 = vld [vmem:[#allocation8 + $0x268] sm:$0xf0]  ;;  %v7426_v22 = vld [vmem:[#allocation8 + $0x770] sm:$0xf]  ;;  %v8153_v51 = vld [vmem:[#allocation8 + $0x778] sm:$0xf0] }
 0x22f   :  { %5131 = vmatpush.bf16.msra.mxu1 %v6983_v28  ;;  %v8126_v28 = vld [vmem:[#allocation8 + $0x6a0] sm:$0xf0]  ;;  %5001 = vmatmul.bf16.vlgmr.msra.gmra.mxu2 %v8827_v12  ;;  %v7988_v38 = vld [vmem:[#allocation8 + $0x250] sm:$0xf0]  ;;  %v7126_v55 = vld [vmem:[#allocation8 + $0x518] sm:$0xf] }
 0x230   :  { %v7319_v10 = vor.u32 %v8126_v28, %v7318_v52  ;;  %5058 = vmatmul.bf16.vlgmr.msrb.gmra.mxu1 %v8525_v26  ;;  %v7307_v52 = vor.u32 %v8123_v29, %v7306_v30  ;;  %v7294_v28 = vld [vmem:[#allocation8 + $0x668] sm:$0xf]  ;;  %v8929_v12 = vld [vmem:[#allocation10] sm:$0x7]  ;;  %v8931_v26 = vpop.f32.mrf.mxu3  ;;  %v7282_v30 = vld [vmem:[#allocation8 + $0x650] sm:$0xf] }
 0x231   :  { %5075 = vmatpush.bf16.msrb.mxu2 %v6683_v15  ;;  %5093 = vmatpush.bf16.msrb.mxu3 %v6791_v31  ;;  %v6778_v15 = vld [vmem:[#allocation8 + $0x260] sm:$0xf]  ;;  %v8120_v31 = vld [vmem:[#allocation8 + $0x670] sm:$0xf0]  ;;  %9087 = vst [vmem:[#allocation28_spill] sm:$0xff] %v8929_v12 }
 0x232   :  { %5113 = vmatpush.bf16.msra.mxu0 %v6875_v37  ;;  %v8920_v37 = vpop.f32.mrf.mxu2  ;;  %v6779_v56 = vor.u32 %v7991_v44, %v6778_v15  ;;  %v8078_v15 = vld [vmem:[#allocation8 + $0x520] sm:$0xf0]  ;;  %v8117_v29 = vld [vmem:[#allocation8 + $0x658] sm:$0xf0] }
 0x233   :  { %5132 = vmatpush.bf16.msra.mxu1 %v6971_v14  ;;  %v8081_v14 = vld [vmem:[#allocation8 + $0x538] sm:$0xf0]  ;;  %v7127_v44 = vor.u32 %v8078_v15, %v7126_v55  ;;  %v7283_v15 = vor.u32 %v8117_v29, %v7282_v30  ;;  %v8111_v30 = vld [vmem:[#allocation8 + $0x628] sm:$0xf0] }
 0x235   :  { %5076 = vmatpush.bf16.msrb.mxu2 %v6671_v6  ;;  %v7427_v6 = vor.u32 %v8153_v51, %v7426_v22  ;;  %5094 = vmatpush.bf16.msrb.mxu3 %v6779_v56  ;;  %v8935_v22 = vpop.f32.mrf.mxu1  ;;  %v8105_v51 = vld [vmem:[#allocation8 + $0x5f8] sm:$0xf0] }
 0x236   :  { %5114 = vmatpush.bf16.msra.mxu0 %v6863_v41  ;;  %v7139_v41 = vor.u32 %v8081_v14, %v7138_v46  ;;  %v7414_v46 = vld [vmem:[#allocation8 + $0x758] sm:$0xf]  ;;  %v8150_v14 = vld [vmem:[#allocation8 + $0x760] sm:$0xf0] }
 0x237   :  { %5133 = vmatpush.bf16.msra.mxu1 %v6959_v18  ;;  %v6767_v18 = vor.u32 %v7988_v38, %v6766_v62  ;;  %v7415_v56 = vor.u32 %v8150_v14, %v7414_v46  ;;  %v7235_v62 = vor.u32 %v8105_v51, %v7234_v33  ;;  %v8075_v38 = vld [vmem:[#allocation8 + $0x508] sm:$0xf0]  ;;  %v7270_v46 = vld [vmem:[#allocation8 + $0x638] sm:$0xf] }
 0x238   :  { %5020 = vmatmul.bf16.vlgmr.msra.gmra.mxu3 %v8838_v19  ;;  %v7222_v14 = vld [vmem:[#allocation8 + $0x5d8] sm:$0xf]  ;;  %v7390_v19 = vld [vmem:[#allocation8 + $0x728] sm:$0xf] }
 0x239   :  { %5145 = vmatpush.bf16.msra.mxu2 %v7139_v41  ;;  %5095 = vmatpush.bf16.msrb.mxu3 %v6767_v18  ;;  %v8114_v18 = vld [vmem:[#allocation8 + $0x640] sm:$0xf0]  ;;  %v7223_v51 = vor.u32 %v8102_v27, %v7222_v14  ;;  %v8947_v27 = vpop.f32.mrf.mxu3 }
 0x23a   :  { %5183 = vmatpush.bf16.msrb.mxu0 %v7331_v40  ;;  %v8925_v40 = vpop.f32.mrf.mxu0  ;;  %v8933_v41 = vpop.f32.mrf.mxu2 }
 0x23b   :  { %9086 = vst [vmem:[#allocation27_spill] sm:$0xff] %v8925_v40  ;;  %5202 = vmatpush.bf16.msrb.mxu1 %v7427_v6  ;;  %v7114_v6 = vld [vmem:[#allocation8 + $0x500] sm:$0xf]  ;;  %v8144_v40 = vld [vmem:[#allocation8 + $0x730] sm:$0xf0]  ;;  %5115 = vmatmul.bf16.vlgmr.msra.gmra.mxu0 %v8604_v24 }
 0x23c   :  { %v7115_v55 = vor.u32 %v8075_v38, %v7114_v6  ;;  %v8072_v6 = vld [vmem:[#allocation8 + $0x4f0] sm:$0xf0]  ;;  %v7391_v29 = vor.u32 %v8144_v40, %v7390_v19  ;;  %v7378_v19 = vld [vmem:[#allocation8 + $0x710] sm:$0xf]  ;;  %v8141_v40 = vld [vmem:[#allocation8 + $0x718] sm:$0xf0] }
 0x23d   :  { %5146 = vmatpush.bf16.msra.mxu2 %v7127_v44  ;;  %5164 = vmatpush.bf16.msra.mxu3 %v7235_v62  ;;  %v7186_v24 = vld [vmem:[#allocation8 + $0x590] sm:$0xf] }
 0x23e   :  { %5184 = vmatpush.bf16.msrb.mxu0 %v7319_v10  ;;  %v7295_v10 = vor.u32 %v8120_v31, %v7294_v28  ;;  %v8147_v28 = vld [vmem:[#allocation8 + $0x748] sm:$0xf0]  ;;  %v8939_v31 = vperm.slane %v8929_v12, 0  ;;  %v7271_v12 = vor.u32 %v8114_v18, %v7270_v46  ;;  %v8069_v46 = vld [vmem:[#allocation8 + $0x4d8] sm:$0xf0] }
 0x23f   :  { %5203 = vmatpush.bf16.msrb.mxu1 %v7415_v56  ;;  %v7102_v56 = vld [vmem:[#allocation8 + $0x4e8] sm:$0xf]  ;;  %5006 = vmatmul.bf16.gmra.mxu2 %v8843_v47 }
 0x240   :  { %v7103_v38 = vor.u32 %v8072_v6, %v7102_v56  ;;  %v4585_v62 = vadd.f32 %v8847_v17, %v8939_v31  ;;  %5063 = vmatmul.bf16.gmra.mxu1 %v8542_v59  ;;  %v7246_v56 = vld [vmem:[#allocation8 + $0x608] sm:$0xf]  ;;  %v7379_v6 = vor.u32 %v8141_v40, %v7378_v19  ;;  %v8063_v40 = vld [vmem:[#allocation8 + $0x4a8] sm:$0xf0] }
 0x241   :  { %5147 = vmatpush.bf16.msra.mxu2 %v7115_v55  ;;  %5165 = vmatpush.bf16.msra.mxu3 %v7223_v51  ;;  %v8945_v55 = vpop.f32.mrf.mxu1  ;;  %v8108_v51 = vld [vmem:[#allocation8 + $0x610] sm:$0xf0]  ;;  %v7198_v47 = vld [vmem:[#allocation8 + $0x5a8] sm:$0xf] }
 0x242   :  { %5185 = vmatpush.bf16.msrb.mxu0 %v7307_v52  ;;  %v7402_v52 = vld [vmem:[#allocation8 + $0x740] sm:$0xf]  ;;  %v8941_v33 = vpop.f32.mrf.mxu0  ;;  %v8950_v18 = vpop.f32.mrf.mxu2  ;;  %v7247_v19 = vor.u32 %v8108_v51, %v7246_v56  ;;  %v8135_v51 = vld [vmem:[#allocation8 + $0x6e8] sm:$0xf0] }
 0x243   :  { %v7403_v44 = vor.u32 %v8147_v28, %v7402_v52  ;;  %v7210_v52 = vld [vmem:[#allocation8 + $0x5c0] sm:$0xf]  ;;  %v8099_v28 = vld [vmem:[#allocation8 + $0x5c8] sm:$0xf0] }
 0x244   :  { %v7354_v56 = vld [vmem:[#allocation8 + $0x6e0] sm:$0xf] }
 0x245   :  { %5204 = vmatpush.bf16.msrb.mxu1 %v7403_v44  ;;  %5148 = vmatpush.bf16.msra.mxu2 %v7103_v38  ;;  %v7090_v44 = vld [vmem:[#allocation8 + $0x4d0] sm:$0xf]  ;;  %v4604_v38 = vadd.f32 %v8849_v2, %v4585_v62  ;;  %v4587_v62 = vadd.f32 %v8856_v39, %v8939_v31  ;;  %v7355_v39 = vor.u32 %v8135_v51, %v7354_v56 }
 0x246   :  { %5186 = vmatpush.bf16.msrb.mxu0 %v7295_v10  ;;  %v7258_v10 = vld [vmem:[#allocation8 + $0x620] sm:$0xf]  ;;  %v7091_v14 = vor.u32 %v8069_v46, %v7090_v44  ;;  %v8066_v44 = vld [vmem:[#allocation8 + $0x4c0] sm:$0xf0] }
 0x247   :  { %v7259_v17 = vor.u32 %v8111_v30, %v7258_v10  ;;  %v4623_v46 = vadd.f32 %v8877_v13, %v4604_v38  ;;  %v8138_v10 = vld [vmem:[#allocation8 + $0x700] sm:$0xf0]  ;;  %v8964_v38 = vpop.f32.mrf.mxu3 }
 0x248   :  { %5025 = vmatmul.bf16.gmra.mxu3 %v8853_v5 }
 0x249   :  { %5205 = vmatpush.bf16.msrb.mxu1 %v7391_v29  ;;  %5149 = vmatpush.bf16.msra.mxu2 %v7091_v14  ;;  %v8096_v29 = vld [vmem:[#allocation8 + $0x5b0] sm:$0xf0]  ;;  %v7066_v14 = vld [vmem:[#allocation8 + $0x4a0] sm:$0xf] }
 0x24a   :  { %5187 = vmatpush.bf16.msrb.mxu0 %v7283_v15  ;;  %v7211_v15 = vor.u32 %v8099_v28, %v7210_v52  ;;  %v7078_v52 = vld [vmem:[#allocation8 + $0x4b8] sm:$0xf]  ;;  %v7199_v28 = vor.u32 %v8096_v29, %v7198_v47  ;;  %v8956_v30 = vpop.f32.mrf.mxu0  ;;  %v8093_v47 = vld [vmem:[#allocation8 + $0x598] sm:$0xf0]  ;;  %v4606_v29 = vadd.f32 %v8858_v25, %v4587_v62  ;;  %v4590_v25 = vadd.f32 %v8861_v7, %v8939_v31 }
 0x24b   :  { %v7079_v59 = vor.u32 %v8066_v44, %v7078_v52  ;;  %v7187_v13 = vor.u32 %v8093_v47, %v7186_v24  ;;  %v7174_v44 = vld [vmem:[#allocation8 + $0x578] sm:$0xf]  ;;  %v7342_v24 = vld [vmem:[#allocation8 + $0x6c8] sm:$0xf]  ;;  %5120 = vmatmul.bf16.gmra.mxu0 %v8625_v48  ;;  %v8201_v48 = vld [vmem:[#allocation8 + $0x8f8] sm:$0xf0] }
 0x24c   :  { %5166 = vmatpush.bf16.msra.mxu3 %v7211_v15  ;;  %v8960_v15 = vpop.f32.mrf.mxu1 }
 0x24d   :  { %5206 = vmatpush.bf16.msrb.mxu1 %v7379_v6  ;;  %5150 = vmatpush.bf16.msra.mxu2 %v7079_v59  ;;  %v4642_v6 = vadd.f32 %v8884_v63, %v4623_v46  ;;  %v8090_v59 = vld [vmem:[#allocation8 + $0x580] sm:$0xf0]  ;;  %v7054_v63 = vld [vmem:[#allocation8 + $0x488] sm:$0xf] }
 0x24e   :  { %5188 = vmatpush.bf16.msrb.mxu0 %v7271_v12  ;;  %v7366_v12 = vld [vmem:[#allocation8 + $0x6f8] sm:$0xf]  ;;  %v7175_v46 = vor.u32 %v8090_v59, %v7174_v44  ;;  %v8084_v44 = vld [vmem:[#allocation8 + $0x550] sm:$0xf0] }
 0x24f   :  { %v7367_v2 = vor.u32 %v8138_v10, %v7366_v12  ;;  %v4661_v52 = vadd.f32 %v8873_v3, %v4642_v6  ;;  %v8060_v12 = vld [vmem:[#allocation8 + $0x490] sm:$0xf0]  ;;  %v4625_v10 = vadd.f32 %v8886_v0, %v4606_v29  ;;  %5077 = vmatmul.bf16.vlgmr.msrb.gmra.mxu2 %v8559_v57  ;;  %v7510_v57 = vld [vmem:[#allocation8 + $0x818] sm:$0xf]  ;;  %v8984_v59 = vpop.f32.mrf.mxu3 }
 0x250   :  { %5167 = vmatpush.bf16.msra.mxu3 %v7199_v28  ;;  %v8968_v28 = vpop.f32.mrf.mxu2  ;;  %5134 = vmatmul.bf16.vlgmr.msra.gmra.mxu1 %v8633_v58 }
 0x251   :  { %5207 = vmatpush.bf16.msrb.mxu1 %v7367_v2  ;;  %v7055_v2 = vor.u32 %v8060_v12, %v7054_v63  ;;  %v4680_v3 = vadd.f32 %v8879_v54, %v4661_v52  ;;  %v4644_v56 = vadd.f32 %v8895_v49, %v4625_v10  ;;  %v4609_v54 = vadd.f32 %v8865_v50, %v4590_v25  ;;  %v7150_v52 = vld [vmem:[#allocation8 + $0x548] sm:$0xf]  ;;  %v8174_v63 = vld [vmem:[#allocation8 + $0x820] sm:$0xf0] }
 0x252   :  { %5189 = vmatpush.bf16.msrb.mxu0 %v7259_v17  ;;  %v7067_v17 = vor.u32 %v8063_v40, %v7066_v14  ;;  %v7162_v14 = vld [vmem:[#allocation8 + $0x560] sm:$0xf]  ;;  %v7522_v40 = vld [vmem:[#allocation8 + $0x830] sm:$0xf]  ;;  %v8976_v6 = vpop.f32.mrf.mxu0  ;;  %v7151_v49 = vor.u32 %v8084_v44, %v7150_v52  ;;  %v4592_v50 = vadd.f32 %v8868_v60, %v8939_v31 }
 0x253   :  { %v4699_v7 = vadd.f32 %v8920_v37, %v4680_v3  ;;  %v4628_v37 = vadd.f32 %v8897_v20, %v4609_v54  ;;  %v7594_v54 = vld [vmem:[#allocation8 + $0x8c0] sm:$0xf]  ;;  %v7474_v52 = vld [vmem:[#allocation8 + $0x7d0] sm:$0xf] }
 0x254   :  { %5168 = vmatpush.bf16.msra.mxu3 %v7187_v13  ;;  %5151 = vmatpush.bf16.msra.mxu2 %v7067_v17  ;;  %v8974_v62 = vpop.f32.mrf.mxu1  ;;  %v8087_v13 = vld [vmem:[#allocation8 + $0x568] sm:$0xf0]  ;;  %v8177_v17 = vld [vmem:[#allocation8 + $0x838] sm:$0xf0] }
 0x255   :  { %5208 = vmatpush.bf16.msrb.mxu1 %v7355_v39  ;;  %v7163_v0 = vor.u32 %v8087_v13, %v7162_v14  ;;  %v7523_v51 = vor.u32 %v8177_v17, %v7522_v40  ;;  %v4663_v39 = vadd.f32 %v8882_v42, %v4644_v56  ;;  %v4718_v58 = vadd.f32 %v8931_v26, %v4699_v7  ;;  %v7606_v13 = vld [vmem:[#allocation8 + $0x8d8] sm:$0xf]  ;;  %v8198_v40 = vld [vmem:[#allocation8 + $0x8e0] sm:$0xf0]  ;;  %v8168_v17 = vld [vmem:[#allocation8 + $0x7f0] sm:$0xf0] }
 0x256   :  { %5190 = vmatpush.bf16.msrb.mxu0 %v7247_v19  ;;  %v8132_v19 = vld [vmem:[#allocation8 + $0x6d0] sm:$0xf0]  ;;  %v4647_v20 = vadd.f32 %v8907_v21, %v4628_v37  ;;  %v7486_v21 = vld [vmem:[#allocation8 + $0x7e8] sm:$0xf] }
 0x257   :  { %v7343_v47 = vor.u32 %v8132_v19, %v7342_v24  ;;  %v4682_v42 = vadd.f32 %v8892_v32, %v4663_v39  ;;  %v4737_v12 = vadd.f32 %v8905_v4, %v4718_v58  ;;  %v7498_v24 = vld [vmem:[#allocation8 + $0x800] sm:$0xf]  ;;  %v4611_v4 = vadd.f32 %v8870_v8, %v4592_v50  ;;  %v8195_v39 = vld [vmem:[#allocation8 + $0x8c8] sm:$0xf0]  ;;  %v7582_v37 = vld [vmem:[#allocation8 + $0x8a8] sm:$0xf] }
 0x258   :  { %5169 = vmatpush.bf16.msra.mxu3 %v7175_v46  ;;  %5152 = vmatpush.bf16.msra.mxu2 %v7055_v2  ;;  %v4774_v29 = vpop.f32.mrf.mxu2  ;;  %v7511_v46 = vor.u32 %v8174_v63, %v7510_v57  ;;  %v7618_v2 = vld [vmem:[#allocation8 + $0x8f0] sm:$0xf]  ;;  %v4666_v31 = vadd.f32 %v8889_v11, %v4647_v20  ;;  %v7487_v7 = vor.u32 %v8168_v17, %v7486_v21  ;;  %v7462_v58 = vld [vmem:[#allocation8 + $0x7b8] sm:$0xf]  ;;  %v7450_v20 = vld [vmem:[#allocation8 + $0x7a0] sm:$0xf] }
 0x259   :  { %5209 = vmatpush.bf16.msrb.mxu1 %v7343_v47  ;;  %v7619_v19 = vor.u32 %v8201_v48, %v7618_v2  ;;  %v8171_v47 = vld [vmem:[#allocation8 + $0x808] sm:$0xf0]  ;;  %v4701_v26 = vadd.f32 %v8933_v41, %v4682_v42  ;;  %v4756_v25 = vadd.f32 %v8922_v16, %v4737_v12  ;;  %5096 = vmatmul.bf16.vlgmr.msrb.gmra.mxu3 %v8571_v53  ;;  %v9088_v12 = vld [vmem:[#allocation27_spill] sm:$0xff]  ;;  %v8156_v21 = vld [vmem:[#allocation8 + $0x790] sm:$0xf0] }
 0x25a   :  { %v7499_v60 = vor.u32 %v8171_v47, %v7498_v24  ;;  %v8999_v32 = vpop.f32.mrf.mxu0  ;;  %v7607_v41 = vor.u32 %v8198_v40, %v7606_v13  ;;  %v4630_v16 = vadd.f32 %v8910_v9, %v4611_v4  ;;  %v4685_v8 = vadd.f32 %v8902_v35, %v4666_v31  ;;  %v8165_v9 = vld [vmem:[#allocation8 + $0x7d8] sm:$0xf0]  ;;  %v7570_v24 = vld [vmem:[#allocation8 + $0x890] sm:$0xf]  ;;  %v7558_v31 = vld [vmem:[#allocation8 + $0x878] sm:$0xf] }
 0x25b   :  { %v4775_v3 = vadd.f32 %v4774_v29, %v4756_v25  ;;  %v4720_v53 = vadd.f32 %v8947_v27, %v4701_v26  ;;  %v7595_v29 = vor.u32 %v8195_v39, %v7594_v54  ;;  %v7475_v35 = vor.u32 %v8165_v9, %v7474_v52  ;;  %5191 = vmatmul.bf16.vlgmr.msrb.gmra.mxu0 %v8771_v43  ;;  %v8159_v43 = vld [vmem:[#allocation8 + $0x7a8] sm:$0xf0]  ;;  %v9089_v25 = vld [vmem:[#allocation16_spill] sm:$0xff]  ;;  %v8180_v52 = vld [vmem:[#allocation8 + $0x850] sm:$0xf0] }
 0x25c   :  { %5170 = vmatpush.bf16.msra.mxu3 %v7163_v0  ;;  %5221 = vmatpush.bf16.msrb.mxu2 %v7523_v51  ;;  %v8993_v10 = vpop.f32.mrf.mxu1  ;;  %v4793_v0 = vpop.f32.mrf.mxu3  ;;  %v4649_v27 = vadd.f32 %v8918_v36, %v4630_v16  ;;  %v4704_v44 = vadd.f32 %v8950_v18, %v4685_v8  ;;  %v8162_v18 = vld [vmem:[#allocation8 + $0x7c0] sm:$0xf0]  ;;  %v7546_v16 = vld [vmem:[#allocation8 + $0x860] sm:$0xf]  ;;  %v9091_v54 = vld [vmem:[#allocation21_spill] sm:$0xff] }
 0x25d   :  { %v4794_v56 = vadd.f32 %v4793_v0, %v4775_v3  ;;  %v4739_v11 = vadd.f32 %v8916_v1, %v4720_v53  ;;  %v8186_v3 = vld [vmem:[#allocation8 + $0x880] sm:$0xf0]  ;;  %v8183_v53 = vld [vmem:[#allocation8 + $0x868] sm:$0xf0] }
 0x25e   :  { %v4668_v1 = vadd.f32 %v8900_v45, %v4649_v27  ;;  %v7559_v40 = vor.u32 %v8186_v3, %v7558_v31  ;;  %v9092_v27 = vld [vmem:[#allocation22_spill] sm:$0xff] }
 0x25f   :  { %5259 = vst [vmem:[#allocation11] sm:$0xff] %v4794_v56  ;;  %5082 = vmatmul.bf16.gmra.mxu2 %v8582_v23  ;;  %v4758_v57 = vadd.f32 %v8935_v22, %v4739_v11  ;;  %v8192_v23 = vld [vmem:[#allocation8 + $0x8b0] sm:$0xf0]  ;;  %v4723_v22 = vadd.f32 %v8964_v38, %v4704_v44  ;;  %v9090_v56 = vld [vmem:[#allocation17_spill] sm:$0xff] }
 0x260   :  { %5171 = vmatpush.bf16.msra.mxu3 %v7151_v49  ;;  %5222 = vmatpush.bf16.msrb.mxu2 %v7511_v46  ;;  %v4776_v14 = vpop.f32.mrf.mxu2  ;;  %v7583_v36 = vor.u32 %v8192_v23, %v7582_v37  ;;  %v4687_v45 = vadd.f32 %v8913_v61, %v4668_v1  ;;  %v9095_v23 = vld [vmem:[#allocation23_spill] sm:$0xff] }
 0x261   :  { %5139 = vmatmul.bf16.gmra.mxu1 %v8655_v34  ;;  %v4777_v49 = vadd.f32 %v4776_v14, %v4758_v57  ;;  %v7463_v34 = vor.u32 %v8162_v18, %v7462_v58  ;;  %v4742_v2 = vadd.f32 %v9088_v12, %v4723_v22  ;;  %v7438_v14 = vld [vmem:[#allocation8 + $0x788] sm:$0xf] }
 0x262   :  { %v9015_v46 = vpop.f32.mrf.mxu0  ;;  %v4706_v26 = vadd.f32 %v8968_v28, %v4687_v45  ;;  %v7439_v17 = vor.u32 %v8156_v21, %v7438_v14  ;;  %v9096_v18 = vld [vmem:[#allocation20_spill] sm:$0xff] }
 0x263   :  { %v4761_v38 = vadd.f32 %v8945_v55, %v4742_v2  ;;  %v9097_v12 = vld [vmem:[#allocation24_spill] sm:$0xff] }
 0x264   :  { %5240 = vmatpush.bf16.msrb.mxu3 %v7619_v19  ;;  %5223 = vmatpush.bf16.msrb.mxu2 %v7499_v60  ;;  %v9007_v51 = vpop.f32.mrf.mxu1  ;;  %v4795_v50 = vpop.f32.mrf.mxu3  ;;  %v8189_v19 = vld [vmem:[#allocation8 + $0x898] sm:$0xf0]  ;;  %v7451_v60 = vor.u32 %v8159_v43, %v7450_v20  ;;  %v4725_v0 = vadd.f32 %v8984_v59, %v4706_v26  ;;  %v9098_v20 = vld [vmem:[#allocation25_spill] sm:$0xff]  ;;  %v9099_v43 = vld [vmem:[#allocation28_spill] sm:$0xff] }
 0x265   :  { %v4796_v42 = vadd.f32 %v4795_v50, %v4777_v49  ;;  %v7571_v47 = vor.u32 %v8189_v19, %v7570_v24  ;;  %v3034_v26 = vperm.slane %v9099_v43, 1 }
 0x266   :  { %v4744_v55 = vadd.f32 %v8941_v33, %v4725_v0 }
 0x267   :  { %5262 = vst [vmem:[#allocation11 + $0x18] sm:$0xff] %v4796_v42  ;;  %v4815_v0 = vadd.f32 %v8976_v6, %v3034_v26 }
 0x268   :  { %5241 = vmatpush.bf16.msrb.mxu3 %v7607_v41  ;;  %5224 = vmatpush.bf16.msrb.mxu2 %v7487_v7  ;;  %v4779_v63 = vpop.f32.mrf.mxu2  ;;  %v7547_v7 = vor.u32 %v8183_v53, %v7546_v16  ;;  %v4763_v8 = vadd.f32 %v8960_v15, %v4744_v55 }
 0x269   :  { %5101 = vmatmul.bf16.gmra.mxu3 %v9089_v25  ;;  %v4780_v61 = vadd.f32 %v4779_v63, %v4761_v38  ;;  %v9094_v63 = vld [vmem:[#allocation19_spill] sm:$0xff] }
 0x26a   :  { %v4888_v28 = vpop.f32.mrf.mxu0 }
 0x26b   :  { %5196 = vmatmul.bf16.gmra.mxu0 %v9092_v27 }
 0x26c   :  { %5242 = vmatpush.bf16.msrb.mxu3 %v7595_v29  ;;  %5225 = vmatpush.bf16.msrb.mxu2 %v7475_v35  ;;  %v9021_v48 = vpop.f32.mrf.mxu1  ;;  %v4798_v13 = vpop.f32.mrf.mxu3  ;;  %v7534_v29 = vld [vmem:[#allocation8 + $0x848] sm:$0xf]  ;;  %v9093_v35 = vld [vmem:[#allocation18_spill] sm:$0xff] }
 0x26d   :  { %v4799_v41 = vadd.f32 %v4798_v13, %v4780_v61  ;;  %v7535_v33 = vor.u32 %v8180_v52, %v7534_v29 }
 0x26f   :  { %5265 = vst [vmem:[#allocation11 + $0x30] sm:$0xff] %v4799_v41  ;;  %5153 = vmatmul.bf16.vlgmr.msra.gmra.mxu2 %v9090_v56  ;;  %v4834_v41 = vadd.f32 %v8993_v10, %v4815_v0 }
 0x270   :  { %5243 = vmatpush.bf16.msrb.mxu3 %v7583_v36  ;;  %5226 = vmatpush.bf16.msrb.mxu2 %v7463_v34  ;;  %v4781_v4 = vpop.f32.mrf.mxu2 }
 0x271   :  { %5210 = vmatmul.bf16.vlgmr.msrb.gmra.mxu1 %v9091_v54  ;;  %v4782_v59 = vadd.f32 %v4781_v4, %v4763_v8  ;;  %v9100_v4 = vld [vmem:[#allocation26_spill] sm:$0xff] }
 0x272   :  { %v4890_v57 = vpop.f32.mrf.mxu0 }
 0x274   :  { %5244 = vmatpush.bf16.msrb.mxu3 %v7571_v47  ;;  %5227 = vmatpush.bf16.msrb.mxu2 %v7451_v60  ;;  %v4907_v11 = vpop.f32.mrf.mxu1  ;;  %v4800_v9 = vpop.f32.mrf.mxu3  ;;  %v4813_v60 = vadd.f32 %v8956_v30, %v3034_v26 }
 0x275   :  { %v4801_v44 = vadd.f32 %v4800_v9, %v4782_v59 }
 0x276   :  { %v4832_v31 = vadd.f32 %v8974_v62, %v4813_v60  ;;  %v4818_v62 = vadd.f32 %v8999_v32, %v3034_v26 }
 0x277   :  { %5268 = vst [vmem:[#allocation11 + $0x48] sm:$0xff] %v4801_v44 }
 0x278   :  { %5245 = vmatpush.bf16.msrb.mxu3 %v7559_v40  ;;  %5228 = vmatpush.bf16.msrb.mxu2 %v7439_v17  ;;  %v4850_v39 = vpop.f32.mrf.mxu2  ;;  %v4837_v59 = vadd.f32 %v9007_v51, %v4818_v62 }
 0x279   :  { %5172 = vmatmul.bf16.vlgmr.msra.gmra.mxu3 %v9093_v35  ;;  %v4851_v3 = vadd.f32 %v4850_v39, %v4832_v31 }
 0x27a   :  { %v4893_v37 = vpop.f32.mrf.mxu0 }
 0x27c   :  { %5246 = vmatpush.bf16.msrb.mxu3 %v7547_v7  ;;  %v4909_v1 = vpop.f32.mrf.mxu1  ;;  %v4869_v49 = vpop.f32.mrf.mxu3 }
 0x27d   :  { %v4870_v21 = vadd.f32 %v4869_v49, %v4851_v3 }
 0x27f   :  { %5158 = vmatmul.bf16.gmra.mxu2 %v9094_v63  ;;  %v4889_v17 = vadd.f32 %v4888_v28, %v4870_v21 }
 0x280   :  { %5247 = vmatpush.bf16.msrb.mxu3 %v7535_v33  ;;  %v4852_v15 = vpop.f32.mrf.mxu2  ;;  %v4820_v33 = vadd.f32 %v9015_v46, %v3034_v26 }
 0x281   :  { %5215 = vmatmul.bf16.gmra.mxu1 %v9095_v23  ;;  %v4853_v16 = vadd.f32 %v4852_v15, %v4834_v41  ;;  %v4908_v7 = vadd.f32 %v4907_v11, %v4889_v17 }
 0x282   :  { %v4895_v42 = vpop.f32.mrf.mxu0  ;;  %v4839_v11 = vadd.f32 %v9021_v48, %v4820_v33 }
 0x284   :  { %v4871_v50 = vpop.f32.mrf.mxu3  ;;  %v4912_v36 = vpop.f32.mrf.mxu1 }
 0x285   :  { %v4872_v56 = vadd.f32 %v4871_v50, %v4853_v16 }
 0x287   :  { %v4891_v39 = vadd.f32 %v4890_v57, %v4872_v56 }
 0x288   :  { %v4855_v58 = vpop.f32.mrf.mxu2 }
 0x289   :  { %5177 = vmatmul.bf16.gmra.mxu3 %v9096_v18  ;;  %v4856_v6 = vadd.f32 %v4855_v58, %v4837_v59 }
 0x28a   :  { %v4964_v19 = vpop.f32.mrf.mxu0 }
 0x28c   :  { %v4874_v34 = vpop.f32.mrf.mxu3  ;;  %v9036_v45 = vpop.f32.mrf.mxu1 }
 0x28d   :  { %v4875_v9 = vadd.f32 %v4874_v34, %v4856_v6 }
 0x28f   :  { %5229 = vmatmul.bf16.vlgmr.msrb.gmra.mxu2 %v9097_v12  ;;  %v4894_v15 = vadd.f32 %v4893_v37, %v4875_v9 }
 0x290   :  { %v4857_v22 = vpop.f32.mrf.mxu2 }
 0x291   :  { %v4858_v63 = vadd.f32 %v4857_v22, %v4839_v11  ;;  %v4913_v50 = vadd.f32 %v4912_v36, %v4894_v15 }
 0x292   :  { %v4966_v61 = vpop.f32.mrf.mxu0 }
 0x294   :  { %v4876_v24 = vpop.f32.mrf.mxu3  ;;  %v4983_v47 = vpop.f32.mrf.mxu1 }
 0x295   :  { %v4877_v58 = vadd.f32 %v4876_v24, %v4858_v63 }
 0x298   :  { %v4926_v2 = vpop.f32.mrf.mxu2 }
 0x299   :  { %5248 = vmatmul.bf16.vlgmr.msrb.gmra.mxu3 %v9098_v20  ;;  %v4927_v54 = vadd.f32 %v4926_v2, %v4908_v7  ;;  %v4896_v2 = vadd.f32 %v4895_v42, %v4877_v58 }
 0x29a   :  { %v4969_v55 = vpop.f32.mrf.mxu0 }
 0x29c   :  { %v4945_v25 = vpop.f32.mrf.mxu3  ;;  %v4985_v14 = vpop.f32.mrf.mxu1 }
 0x29d   :  { %v4946_v29 = vadd.f32 %v4945_v25, %v4927_v54 }
 0x29f   :  { %5234 = vmatmul.bf16.gmra.mxu2 %v9100_v4  ;;  %v4965_v27 = vadd.f32 %v4964_v19, %v4946_v29 }
 0x2a0   :  { %v4928_v38 = vpop.f32.mrf.mxu2 }
 0x2a1   :  { %v4984_v49 = vadd.f32 %v4983_v47, %v4965_v27  ;;  %v4915_v47 = vadd.f32 %v9036_v45, %v4896_v2 }
 0x2a2   :  { %v4971_v10 = vpop.f32.mrf.mxu0 }
 0x2a4   :  { %v4947_v40 = vpop.f32.mrf.mxu3  ;;  %v4988_v8 = vpop.f32.mrf.mxu1 }
 0x2a8   :  { %v4931_v13 = vpop.f32.mrf.mxu2 }
 0x2a9   :  { %5253 = vmatmul.bf16.gmra.mxu3 %v8853_v5  ;;  %v4910_v5 = vadd.f32 %v4909_v1, %v4891_v39  ;;  %v4932_v1 = vadd.f32 %v4931_v13, %v4913_v50 }
 0x2aa   :  { %v5040_v34 = vpop.f32.mrf.mxu0 }
 0x2ab   :  { %v4929_v44 = vadd.f32 %v4928_v38, %v4910_v5 }
 0x2ac   :  { %v4950_v53 = vpop.f32.mrf.mxu3  ;;  %v4990_v35 = vpop.f32.mrf.mxu1 }
 0x2ad   :  { %v4948_v32 = vadd.f32 %v4947_v40, %v4929_v44  ;;  %v4951_v46 = vadd.f32 %v4950_v53, %v4932_v1 }
 0x2af   :  { %v4967_v18 = vadd.f32 %v4966_v61, %v4948_v32  ;;  %v4970_v22 = vadd.f32 %v4969_v55, %v4951_v46 }
 0x2b0   :  { %v4933_v30 = vpop.f32.mrf.mxu2 }
 0x2b1   :  { %v4986_v20 = vadd.f32 %v4985_v14, %v4967_v18  ;;  %v4934_v25 = vadd.f32 %v4933_v30, %v4915_v47  ;;  %v4989_v60 = vadd.f32 %v4988_v8, %v4970_v22 }
 0x2b2   :  { %v5042_v24 = vpop.f32.mrf.mxu0 }
 0x2b4   :  { %v4952_v28 = vpop.f32.mrf.mxu3  ;;  %v5059_v19 = vpop.f32.mrf.mxu1 }
 0x2b5   :  { %v4953_v36 = vadd.f32 %v4952_v28, %v4934_v25  ;;  %v3035_v28 = vperm.slane %v9099_v43, 2 }
 0x2b7   :  { %v4972_v42 = vadd.f32 %v4971_v10, %v4953_v36  ;;  %v5041_v33 = vadd.f32 %v5040_v34, %v3035_v28  ;;  %v5043_v63 = vadd.f32 %v5042_v24, %v3035_v28 }
 0x2b8   :  { %v5002_v52 = vpop.f32.mrf.mxu2 }
 0x2b9   :  { %v5003_v51 = vadd.f32 %v5002_v52, %v4984_v49  ;;  %v4991_v14 = vadd.f32 %v4990_v35, %v4972_v42  ;;  %v5060_v44 = vadd.f32 %v5059_v19, %v5041_v33 }
 0x2ba   :  { %v5045_v40 = vpop.f32.mrf.mxu0 }
 0x2bb   :  { %v5046_v2 = vadd.f32 %v5045_v40, %v3035_v28 }
 0x2bc   :  { %v5021_v23 = vpop.f32.mrf.mxu3  ;;  %v5061_v61 = vpop.f32.mrf.mxu1 }
 0x2bd   :  { %v5022_v12 = vadd.f32 %v5021_v23, %v5003_v51 }
 0x2bf   :  { %5260 = vst [vmem:[#allocation11 + $0x8] sm:$0xff] %v5022_v12 }
 0x2c0   :  { %v5004_v57 = vpop.f32.mrf.mxu2 }
 0x2c1   :  { %v5005_v26 = vadd.f32 %v5004_v57, %v4986_v20  ;;  %v5062_v57 = vadd.f32 %v5061_v61, %v5043_v63 }
 0x2c2   :  { %v5047_v16 = vpop.f32.mrf.mxu0 }
 0x2c3   :  { %v5048_v24 = vadd.f32 %v5047_v16, %v3035_v28 }
 0x2c4   :  { %v5023_v37 = vpop.f32.mrf.mxu3  ;;  %v5064_v45 = vpop.f32.mrf.mxu1 }
 0x2c5   :  { %v5024_v38 = vadd.f32 %v5023_v37, %v5005_v26  ;;  %v5065_v20 = vadd.f32 %v5064_v45, %v5046_v2 }
 0x2c7   :  { %5263 = vst [vmem:[#allocation11 + $0x20] sm:$0xff] %v5024_v38 }
 0x2c8   :  { %v5007_v48 = vpop.f32.mrf.mxu2 }
 0x2c9   :  { %v5008_v4 = vadd.f32 %v5007_v48, %v4989_v60 }
 0x2ca   :  { %v5116_v8 = vpop.f32.mrf.mxu0 }
 0x2cc   :  { %v5026_v3 = vpop.f32.mrf.mxu3  ;;  %v5066_v53 = vpop.f32.mrf.mxu1 }
 0x2cd   :  { %v5027_v13 = vadd.f32 %v5026_v3, %v5008_v4  ;;  %v5067_v61 = vadd.f32 %v5066_v53, %v5048_v24 }
 0x2cf   :  { %5266 = vst [vmem:[#allocation11 + $0x38] sm:$0xff] %v5027_v13 }
 0x2d0   :  { %v5009_v31 = vpop.f32.mrf.mxu2 }
 0x2d1   :  { %v5010_v21 = vadd.f32 %v5009_v31, %v4991_v14 }
 0x2d2   :  { %v5118_v39 = vpop.f32.mrf.mxu0 }
 0x2d4   :  { %v5028_v41 = vpop.f32.mrf.mxu3  ;;  %v5135_v62 = vpop.f32.mrf.mxu1 }
 0x2d5   :  { %v5029_v17 = vadd.f32 %v5028_v41, %v5010_v21 }
 0x2d7   :  { %5269 = vst [vmem:[#allocation11 + $0x50] sm:$0xff] %v5029_v17 }
 0x2d8   :  { %v5078_v0 = vpop.f32.mrf.mxu2 }
 0x2d9   :  { %v5079_v35 = vadd.f32 %v5078_v0, %v5060_v44 }
 0x2da   :  { %v5121_v10 = vpop.f32.mrf.mxu0 }
 0x2dc   :  { %v5097_v30 = vpop.f32.mrf.mxu3  ;;  %v5137_v29 = vpop.f32.mrf.mxu1 }
 0x2dd   :  { %v5098_v49 = vadd.f32 %v5097_v30, %v5079_v35 }
 0x2df   :  { %v5117_v23 = vadd.f32 %v5116_v8, %v5098_v49 }
 0x2e0   :  { %v5080_v55 = vpop.f32.mrf.mxu2 }
 0x2e1   :  { %v5081_v58 = vadd.f32 %v5080_v55, %v5062_v57  ;;  %v5136_v1 = vadd.f32 %v5135_v62, %v5117_v23 }
 0x2e2   :  { %v5123_v15 = vpop.f32.mrf.mxu0 }
 0x2e4   :  { %v5099_v7 = vpop.f32.mrf.mxu3  ;;  %v5140_v27 = vpop.f32.mrf.mxu1 }
 0x2e5   :  { %v5100_v12 = vadd.f32 %v5099_v7, %v5081_v58 }
 0x2e7   :  { %v5119_v34 = vadd.f32 %v5118_v39, %v5100_v12 }
 0x2e8   :  { %v5083_v56 = vpop.f32.mrf.mxu2 }
 0x2e9   :  { %v5084_v48 = vadd.f32 %v5083_v56, %v5065_v20  ;;  %v5138_v38 = vadd.f32 %v5137_v29, %v5119_v34 }
 0x2ea   :  { %v5192_v43 = vpop.f32.mrf.mxu0 }
 0x2ec   :  { %v5102_v59 = vpop.f32.mrf.mxu3  ;;  %v5142_v51 = vpop.f32.mrf.mxu1 }
 0x2ed   :  { %v5103_v22 = vadd.f32 %v5102_v59, %v5084_v48 }
 0x2ef   :  { %v5122_v4 = vadd.f32 %v5121_v10, %v5103_v22 }
 0x2f0   :  { %v5085_v54 = vpop.f32.mrf.mxu2 }
 0x2f1   :  { %v5086_v42 = vadd.f32 %v5085_v54, %v5067_v61  ;;  %v5141_v41 = vadd.f32 %v5140_v27, %v5122_v4 }
 0x2f2   :  { %v5194_v60 = vpop.f32.mrf.mxu0 }
 0x2f4   :  { %v5104_v52 = vpop.f32.mrf.mxu3  ;;  %v5211_v19 = vpop.f32.mrf.mxu1 }
 0x2f5   :  { %v5105_v0 = vadd.f32 %v5104_v52, %v5086_v42 }
 0x2f7   :  { %v5124_v30 = vadd.f32 %v5123_v15, %v5105_v0 }
 0x2f8   :  { %v5154_v6 = vpop.f32.mrf.mxu2 }
 0x2f9   :  { %v5155_v46 = vadd.f32 %v5154_v6, %v5136_v1  ;;  %v5143_v62 = vadd.f32 %v5142_v51, %v5124_v30 }
 0x2fa   :  { %v5197_v7 = vpop.f32.mrf.mxu0 }
 0x2fc   :  { %v5173_v5 = vpop.f32.mrf.mxu3  ;;  %v5213_v13 = vpop.f32.mrf.mxu1 }
 0x2fd   :  { %v5174_v26 = vadd.f32 %v5173_v5, %v5155_v46 }
 0x2ff   :  { %v5193_v25 = vadd.f32 %v5192_v43, %v5174_v26 }
 0x300   :  { %v5156_v9 = vpop.f32.mrf.mxu2 }
 0x301   :  { %v5157_v36 = vadd.f32 %v5156_v9, %v5138_v38  ;;  %v5212_v3 = vadd.f32 %v5211_v19, %v5193_v25 }
 0x302   :  { %v5199_v9 = vpop.f32.mrf.mxu0 }
 0x304   :  { %v5175_v32 = vpop.f32.mrf.mxu3  ;;  %v5216_v54 = vpop.f32.mrf.mxu1 }
 0x305   :  { %v5176_v31 = vadd.f32 %v5175_v32, %v5157_v36 }
 0x307   :  { %v5195_v45 = vadd.f32 %v5194_v60, %v5176_v31 }
 0x308   :  { %v5159_v11 = vpop.f32.mrf.mxu2 }
 0x309   :  { %v5160_v55 = vadd.f32 %v5159_v11, %v5141_v41  ;;  %v5214_v16 = vadd.f32 %v5213_v13, %v5195_v45 }
 0x30c   :  { %v5178_v18 = vpop.f32.mrf.mxu3  ;;  %v5218_v44 = vpop.f32.mrf.mxu1 }
 0x30d   :  { %v5179_v56 = vadd.f32 %v5178_v18, %v5160_v55 }
 0x30f   :  { %v5198_v59 = vadd.f32 %v5197_v7, %v5179_v56 }
 0x310   :  { %v5161_v50 = vpop.f32.mrf.mxu2 }
 0x311   :  { %v5162_v6 = vadd.f32 %v5161_v50, %v5143_v62  ;;  %v5217_v52 = vadd.f32 %v5216_v54, %v5198_v59 }
 0x314   :  { %v5180_v47 = vpop.f32.mrf.mxu3 }
 0x315   :  { %v5181_v10 = vadd.f32 %v5180_v47, %v5162_v6 }
 0x317   :  { %v5200_v27 = vadd.f32 %v5199_v9, %v5181_v10 }
 0x318   :  { %v5230_v37 = vpop.f32.mrf.mxu2 }
 0x319   :  { %v5231_v14 = vadd.f32 %v5230_v37, %v5212_v3  ;;  %v5219_v11 = vadd.f32 %v5218_v44, %v5200_v27 }
 0x31c   :  { %v5249_v21 = vpop.f32.mrf.mxu3 }
 0x31d   :  { %v5250_v17 = vadd.f32 %v5249_v21, %v5231_v14 }
 0x31f   :  { %5261 = vst [vmem:[#allocation11 + $0x10] sm:$0xff] %v5250_v17 }
 0x320   :  { %v5232_v40 = vpop.f32.mrf.mxu2 }
 0x321   :  { %v5233_v8 = vadd.f32 %v5232_v40, %v5214_v16 }
 0x324   :  { %v5251_v53 = vpop.f32.mrf.mxu3 }
 0x325   :  { %v5252_v39 = vadd.f32 %v5251_v53, %v5233_v8 }
 0x327   :  { %5264 = vst [vmem:[#allocation11 + $0x28] sm:$0xff] %v5252_v39 }
 0x328   :  { %v5235_v29 = vpop.f32.mrf.mxu2 }
 0x329   :  { %v5236_v28 = vadd.f32 %v5235_v29, %v5217_v52 }
 0x32c   :  { %v5254_v5 = vpop.f32.mrf.mxu3 }
 0x32d   :  { %v5255_v33 = vadd.f32 %v5254_v5, %v5236_v28 }
 0x32f   :  { %5267 = vst [vmem:[#allocation11 + $0x40] sm:$0xff] %v5255_v33 }
 0x330   :  { %v5237_v35 = vpop.f32.mrf.mxu2 }
 0x331   :  { %v5238_v15 = vadd.f32 %v5237_v35, %v5219_v11 }
 0x334   :  { %v5256_v32 = vpop.f32.mrf.mxu3 }
 0x335   :  { %v5257_v49 = vadd.f32 %v5256_v32, %v5238_v15 }
 0x337   :  { %5270 = vst [vmem:[#allocation11 + $0x58] sm:$0xff] %v5257_v49 }
 0x338   :  { %5283 = dma.vmem_to_hbm [thread:$0]  %s5276_s4, 1536, %s5278_s21, [#allocation4], %s8377_s22, %s8377_s22, %s8378_s23  }
 0x339   :  { %8365 = dma.done.wait [#allocation4], 1536  }
 0x33a   :  { %8366 = vsyncadd [#allocation4], 4294965760 }
 0x33b   :  { %5288 = vsyncpa [#allocation3], 1 }
 0x33c   :  { %5289 = vsyncpa [#allocation6], 1 }
 0x33d   :  { %5290 = vsyncpa [#allocation9], 1 }
 0x33e   :  { %5291 = vsyncpa [#allocation4], 1 }

</bundles_post_ra>
